<compile_context>
chip_gen: v7x
topology: tpu7x:2x2x1
jax: 0.10.0
libtpu: 0.0.40
codegen_flags: <defaults>
</compile_context>

<pallas_src>
import functools
import math

import jax
import jax.numpy as jnp
import numpy as np
from jax.experimental import pallas as pl
from jax.experimental.pallas import tpu as pltpu


# ------------------------------ kernel --------------------------------------


def _layernorm(x, gamma, beta, eps):
  mu = jnp.mean(x, axis=-1, keepdims=True)
  var = jnp.mean((x - mu) ** 2, axis=-1, keepdims=True)
  return (x - mu) * jax.lax.rsqrt(var + eps) * gamma + beta


def fused_encoder_kernel(
    x_ref, mem_ref, smask_ref, cmask_ref,
    w_in_sa_ref, wo_sa_ref, w_in_ca_ref, wo_ca_ref, w1_ref, w2_ref,
    small_ref, fin_ref,
    out_ref,
    *, nhead, d_model, dff, eps):
  l = pl.program_id(0)
  n_layers = pl.num_programs(0)
  D = d_model
  hd = D // nhead
  scale = 1.0 / math.sqrt(hd)
  bf16 = jnp.bfloat16

  # Load the input activation into the resident output block on layer 0.
  @pl.when(l == 0)
  def _():
    out_ref[...] = x_ref[...]

  x = out_ref[...]        # (rows_q, D) f32, resident across the layer axis
  mem_bf = mem_ref[...]   # (rows_kv, D) bf16

  # Packed small per-layer parameters: one DMA, sliced here (lane-aligned,
  # all widths are multiples of 128).
  small = small_ref[0]                    # (12, maxw) f32
  b_in_sa = small[0:1, :3 * D]
  b_in_ca = small[1:2, :3 * D]
  bo_sa = small[2:3, :D]
  bo_ca = small[3:4, :D]
  b1 = small[4:5, :dff]
  b2 = small[5:6, :D]
  ln1_g = small[6:7, :D]
  ln1_b = small[7:8, :D]
  ln2_g = small[8:9, :D]
  ln2_b = small[9:10, :D]
  ln3_g = small[10:11, :D]
  ln3_b = small[11:12, :D]

  smask = smask_ref[...]                  # additive 0 / -1e30, precomputed
  cmask = cmask_ref[...]

  def attend(q, k, v, mask_add, wo):
    # q is already scaled by 1/sqrt(hd).
    # TODO(synk): hd=64 head slices are not 128-lane aligned; minor at nhead=4,
    # revisit head-major layout if nhead grows.
    ohs = []
    for h in range(nhead):                # static unroll; nhead is small
      sl = slice(h * hd, (h + 1) * hd)
      qh = q[:, sl].astype(bf16)
      kh = k[:, sl].astype(bf16)
      vh = v[:, sl].astype(bf16)
      s = jax.lax.dot_general(qh, kh, (((1,), (1,)), ((), ())),
                              preferred_element_type=jnp.float32)
      s = s + mask_add                    # block-diagonal within the batch
      s = s - jnp.max(s, axis=-1, keepdims=True)
      p = jnp.exp(s)
      p = p * pl.reciprocal(jnp.sum(p, axis=-1, keepdims=True), approx=True)
      ohs.append(jnp.dot(p.astype(bf16), vh,
                         preferred_element_type=jnp.float32))
    o = jnp.concatenate(ohs, axis=-1)     # (rows_q, D)
    # Single full-K output projection (head concat folded into one MXU pass).
    return jnp.dot(o.astype(bf16), wo, preferred_element_type=jnp.float32)

  # ---- self-attention: fused qkv projection (shared LHS) + add & norm ------
  x_bf = x.astype(bf16)
  qkv = jnp.dot(x_bf, w_in_sa_ref[0],
                preferred_element_type=jnp.float32) + b_in_sa
  q = qkv[:, :D] * scale
  k = qkv[:, D:2 * D]
  v = qkv[:, 2 * D:]
  sa = attend(q, k, v, smask, wo_sa_ref[0]) + bo_sa
  x1 = _layernorm(x + sa, ln1_g, ln1_b, eps)

  # ---- cross-attention (query = x1, key/value = memory) + add & norm -------
  x1_bf = x1.astype(bf16)
  w_ca = w_in_ca_ref[0]
  q = (jnp.dot(x1_bf, w_ca[:, :D], preferred_element_type=jnp.float32)
       + b_in_ca[:, :D]) * scale
  kv = jnp.dot(mem_bf, w_ca[:, D:],
               preferred_element_type=jnp.float32) + b_in_ca[:, D:]
  k = kv[:, :D]
  v = kv[:, D:]
  ca = attend(q, k, v, cmask, wo_ca_ref[0]) + bo_ca
  x2 = _layernorm(x1 + ca, ln2_g, ln2_b, eps)

  # ---- feed-forward (relu) + add & norm ------------------------------------
  h1 = jnp.maximum(
      jnp.dot(x2.astype(bf16), w1_ref[0],
              preferred_element_type=jnp.float32) + b1, 0.0)
  ff = jnp.dot(h1.astype(bf16), w2_ref[0],
               preferred_element_type=jnp.float32) + b2
  x3 = _layernorm(x2 + ff, ln3_g, ln3_b, eps)

  out_ref[...] = x3          # stays resident for the next layer

  # Fused final LayerNorm on the last layer; single HBM writeback at grid end.
  @pl.when(l == n_layers - 1)
  def _():
    fin = fin_ref[...]
    out_ref[...] = _layernorm(x3, fin[0:1, :], fin[1:2, :], eps)


# ------------------------------ wrapper -------------------------------------


def cm_transformer_encoder(src, memory, params, *, nhead, eps=1e-5):
  """Pallas equivalent of CMTransformerEncoder.forward (eval mode)."""
  B, S, D = src.shape
  T = memory.shape[1]
  L = params["w_in_sa"].shape[0]
  dff = params["w1"].shape[2]
  rows_q = B * S
  rows_kv = B * T
  assert rows_q % 8 == 0 and rows_kv % 8 == 0, "pad batch*seq to a multiple of 8"
  assert D % 128 == 0 and dff % 128 == 0

  x2d = src.reshape(rows_q, D).astype(jnp.float32)
  mem2d = memory.reshape(rows_kv, D).astype(jnp.bfloat16)   # MXU LHS only

  # Additive block-diagonal masks (precomputed once; DMA'd once).
  def addmask(rows, rpb, cols, cpb):
    rb = (jnp.arange(rows, dtype=jnp.int32) // rpb)[:, None]
    cb = (jnp.arange(cols, dtype=jnp.int32) // cpb)[None, :]
    return jnp.where(rb == cb, 0.0, -1e30).astype(jnp.float32)

  smask = addmask(rows_q, S, rows_q, S)
  cmask = addmask(rows_q, S, rows_kv, T)

  # Pack all tiny per-layer params into one (L, 12, maxw) f32 array.
  maxw = max(3 * D, dff, D)
  def pad_w(a):
    return jnp.pad(a, ((0, 0), (0, 0), (0, maxw - a.shape[-1])))
  small = jnp.concatenate(
      [pad_w(params[k]) for k in
       ("b_in_sa", "b_in_ca", "bo_sa", "bo_ca", "b1", "b2",
        "ln1_g", "ln1_b", "ln2_g", "ln2_b", "ln3_g", "ln3_b")],
      axis=1)                                             # (L, 12, maxw)
  fin = jnp.concatenate([params["norm_g"], params["norm_b"]], axis=0)  # (2, D)

  def wspec(shape):
    # Stacked per-layer parameter streamed along the layer grid axis
    # (double-buffered: layer l+1's DMA overlaps layer l's compute).
    nz = len(shape) - 1
    return pl.BlockSpec((1,) + tuple(shape[1:]),
                        lambda l, _nz=nz: (l,) + (0,) * _nz)

  def const2d(shape):
    # Constant block index => fetched once, stays resident across layers.
    return pl.BlockSpec(shape, lambda l: (0, 0))

  in_specs = [
      const2d((rows_q, D)),          # src activations (flat, f32)
      const2d((rows_kv, D)),         # memory (flat, bf16)
      const2d((rows_q, rows_q)),     # self-attn additive mask
      const2d((rows_q, rows_kv)),    # cross-attn additive mask
      wspec((L, D, 3 * D)),          # self-attn in_proj_weight.T  (bf16)
      wspec((L, D, D)),              # self-attn out_proj.weight.T (bf16)
      wspec((L, D, 3 * D)),          # cross-attn in_proj_weight.T (bf16)
      wspec((L, D, D)),              # cross-attn out_proj.weight.T(bf16)
      wspec((L, D, dff)),            # linear1.weight.T (bf16)
      wspec((L, dff, D)),            # linear2.weight.T (bf16)
      wspec((L, 12, maxw)),          # packed small per-layer params (f32)
      const2d((2, D)),               # final norm gamma/beta
  ]

  kern = functools.partial(fused_encoder_kernel, nhead=nhead, d_model=D,
                           dff=dff, eps=eps)
  out2d = pl.pallas_call(
      kern,
      out_shape=jax.ShapeDtypeStruct((rows_q, D), jnp.float32),
      grid=(L,),
      in_specs=in_specs,
      out_specs=const2d((rows_q, D)),
      compiler_params=pltpu.CompilerParams(
          dimension_semantics=("arbitrary",)),
  )(x2d, mem2d, smask, cmask,
    params["w_in_sa"], params["wo_sa"],
    params["w_in_ca"], params["wo_ca"],
    params["w1"], params["w2"],
    small, fin)
  return out2d.reshape(B, S, D)


# ------------------------ parameters & reference ----------------------------


def init_params(key, num_layers, d_model, dim_feedforward):
  """Synthetic parameters, stacked over layers.  Matmul weights are stored
  (in, out) (transpose of torch's Linear layout) in bfloat16; biases and
  LayerNorm params stay float32."""
  D, dff, L = d_model, dim_feedforward, num_layers
  bf16 = jnp.bfloat16

  def xavier(k, shape):
    limit = math.sqrt(6.0 / (shape[-2] + shape[-1]))
    return jax.random.uniform(k, shape, jnp.float32, -limit, limit)

  def bias(k, shape, scale=0.05):
    return scale * jax.random.normal(k, shape, jnp.float32)

  ks = jax.random.split(key, 16)
  return dict(
      w_in_sa=xavier(ks[0], (L, D, 3 * D)).astype(bf16),
      b_in_sa=bias(ks[1], (L, 1, 3 * D)),
      wo_sa=xavier(ks[2], (L, D, D)).astype(bf16),
      bo_sa=bias(ks[3], (L, 1, D)),
      w_in_ca=xavier(ks[4], (L, D, 3 * D)).astype(bf16),
      b_in_ca=bias(ks[5], (L, 1, 3 * D)),
      wo_ca=xavier(ks[6], (L, D, D)).astype(bf16),
      bo_ca=bias(ks[7], (L, 1, D)),
      ln1_g=jnp.ones((L, 1, D), jnp.float32),
      ln1_b=jnp.zeros((L, 1, D), jnp.float32),
      ln2_g=jnp.ones((L, 1, D), jnp.float32),
      ln2_b=jnp.zeros((L, 1, D), jnp.float32),
      w1=xavier(ks[8], (L, D, dff)).astype(bf16),
      b1=bias(ks[9], (L, 1, dff)),
      w2=xavier(ks[10], (L, dff, D)).astype(bf16),
      b2=bias(ks[11], (L, 1, D)),
      ln3_g=jnp.ones((L, 1, D), jnp.float32),
      ln3_b=jnp.zeros((L, 1, D), jnp.float32),
      norm_g=jnp.ones((1, D), jnp.float32),
      norm_b=jnp.zeros((1, D), jnp.float32),
  )


def _ref_mha(q_in, kv_in, w_in, b_in, wo, bo, nhead):
  B, S, D = q_in.shape
  T = kv_in.shape[1]
  hd = D // nhead
  q = q_in @ w_in[:, :D] + b_in[:, :D]
  k = kv_in @ w_in[:, D:2 * D] + b_in[:, D:2 * D]
  v = kv_in @ w_in[:, 2 * D:] + b_in[:, 2 * D:]
  q = q.reshape(B, S, nhead, hd)
  k = k.reshape(B, T, nhead, hd)
  v = v.reshape(B, T, nhead, hd)
  s = jnp.einsum('bshd,bthd->bhst', q, k) / math.sqrt(hd)
  p = jax.nn.softmax(s, axis=-1)
  o = jnp.einsum('bhst,bthd->bshd', p, v).reshape(B, S, D)
  return o @ wo + bo


def reference(src, memory, params, *, nhead, eps=1e-5):
  """Pure-JAX reference: f32 activations, weights upcast from bf16."""
  f = lambda a: a.astype(jnp.float32)
  x = src.astype(jnp.float32)
  mem = memory.astype(jnp.float32)
  L = params["w_in_sa"].shape[0]
  for l in range(L):
    sa = _ref_mha(x, x, f(params["w_in_sa"][l]), params["b_in_sa"][l],
                  f(params["wo_sa"][l]), params["bo_sa"][l], nhead)
    x = _layernorm(x + sa, params["ln1_g"][l], params["ln1_b"][l], eps)
    ca = _ref_mha(x, mem, f(params["w_in_ca"][l]), params["b_in_ca"][l],
                  f(params["wo_ca"][l]), params["bo_ca"][l], nhead)
    x = _layernorm(x + ca, params["ln2_g"][l], params["ln2_b"][l], eps)
    h = jnp.maximum(x @ f(params["w1"][l]) + params["b1"][l], 0.0)
    ff = h @ f(params["w2"][l]) + params["b2"][l]
    x = _layernorm(x + ff, params["ln3_g"][l], params["ln3_b"][l], eps)
  return _layernorm(x, params["norm_g"], params["norm_b"], eps)


# --------------------------------- main -------------------------------------


if __name__ == "__main__":
  # Shapes consistent with the module defaults: d_model=256, nhead=4, dff=256.
  B, S, T = 4, 8, 8
  D, NHEAD, DFF, NUM_LAYERS = 256, 4, 256, 2
  EPS = 1e-5

  key = jax.random.PRNGKey(0)
  k_src, k_mem, k_par = jax.random.split(key, 3)
  src = jax.random.normal(k_src, (B, S, D), jnp.float32)
  memory = jax.random.normal(k_mem, (B, T, D), jnp.float32)
  params = init_params(k_par, NUM_LAYERS, D, DFF)

  out = cm_transformer_encoder(src, memory, params, nhead=NHEAD, eps=EPS)
  out = jax.block_until_ready(out)

  ref = jax.block_until_ready(
      reference(src, memory, params, nhead=NHEAD, eps=EPS))
  # Kernel casts MXU operands (x, memory, p, per-head outputs) to bf16 and
  # uses an approx reciprocal in softmax; a structural bug (wrong slice, mask,
  # layer order) would produce O(1) errors, far above this tolerance.
  np.testing.assert_allclose(np.asarray(out), np.asarray(ref),
                             rtol=5e-2, atol=5e-2)

  assert out.shape == (B, S, D)
  print("KERNEL_OK")
</pallas_src>

<mosaic_0001>
module attributes {stable_mosaic.version = 11 : i64} {
  func.func @fused_encoder_kernel(%arg0: i32, %arg1: memref<32x256xf32, #tpu.memory_space<vmem>>, %arg2: memref<32x256xbf16, #tpu.memory_space<vmem>>, %arg3: memref<32x32xf32, #tpu.memory_space<vmem>>, %arg4: memref<32x32xf32, #tpu.memory_space<vmem>>, %arg5: memref<1x256x768xbf16, #tpu.memory_space<vmem>>, %arg6: memref<1x256x256xbf16, #tpu.memory_space<vmem>>, %arg7: memref<1x256x768xbf16, #tpu.memory_space<vmem>>, %arg8: memref<1x256x256xbf16, #tpu.memory_space<vmem>>, %arg9: memref<1x256x256xbf16, #tpu.memory_space<vmem>>, %arg10: memref<1x256x256xbf16, #tpu.memory_space<vmem>>, %arg11: memref<1x12x768xf32, #tpu.memory_space<vmem>>, %arg12: memref<2x256xf32, #tpu.memory_space<vmem>>, %arg13: memref<32x256xf32, #tpu.memory_space<vmem>>) attributes {dimension_semantics = [#tpu.dimension_semantics<arbitrary>], iteration_bounds = array<i64: 2>, scalar_prefetch = 0 : i64, scratch_operands = 0 : i64, tpu.core_type = #tpu.core_type<tc>, window_params = [{pipeline_mode = #tpu.pipeline_mode<synchronous>, transform_indices = @transform_0, window_bounds = array<i64: 32, 256>}, {pipeline_mode = #tpu.pipeline_mode<synchronous>, transform_indices = @transform_1, window_bounds = array<i64: 32, 256>}, {pipeline_mode = #tpu.pipeline_mode<synchronous>, transform_indices = @transform_2, window_bounds = array<i64: 32, 32>}, {pipeline_mode = #tpu.pipeline_mode<synchronous>, transform_indices = @transform_3, window_bounds = array<i64: 32, 32>}, {transform_indices = @transform_4, window_bounds = array<i64: 1, 256, 768>}, {transform_indices = @transform_5, window_bounds = array<i64: 1, 256, 256>}, {transform_indices = @transform_6, window_bounds = array<i64: 1, 256, 768>}, {transform_indices = @transform_7, window_bounds = array<i64: 1, 256, 256>}, {transform_indices = @transform_8, window_bounds = array<i64: 1, 256, 256>}, {transform_indices = @transform_9, window_bounds = array<i64: 1, 256, 256>}, {transform_indices = @transform_10, window_bounds = array<i64: 1, 12, 768>}, {pipeline_mode = #tpu.pipeline_mode<synchronous>, transform_indices = @transform_11, window_bounds = array<i64: 2, 256>}, {pipeline_mode = #tpu.pipeline_mode<synchronous>, transform_indices = @transform_12, window_bounds = array<i64: 32, 256>}]} {
    %c0_i32 = arith.constant 0 : i32
    %0 = arith.cmpi eq, %arg0, %c0_i32 : i32
    %1 = arith.extui %0 : i1 to i32
    %c0_i32_0 = arith.constant 0 : i32
    %2 = arith.cmpi ne, %1, %c0_i32_0 : i32
    scf.if %2 {
      %c0_88 = arith.constant 0 : index
      %c0_89 = arith.constant 0 : index
      %310 = vector.load %arg1[%c0_88, %c0_89] : memref<32x256xf32, #tpu.memory_space<vmem>>, vector<32x256xf32>
      %c0_90 = arith.constant 0 : index
      %c0_91 = arith.constant 0 : index
      %311 = vector.load %arg13[%c0_90, %c0_91] : memref<32x256xf32, #tpu.memory_space<vmem>>, vector<32x256xf32>
      tpu.vector_store %arg13[%c0_90, %c0_91], %310 {strides = array<i32>} : memref<32x256xf32, #tpu.memory_space<vmem>>, vector<32x256xf32>,
    } else {
    }
    %c0 = arith.constant 0 : index
    %c0_1 = arith.constant 0 : index
    %3 = vector.load %arg13[%c0, %c0_1] : memref<32x256xf32, #tpu.memory_space<vmem>>, vector<32x256xf32>
    %c0_2 = arith.constant 0 : index
    %c0_3 = arith.constant 0 : index
    %4 = vector.load %arg2[%c0_2, %c0_3] : memref<32x256xbf16, #tpu.memory_space<vmem>>, vector<32x256xbf16>
    %c0_4 = arith.constant 0 : index
    %c0_5 = arith.constant 0 : index
    %c0_6 = arith.constant 0 : index
    %5 = vector.load %arg11[%c0_4, %c0_5, %c0_6] : memref<1x12x768xf32, #tpu.memory_space<vmem>>, vector<1x12x768xf32>
    %6 = vector.shape_cast %5 : vector<1x12x768xf32> to vector<12x768xf32>
    %7 = vector.extract_strided_slice %6 {offsets = [0, 0], sizes = [1, 768], strides = [1, 1]} : vector<12x768xf32> to vector<1x768xf32>
    %8 = vector.extract_strided_slice %6 {offsets = [1, 0], sizes = [1, 768], strides = [1, 1]} : vector<12x768xf32> to vector<1x768xf32>
    %9 = vector.extract_strided_slice %6 {offsets = [2, 0], sizes = [1, 256], strides = [1, 1]} : vector<12x768xf32> to vector<1x256xf32>
    %10 = vector.extract_strided_slice %6 {offsets = [3, 0], sizes = [1, 256], strides = [1, 1]} : vector<12x768xf32> to vector<1x256xf32>
    %11 = vector.extract_strided_slice %6 {offsets = [4, 0], sizes = [1, 256], strides = [1, 1]} : vector<12x768xf32> to vector<1x256xf32>
    %12 = vector.extract_strided_slice %6 {offsets = [5, 0], sizes = [1, 256], strides = [1, 1]} : vector<12x768xf32> to vector<1x256xf32>
    %13 = vector.extract_strided_slice %6 {offsets = [6, 0], sizes = [1, 256], strides = [1, 1]} : vector<12x768xf32> to vector<1x256xf32>
    %14 = vector.extract_strided_slice %6 {offsets = [7, 0], sizes = [1, 256], strides = [1, 1]} : vector<12x768xf32> to vector<1x256xf32>
    %15 = vector.extract_strided_slice %6 {offsets = [8, 0], sizes = [1, 256], strides = [1, 1]} : vector<12x768xf32> to vector<1x256xf32>
    %16 = vector.extract_strided_slice %6 {offsets = [9, 0], sizes = [1, 256], strides = [1, 1]} : vector<12x768xf32> to vector<1x256xf32>
    %17 = vector.extract_strided_slice %6 {offsets = [10, 0], sizes = [1, 256], strides = [1, 1]} : vector<12x768xf32> to vector<1x256xf32>
    %18 = vector.extract_strided_slice %6 {offsets = [11, 0], sizes = [1, 256], strides = [1, 1]} : vector<12x768xf32> to vector<1x256xf32>
    %c0_7 = arith.constant 0 : index
    %c0_8 = arith.constant 0 : index
    %19 = vector.load %arg3[%c0_7, %c0_8] : memref<32x32xf32, #tpu.memory_space<vmem>>, vector<32x32xf32>
    %c0_9 = arith.constant 0 : index
    %c0_10 = arith.constant 0 : index
    %20 = vector.load %arg4[%c0_9, %c0_10] : memref<32x32xf32, #tpu.memory_space<vmem>>, vector<32x32xf32>
    %21 = arith.truncf %3 : vector<32x256xf32> to vector<32x256xbf16>
    %c0_11 = arith.constant 0 : index
    %c0_12 = arith.constant 0 : index
    %c0_13 = arith.constant 0 : index
    %22 = vector.load %arg5[%c0_11, %c0_12, %c0_13] : memref<1x256x768xbf16, #tpu.memory_space<vmem>>, vector<1x256x768xbf16>
    %23 = vector.shape_cast %22 : vector<1x256x768xbf16> to vector<256x768xbf16>
    %cst = arith.constant dense<0.000000e+00> : vector<32x768xf32>
    %24 = tpu.matmul %21, %23, %cst {dimension_numbers = #tpu.dot_dimension_numbers<[1], [0], [0], [1], [0, 0, 1, 1], [], []>} : vector<32x256xbf16>, vector<256x768xbf16>, vector<32x768xf32> -> vector<32x768xf32>
    %25 = vector.broadcast %7 : vector<1x768xf32> to vector<32x768xf32>
    %26 = arith.addf %24, %25 : vector<32x768xf32>
    %27 = vector.extract_strided_slice %26 {offsets = [0, 0], sizes = [32, 256], strides = [1, 1]} : vector<32x768xf32> to vector<32x256xf32>
    %cst_14 = arith.constant 1.250000e-01 : f32
    %28 = vector.broadcast %cst_14 : f32 to vector<32x256xf32>
    %29 = arith.mulf %27, %28 : vector<32x256xf32>
    %30 = vector.extract_strided_slice %26 {offsets = [0, 256], sizes = [32, 256], strides = [1, 1]} : vector<32x768xf32> to vector<32x256xf32>
    %31 = vector.extract_strided_slice %26 {offsets = [0, 512], sizes = [32, 256], strides = [1, 1]} : vector<32x768xf32> to vector<32x256xf32>
    %c0_15 = arith.constant 0 : index
    %c0_16 = arith.constant 0 : index
    %c0_17 = arith.constant 0 : index
    %32 = vector.load %arg6[%c0_15, %c0_16, %c0_17] : memref<1x256x256xbf16, #tpu.memory_space<vmem>>, vector<1x256x256xbf16>
    %33 = vector.shape_cast %32 : vector<1x256x256xbf16> to vector<256x256xbf16>
    %34 = vector.extract_strided_slice %29 {offsets = [0, 0], sizes = [32, 64], strides = [1, 1]} : vector<32x256xf32> to vector<32x64xf32>
    %35 = arith.truncf %34 : vector<32x64xf32> to vector<32x64xbf16>
    %36 = vector.extract_strided_slice %30 {offsets = [0, 0], sizes = [32, 64], strides = [1, 1]} : vector<32x256xf32> to vector<32x64xf32>
    %37 = arith.truncf %36 : vector<32x64xf32> to vector<32x64xbf16>
    %38 = vector.extract_strided_slice %31 {offsets = [0, 0], sizes = [32, 64], strides = [1, 1]} : vector<32x256xf32> to vector<32x64xf32>
    %39 = arith.truncf %38 : vector<32x64xf32> to vector<32x64xbf16>
    %cst_18 = arith.constant dense<0.000000e+00> : vector<32x32xf32>
    %40 = tpu.matmul %35, %37, %cst_18 {dimension_numbers = #tpu.dot_dimension_numbers<[1], [1], [0], [0], [0, 0, 1, 0], [], []>} : vector<32x64xbf16>, vector<32x64xbf16>, vector<32x32xf32> -> vector<32x32xf32>
    %41 = arith.addf %40, %19 : vector<32x32xf32>
    %cst_19 = arith.constant dense<0xFF800000> : vector<32xf32>
    %42 = vector.multi_reduction <maximumf>, %41, %cst_19 [1] : vector<32x32xf32> to vector<32xf32>
    %43 = vector.shape_cast %42 : vector<32xf32> to vector<32x1xf32>
    %44 = vector.broadcast %43 : vector<32x1xf32> to vector<32x32xf32>
    %45 = arith.subf %41, %44 : vector<32x32xf32>
    %46 = math.exp %45 : vector<32x32xf32>
    %cst_20 = arith.constant dense<0.000000e+00> : vector<32xf32>
    %47 = vector.multi_reduction <add>, %46, %cst_20 [1] : vector<32x32xf32> to vector<32xf32>
    %48 = vector.shape_cast %47 : vector<32xf32> to vector<32x1xf32>
    %49 = tpu.reciprocal %48 {approx = true} : vector<32x1xf32> -> vector<32x1xf32>
    %50 = vector.broadcast %49 : vector<32x1xf32> to vector<32x32xf32>
    %51 = arith.mulf %46, %50 : vector<32x32xf32>
    %52 = arith.truncf %51 : vector<32x32xf32> to vector<32x32xbf16>
    %cst_21 = arith.constant dense<0.000000e+00> : vector<32x64xf32>
    %53 = tpu.matmul %52, %39, %cst_21 {dimension_numbers = #tpu.dot_dimension_numbers<[1], [0], [0], [1], [0, 0, 1, 1], [], []>} : vector<32x32xbf16>, vector<32x64xbf16>, vector<32x64xf32> -> vector<32x64xf32>
    %54 = vector.extract_strided_slice %29 {offsets = [0, 64], sizes = [32, 64], strides = [1, 1]} : vector<32x256xf32> to vector<32x64xf32>
    %55 = arith.truncf %54 : vector<32x64xf32> to vector<32x64xbf16>
    %56 = vector.extract_strided_slice %30 {offsets = [0, 64], sizes = [32, 64], strides = [1, 1]} : vector<32x256xf32> to vector<32x64xf32>
    %57 = arith.truncf %56 : vector<32x64xf32> to vector<32x64xbf16>
    %58 = vector.extract_strided_slice %31 {offsets = [0, 64], sizes = [32, 64], strides = [1, 1]} : vector<32x256xf32> to vector<32x64xf32>
    %59 = arith.truncf %58 : vector<32x64xf32> to vector<32x64xbf16>
    %cst_22 = arith.constant dense<0.000000e+00> : vector<32x32xf32>
    %60 = tpu.matmul %55, %57, %cst_22 {dimension_numbers = #tpu.dot_dimension_numbers<[1], [1], [0], [0], [0, 0, 1, 0], [], []>} : vector<32x64xbf16>, vector<32x64xbf16>, vector<32x32xf32> -> vector<32x32xf32>
    %61 = arith.addf %60, %19 : vector<32x32xf32>
    %cst_23 = arith.constant dense<0xFF800000> : vector<32xf32>
    %62 = vector.multi_reduction <maximumf>, %61, %cst_23 [1] : vector<32x32xf32> to vector<32xf32>
    %63 = vector.shape_cast %62 : vector<32xf32> to vector<32x1xf32>
    %64 = vector.broadcast %63 : vector<32x1xf32> to vector<32x32xf32>
    %65 = arith.subf %61, %64 : vector<32x32xf32>
    %66 = math.exp %65 : vector<32x32xf32>
    %cst_24 = arith.constant dense<0.000000e+00> : vector<32xf32>
    %67 = vector.multi_reduction <add>, %66, %cst_24 [1] : vector<32x32xf32> to vector<32xf32>
    %68 = vector.shape_cast %67 : vector<32xf32> to vector<32x1xf32>
    %69 = tpu.reciprocal %68 {approx = true} : vector<32x1xf32> -> vector<32x1xf32>
    %70 = vector.broadcast %69 : vector<32x1xf32> to vector<32x32xf32>
    %71 = arith.mulf %66, %70 : vector<32x32xf32>
    %72 = arith.truncf %71 : vector<32x32xf32> to vector<32x32xbf16>
    %cst_25 = arith.constant dense<0.000000e+00> : vector<32x64xf32>
    %73 = tpu.matmul %72, %59, %cst_25 {dimension_numbers = #tpu.dot_dimension_numbers<[1], [0], [0], [1], [0, 0, 1, 1], [], []>} : vector<32x32xbf16>, vector<32x64xbf16>, vector<32x64xf32> -> vector<32x64xf32>
    %74 = vector.extract_strided_slice %29 {offsets = [0, 128], sizes = [32, 64], strides = [1, 1]} : vector<32x256xf32> to vector<32x64xf32>
    %75 = arith.truncf %74 : vector<32x64xf32> to vector<32x64xbf16>
    %76 = vector.extract_strided_slice %30 {offsets = [0, 128], sizes = [32, 64], strides = [1, 1]} : vector<32x256xf32> to vector<32x64xf32>
    %77 = arith.truncf %76 : vector<32x64xf32> to vector<32x64xbf16>
    %78 = vector.extract_strided_slice %31 {offsets = [0, 128], sizes = [32, 64], strides = [1, 1]} : vector<32x256xf32> to vector<32x64xf32>
    %79 = arith.truncf %78 : vector<32x64xf32> to vector<32x64xbf16>
    %cst_26 = arith.constant dense<0.000000e+00> : vector<32x32xf32>
    %80 = tpu.matmul %75, %77, %cst_26 {dimension_numbers = #tpu.dot_dimension_numbers<[1], [1], [0], [0], [0, 0, 1, 0], [], []>} : vector<32x64xbf16>, vector<32x64xbf16>, vector<32x32xf32> -> vector<32x32xf32>
    %81 = arith.addf %80, %19 : vector<32x32xf32>
    %cst_27 = arith.constant dense<0xFF800000> : vector<32xf32>
    %82 = vector.multi_reduction <maximumf>, %81, %cst_27 [1] : vector<32x32xf32> to vector<32xf32>
    %83 = vector.shape_cast %82 : vector<32xf32> to vector<32x1xf32>
    %84 = vector.broadcast %83 : vector<32x1xf32> to vector<32x32xf32>
    %85 = arith.subf %81, %84 : vector<32x32xf32>
    %86 = math.exp %85 : vector<32x32xf32>
    %cst_28 = arith.constant dense<0.000000e+00> : vector<32xf32>
    %87 = vector.multi_reduction <add>, %86, %cst_28 [1] : vector<32x32xf32> to vector<32xf32>
    %88 = vector.shape_cast %87 : vector<32xf32> to vector<32x1xf32>
    %89 = tpu.reciprocal %88 {approx = true} : vector<32x1xf32> -> vector<32x1xf32>
    %90 = vector.broadcast %89 : vector<32x1xf32> to vector<32x32xf32>
    %91 = arith.mulf %86, %90 : vector<32x32xf32>
    %92 = arith.truncf %91 : vector<32x32xf32> to vector<32x32xbf16>
    %cst_29 = arith.constant dense<0.000000e+00> : vector<32x64xf32>
    %93 = tpu.matmul %92, %79, %cst_29 {dimension_numbers = #tpu.dot_dimension_numbers<[1], [0], [0], [1], [0, 0, 1, 1], [], []>} : vector<32x32xbf16>, vector<32x64xbf16>, vector<32x64xf32> -> vector<32x64xf32>
    %94 = vector.extract_strided_slice %29 {offsets = [0, 192], sizes = [32, 64], strides = [1, 1]} : vector<32x256xf32> to vector<32x64xf32>
    %95 = arith.truncf %94 : vector<32x64xf32> to vector<32x64xbf16>
    %96 = vector.extract_strided_slice %30 {offsets = [0, 192], sizes = [32, 64], strides = [1, 1]} : vector<32x256xf32> to vector<32x64xf32>
    %97 = arith.truncf %96 : vector<32x64xf32> to vector<32x64xbf16>
    %98 = vector.extract_strided_slice %31 {offsets = [0, 192], sizes = [32, 64], strides = [1, 1]} : vector<32x256xf32> to vector<32x64xf32>
    %99 = arith.truncf %98 : vector<32x64xf32> to vector<32x64xbf16>
    %cst_30 = arith.constant dense<0.000000e+00> : vector<32x32xf32>
    %100 = tpu.matmul %95, %97, %cst_30 {dimension_numbers = #tpu.dot_dimension_numbers<[1], [1], [0], [0], [0, 0, 1, 0], [], []>} : vector<32x64xbf16>, vector<32x64xbf16>, vector<32x32xf32> -> vector<32x32xf32>
    %101 = arith.addf %100, %19 : vector<32x32xf32>
    %cst_31 = arith.constant dense<0xFF800000> : vector<32xf32>
    %102 = vector.multi_reduction <maximumf>, %101, %cst_31 [1] : vector<32x32xf32> to vector<32xf32>
    %103 = vector.shape_cast %102 : vector<32xf32> to vector<32x1xf32>
    %104 = vector.broadcast %103 : vector<32x1xf32> to vector<32x32xf32>
    %105 = arith.subf %101, %104 : vector<32x32xf32>
    %106 = math.exp %105 : vector<32x32xf32>
    %cst_32 = arith.constant dense<0.000000e+00> : vector<32xf32>
    %107 = vector.multi_reduction <add>, %106, %cst_32 [1] : vector<32x32xf32> to vector<32xf32>
    %108 = vector.shape_cast %107 : vector<32xf32> to vector<32x1xf32>
    %109 = tpu.reciprocal %108 {approx = true} : vector<32x1xf32> -> vector<32x1xf32>
    %110 = vector.broadcast %109 : vector<32x1xf32> to vector<32x32xf32>
    %111 = arith.mulf %106, %110 : vector<32x32xf32>
    %112 = arith.truncf %111 : vector<32x32xf32> to vector<32x32xbf16>
    %cst_33 = arith.constant dense<0.000000e+00> : vector<32x64xf32>
    %113 = tpu.matmul %112, %99, %cst_33 {dimension_numbers = #tpu.dot_dimension_numbers<[1], [0], [0], [1], [0, 0, 1, 1], [], []>} : vector<32x32xbf16>, vector<32x64xbf16>, vector<32x64xf32> -> vector<32x64xf32>
    %114 = tpu.concatenate %53, %73, %93, %113 in 1 : vector<32x64xf32>, vector<32x64xf32>, vector<32x64xf32>, vector<32x64xf32> -> vector<32x256xf32>
    %115 = arith.truncf %114 : vector<32x256xf32> to vector<32x256xbf16>
    %cst_34 = arith.constant dense<0.000000e+00> : vector<32x256xf32>
    %116 = tpu.matmul %115, %33, %cst_34 {dimension_numbers = #tpu.dot_dimension_numbers<[1], [0], [0], [1], [0, 0, 1, 1], [], []>} : vector<32x256xbf16>, vector<256x256xbf16>, vector<32x256xf32> -> vector<32x256xf32>
    %117 = vector.broadcast %9 : vector<1x256xf32> to vector<32x256xf32>
    %118 = arith.addf %116, %117 : vector<32x256xf32>
    %119 = arith.addf %3, %118 : vector<32x256xf32>
    %cst_35 = arith.constant dense<0.000000e+00> : vector<32xf32>
    %120 = vector.multi_reduction <add>, %119, %cst_35 [1] : vector<32x256xf32> to vector<32xf32>
    %121 = vector.shape_cast %120 : vector<32xf32> to vector<32x1xf32>
    %cst_36 = arith.constant 2.560000e+02 : f32
    %122 = vector.broadcast %cst_36 : f32 to vector<32x1xf32>
    %123 = arith.divf %121, %122 : vector<32x1xf32>
    %124 = vector.broadcast %123 : vector<32x1xf32> to vector<32x256xf32>
    %125 = arith.subf %119, %124 : vector<32x256xf32>
    %126 = arith.mulf %125, %125 : vector<32x256xf32>
    %cst_37 = arith.constant dense<0.000000e+00> : vector<32xf32>
    %127 = vector.multi_reduction <add>, %126, %cst_37 [1] : vector<32x256xf32> to vector<32xf32>
    %128 = vector.shape_cast %127 : vector<32xf32> to vector<32x1xf32>
    %cst_38 = arith.constant 2.560000e+02 : f32
    %129 = vector.broadcast %cst_38 : f32 to vector<32x1xf32>
    %130 = arith.divf %128, %129 : vector<32x1xf32>
    %131 = vector.broadcast %123 : vector<32x1xf32> to vector<32x256xf32>
    %132 = arith.subf %119, %131 : vector<32x256xf32>
    %cst_39 = arith.constant 9.99999974E-6 : f32
    %133 = vector.broadcast %cst_39 : f32 to vector<32x1xf32>
    %134 = arith.addf %130, %133 : vector<32x1xf32>
    %135 = math.rsqrt %134 : vector<32x1xf32>
    %136 = vector.broadcast %135 : vector<32x1xf32> to vector<32x256xf32>
    %137 = arith.mulf %132, %136 : vector<32x256xf32>
    %138 = vector.broadcast %13 : vector<1x256xf32> to vector<32x256xf32>
    %139 = arith.mulf %137, %138 : vector<32x256xf32>
    %140 = vector.broadcast %14 : vector<1x256xf32> to vector<32x256xf32>
    %141 = arith.addf %139, %140 : vector<32x256xf32>
    %142 = arith.truncf %141 : vector<32x256xf32> to vector<32x256xbf16>
    %c0_40 = arith.constant 0 : index
    %c0_41 = arith.constant 0 : index
    %c0_42 = arith.constant 0 : index
    %143 = vector.load %arg7[%c0_40, %c0_41, %c0_42] : memref<1x256x768xbf16, #tpu.memory_space<vmem>>, vector<1x256x768xbf16>
    %144 = vector.shape_cast %143 : vector<1x256x768xbf16> to vector<256x768xbf16>
    %145 = vector.extract_strided_slice %144 {offsets = [0, 0], sizes = [256, 256], strides = [1, 1]} : vector<256x768xbf16> to vector<256x256xbf16>
    %cst_43 = arith.constant dense<0.000000e+00> : vector<32x256xf32>
    %146 = tpu.matmul %142, %145, %cst_43 {dimension_numbers = #tpu.dot_dimension_numbers<[1], [0], [0], [1], [0, 0, 1, 1], [], []>} : vector<32x256xbf16>, vector<256x256xbf16>, vector<32x256xf32> -> vector<32x256xf32>
    %147 = vector.extract_strided_slice %8 {offsets = [0, 0], sizes = [1, 256], strides = [1, 1]} : vector<1x768xf32> to vector<1x256xf32>
    %148 = vector.broadcast %147 : vector<1x256xf32> to vector<32x256xf32>
    %149 = arith.addf %146, %148 : vector<32x256xf32>
    %cst_44 = arith.constant 1.250000e-01 : f32
    %150 = vector.broadcast %cst_44 : f32 to vector<32x256xf32>
    %151 = arith.mulf %149, %150 : vector<32x256xf32>
    %152 = vector.extract_strided_slice %144 {offsets = [0, 256], sizes = [256, 512], strides = [1, 1]} : vector<256x768xbf16> to vector<256x512xbf16>
    %cst_45 = arith.constant dense<0.000000e+00> : vector<32x512xf32>
    %153 = tpu.matmul %4, %152, %cst_45 {dimension_numbers = #tpu.dot_dimension_numbers<[1], [0], [0], [1], [0, 0, 1, 1], [], []>} : vector<32x256xbf16>, vector<256x512xbf16>, vector<32x512xf32> -> vector<32x512xf32>
    %154 = vector.extract_strided_slice %8 {offsets = [0, 256], sizes = [1, 512], strides = [1, 1]} : vector<1x768xf32> to vector<1x512xf32>
    %155 = vector.broadcast %154 : vector<1x512xf32> to vector<32x512xf32>
    %156 = arith.addf %153, %155 : vector<32x512xf32>
    %157 = vector.extract_strided_slice %156 {offsets = [0, 0], sizes = [32, 256], strides = [1, 1]} : vector<32x512xf32> to vector<32x256xf32>
    %158 = vector.extract_strided_slice %156 {offsets = [0, 256], sizes = [32, 256], strides = [1, 1]} : vector<32x512xf32> to vector<32x256xf32>
    %c0_46 = arith.constant 0 : index
    %c0_47 = arith.constant 0 : index
    %c0_48 = arith.constant 0 : index
    %159 = vector.load %arg8[%c0_46, %c0_47, %c0_48] : memref<1x256x256xbf16, #tpu.memory_space<vmem>>, vector<1x256x256xbf16>
    %160 = vector.shape_cast %159 : vector<1x256x256xbf16> to vector<256x256xbf16>
    %161 = vector.extract_strided_slice %151 {offsets = [0, 0], sizes = [32, 64], strides = [1, 1]} : vector<32x256xf32> to vector<32x64xf32>
    %162 = arith.truncf %161 : vector<32x64xf32> to vector<32x64xbf16>
    %163 = vector.extract_strided_slice %157 {offsets = [0, 0], sizes = [32, 64], strides = [1, 1]} : vector<32x256xf32> to vector<32x64xf32>
    %164 = arith.truncf %163 : vector<32x64xf32> to vector<32x64xbf16>
    %165 = vector.extract_strided_slice %158 {offsets = [0, 0], sizes = [32, 64], strides = [1, 1]} : vector<32x256xf32> to vector<32x64xf32>
    %166 = arith.truncf %165 : vector<32x64xf32> to vector<32x64xbf16>
    %cst_49 = arith.constant dense<0.000000e+00> : vector<32x32xf32>
    %167 = tpu.matmul %162, %164, %cst_49 {dimension_numbers = #tpu.dot_dimension_numbers<[1], [1], [0], [0], [0, 0, 1, 0], [], []>} : vector<32x64xbf16>, vector<32x64xbf16>, vector<32x32xf32> -> vector<32x32xf32>
    %168 = arith.addf %167, %20 : vector<32x32xf32>
    %cst_50 = arith.constant dense<0xFF800000> : vector<32xf32>
    %169 = vector.multi_reduction <maximumf>, %168, %cst_50 [1] : vector<32x32xf32> to vector<32xf32>
    %170 = vector.shape_cast %169 : vector<32xf32> to vector<32x1xf32>
    %171 = vector.broadcast %170 : vector<32x1xf32> to vector<32x32xf32>
    %172 = arith.subf %168, %171 : vector<32x32xf32>
    %173 = math.exp %172 : vector<32x32xf32>
    %cst_51 = arith.constant dense<0.000000e+00> : vector<32xf32>
    %174 = vector.multi_reduction <add>, %173, %cst_51 [1] : vector<32x32xf32> to vector<32xf32>
    %175 = vector.shape_cast %174 : vector<32xf32> to vector<32x1xf32>
    %176 = tpu.reciprocal %175 {approx = true} : vector<32x1xf32> -> vector<32x1xf32>
    %177 = vector.broadcast %176 : vector<32x1xf32> to vector<32x32xf32>
    %178 = arith.mulf %173, %177 : vector<32x32xf32>
    %179 = arith.truncf %178 : vector<32x32xf32> to vector<32x32xbf16>
    %cst_52 = arith.constant dense<0.000000e+00> : vector<32x64xf32>
    %180 = tpu.matmul %179, %166, %cst_52 {dimension_numbers = #tpu.dot_dimension_numbers<[1], [0], [0], [1], [0, 0, 1, 1], [], []>} : vector<32x32xbf16>, vector<32x64xbf16>, vector<32x64xf32> -> vector<32x64xf32>
    %181 = vector.extract_strided_slice %151 {offsets = [0, 64], sizes = [32, 64], strides = [1, 1]} : vector<32x256xf32> to vector<32x64xf32>
    %182 = arith.truncf %181 : vector<32x64xf32> to vector<32x64xbf16>
    %183 = vector.extract_strided_slice %157 {offsets = [0, 64], sizes = [32, 64], strides = [1, 1]} : vector<32x256xf32> to vector<32x64xf32>
    %184 = arith.truncf %183 : vector<32x64xf32> to vector<32x64xbf16>
    %185 = vector.extract_strided_slice %158 {offsets = [0, 64], sizes = [32, 64], strides = [1, 1]} : vector<32x256xf32> to vector<32x64xf32>
    %186 = arith.truncf %185 : vector<32x64xf32> to vector<32x64xbf16>
    %cst_53 = arith.constant dense<0.000000e+00> : vector<32x32xf32>
    %187 = tpu.matmul %182, %184, %cst_53 {dimension_numbers = #tpu.dot_dimension_numbers<[1], [1], [0], [0], [0, 0, 1, 0], [], []>} : vector<32x64xbf16>, vector<32x64xbf16>, vector<32x32xf32> -> vector<32x32xf32>
    %188 = arith.addf %187, %20 : vector<32x32xf32>
    %cst_54 = arith.constant dense<0xFF800000> : vector<32xf32>
    %189 = vector.multi_reduction <maximumf>, %188, %cst_54 [1] : vector<32x32xf32> to vector<32xf32>
    %190 = vector.shape_cast %189 : vector<32xf32> to vector<32x1xf32>
    %191 = vector.broadcast %190 : vector<32x1xf32> to vector<32x32xf32>
    %192 = arith.subf %188, %191 : vector<32x32xf32>
    %193 = math.exp %192 : vector<32x32xf32>
    %cst_55 = arith.constant dense<0.000000e+00> : vector<32xf32>
    %194 = vector.multi_reduction <add>, %193, %cst_55 [1] : vector<32x32xf32> to vector<32xf32>
    %195 = vector.shape_cast %194 : vector<32xf32> to vector<32x1xf32>
    %196 = tpu.reciprocal %195 {approx = true} : vector<32x1xf32> -> vector<32x1xf32>
    %197 = vector.broadcast %196 : vector<32x1xf32> to vector<32x32xf32>
    %198 = arith.mulf %193, %197 : vector<32x32xf32>
    %199 = arith.truncf %198 : vector<32x32xf32> to vector<32x32xbf16>
    %cst_56 = arith.constant dense<0.000000e+00> : vector<32x64xf32>
    %200 = tpu.matmul %199, %186, %cst_56 {dimension_numbers = #tpu.dot_dimension_numbers<[1], [0], [0], [1], [0, 0, 1, 1], [], []>} : vector<32x32xbf16>, vector<32x64xbf16>, vector<32x64xf32> -> vector<32x64xf32>
    %201 = vector.extract_strided_slice %151 {offsets = [0, 128], sizes = [32, 64], strides = [1, 1]} : vector<32x256xf32> to vector<32x64xf32>
    %202 = arith.truncf %201 : vector<32x64xf32> to vector<32x64xbf16>
    %203 = vector.extract_strided_slice %157 {offsets = [0, 128], sizes = [32, 64], strides = [1, 1]} : vector<32x256xf32> to vector<32x64xf32>
    %204 = arith.truncf %203 : vector<32x64xf32> to vector<32x64xbf16>
    %205 = vector.extract_strided_slice %158 {offsets = [0, 128], sizes = [32, 64], strides = [1, 1]} : vector<32x256xf32> to vector<32x64xf32>
    %206 = arith.truncf %205 : vector<32x64xf32> to vector<32x64xbf16>
    %cst_57 = arith.constant dense<0.000000e+00> : vector<32x32xf32>
    %207 = tpu.matmul %202, %204, %cst_57 {dimension_numbers = #tpu.dot_dimension_numbers<[1], [1], [0], [0], [0, 0, 1, 0], [], []>} : vector<32x64xbf16>, vector<32x64xbf16>, vector<32x32xf32> -> vector<32x32xf32>
    %208 = arith.addf %207, %20 : vector<32x32xf32>
    %cst_58 = arith.constant dense<0xFF800000> : vector<32xf32>
    %209 = vector.multi_reduction <maximumf>, %208, %cst_58 [1] : vector<32x32xf32> to vector<32xf32>
    %210 = vector.shape_cast %209 : vector<32xf32> to vector<32x1xf32>
    %211 = vector.broadcast %210 : vector<32x1xf32> to vector<32x32xf32>
    %212 = arith.subf %208, %211 : vector<32x32xf32>
    %213 = math.exp %212 : vector<32x32xf32>
    %cst_59 = arith.constant dense<0.000000e+00> : vector<32xf32>
    %214 = vector.multi_reduction <add>, %213, %cst_59 [1] : vector<32x32xf32> to vector<32xf32>
    %215 = vector.shape_cast %214 : vector<32xf32> to vector<32x1xf32>
    %216 = tpu.reciprocal %215 {approx = true} : vector<32x1xf32> -> vector<32x1xf32>
    %217 = vector.broadcast %216 : vector<32x1xf32> to vector<32x32xf32>
    %218 = arith.mulf %213, %217 : vector<32x32xf32>
    %219 = arith.truncf %218 : vector<32x32xf32> to vector<32x32xbf16>
    %cst_60 = arith.constant dense<0.000000e+00> : vector<32x64xf32>
    %220 = tpu.matmul %219, %206, %cst_60 {dimension_numbers = #tpu.dot_dimension_numbers<[1], [0], [0], [1], [0, 0, 1, 1], [], []>} : vector<32x32xbf16>, vector<32x64xbf16>, vector<32x64xf32> -> vector<32x64xf32>
    %221 = vector.extract_strided_slice %151 {offsets = [0, 192], sizes = [32, 64], strides = [1, 1]} : vector<32x256xf32> to vector<32x64xf32>
    %222 = arith.truncf %221 : vector<32x64xf32> to vector<32x64xbf16>
    %223 = vector.extract_strided_slice %157 {offsets = [0, 192], sizes = [32, 64], strides = [1, 1]} : vector<32x256xf32> to vector<32x64xf32>
    %224 = arith.truncf %223 : vector<32x64xf32> to vector<32x64xbf16>
    %225 = vector.extract_strided_slice %158 {offsets = [0, 192], sizes = [32, 64], strides = [1, 1]} : vector<32x256xf32> to vector<32x64xf32>
    %226 = arith.truncf %225 : vector<32x64xf32> to vector<32x64xbf16>
    %cst_61 = arith.constant dense<0.000000e+00> : vector<32x32xf32>
    %227 = tpu.matmul %222, %224, %cst_61 {dimension_numbers = #tpu.dot_dimension_numbers<[1], [1], [0], [0], [0, 0, 1, 0], [], []>} : vector<32x64xbf16>, vector<32x64xbf16>, vector<32x32xf32> -> vector<32x32xf32>
    %228 = arith.addf %227, %20 : vector<32x32xf32>
    %cst_62 = arith.constant dense<0xFF800000> : vector<32xf32>
    %229 = vector.multi_reduction <maximumf>, %228, %cst_62 [1] : vector<32x32xf32> to vector<32xf32>
    %230 = vector.shape_cast %229 : vector<32xf32> to vector<32x1xf32>
    %231 = vector.broadcast %230 : vector<32x1xf32> to vector<32x32xf32>
    %232 = arith.subf %228, %231 : vector<32x32xf32>
    %233 = math.exp %232 : vector<32x32xf32>
    %cst_63 = arith.constant dense<0.000000e+00> : vector<32xf32>
    %234 = vector.multi_reduction <add>, %233, %cst_63 [1] : vector<32x32xf32> to vector<32xf32>
    %235 = vector.shape_cast %234 : vector<32xf32> to vector<32x1xf32>
    %236 = tpu.reciprocal %235 {approx = true} : vector<32x1xf32> -> vector<32x1xf32>
    %237 = vector.broadcast %236 : vector<32x1xf32> to vector<32x32xf32>
    %238 = arith.mulf %233, %237 : vector<32x32xf32>
    %239 = arith.truncf %238 : vector<32x32xf32> to vector<32x32xbf16>
    %cst_64 = arith.constant dense<0.000000e+00> : vector<32x64xf32>
    %240 = tpu.matmul %239, %226, %cst_64 {dimension_numbers = #tpu.dot_dimension_numbers<[1], [0], [0], [1], [0, 0, 1, 1], [], []>} : vector<32x32xbf16>, vector<32x64xbf16>, vector<32x64xf32> -> vector<32x64xf32>
    %241 = tpu.concatenate %180, %200, %220, %240 in 1 : vector<32x64xf32>, vector<32x64xf32>, vector<32x64xf32>, vector<32x64xf32> -> vector<32x256xf32>
    %242 = arith.truncf %241 : vector<32x256xf32> to vector<32x256xbf16>
    %cst_65 = arith.constant dense<0.000000e+00> : vector<32x256xf32>
    %243 = tpu.matmul %242, %160, %cst_65 {dimension_numbers = #tpu.dot_dimension_numbers<[1], [0], [0], [1], [0, 0, 1, 1], [], []>} : vector<32x256xbf16>, vector<256x256xbf16>, vector<32x256xf32> -> vector<32x256xf32>
    %244 = vector.broadcast %10 : vector<1x256xf32> to vector<32x256xf32>
    %245 = arith.addf %243, %244 : vector<32x256xf32>
    %246 = arith.addf %141, %245 : vector<32x256xf32>
    %cst_66 = arith.constant dense<0.000000e+00> : vector<32xf32>
    %247 = vector.multi_reduction <add>, %246, %cst_66 [1] : vector<32x256xf32> to vector<32xf32>
    %248 = vector.shape_cast %247 : vector<32xf32> to vector<32x1xf32>
    %cst_67 = arith.constant 2.560000e+02 : f32
    %249 = vector.broadcast %cst_67 : f32 to vector<32x1xf32>
    %250 = arith.divf %248, %249 : vector<32x1xf32>
    %251 = vector.broadcast %250 : vector<32x1xf32> to vector<32x256xf32>
    %252 = arith.subf %246, %251 : vector<32x256xf32>
    %253 = arith.mulf %252, %252 : vector<32x256xf32>
    %cst_68 = arith.constant dense<0.000000e+00> : vector<32xf32>
    %254 = vector.multi_reduction <add>, %253, %cst_68 [1] : vector<32x256xf32> to vector<32xf32>
    %255 = vector.shape_cast %254 : vector<32xf32> to vector<32x1xf32>
    %cst_69 = arith.constant 2.560000e+02 : f32
    %256 = vector.broadcast %cst_69 : f32 to vector<32x1xf32>
    %257 = arith.divf %255, %256 : vector<32x1xf32>
    %258 = vector.broadcast %250 : vector<32x1xf32> to vector<32x256xf32>
    %259 = arith.subf %246, %258 : vector<32x256xf32>
    %cst_70 = arith.constant 9.99999974E-6 : f32
    %260 = vector.broadcast %cst_70 : f32 to vector<32x1xf32>
    %261 = arith.addf %257, %260 : vector<32x1xf32>
    %262 = math.rsqrt %261 : vector<32x1xf32>
    %263 = vector.broadcast %262 : vector<32x1xf32> to vector<32x256xf32>
    %264 = arith.mulf %259, %263 : vector<32x256xf32>
    %265 = vector.broadcast %15 : vector<1x256xf32> to vector<32x256xf32>
    %266 = arith.mulf %264, %265 : vector<32x256xf32>
    %267 = vector.broadcast %16 : vector<1x256xf32> to vector<32x256xf32>
    %268 = arith.addf %266, %267 : vector<32x256xf32>
    %269 = arith.truncf %268 : vector<32x256xf32> to vector<32x256xbf16>
    %c0_71 = arith.constant 0 : index
    %c0_72 = arith.constant 0 : index
    %c0_73 = arith.constant 0 : index
    %270 = vector.load %arg9[%c0_71, %c0_72, %c0_73] : memref<1x256x256xbf16, #tpu.memory_space<vmem>>, vector<1x256x256xbf16>
    %271 = vector.shape_cast %270 : vector<1x256x256xbf16> to vector<256x256xbf16>
    %cst_74 = arith.constant dense<0.000000e+00> : vector<32x256xf32>
    %272 = tpu.matmul %269, %271, %cst_74 {dimension_numbers = #tpu.dot_dimension_numbers<[1], [0], [0], [1], [0, 0, 1, 1], [], []>} : vector<32x256xbf16>, vector<256x256xbf16>, vector<32x256xf32> -> vector<32x256xf32>
    %273 = vector.broadcast %11 : vector<1x256xf32> to vector<32x256xf32>
    %274 = arith.addf %272, %273 : vector<32x256xf32>
    %cst_75 = arith.constant 0.000000e+00 : f32
    %275 = vector.broadcast %cst_75 : f32 to vector<32x256xf32>
    %276 = arith.maximumf %274, %275 : vector<32x256xf32>
    %277 = arith.truncf %276 : vector<32x256xf32> to vector<32x256xbf16>
    %c0_76 = arith.constant 0 : index
    %c0_77 = arith.constant 0 : index
    %c0_78 = arith.constant 0 : index
    %278 = vector.load %arg10[%c0_76, %c0_77, %c0_78] : memref<1x256x256xbf16, #tpu.memory_space<vmem>>, vector<1x256x256xbf16>
    %279 = vector.shape_cast %278 : vector<1x256x256xbf16> to vector<256x256xbf16>
    %cst_79 = arith.constant dense<0.000000e+00> : vector<32x256xf32>
    %280 = tpu.matmul %277, %279, %cst_79 {dimension_numbers = #tpu.dot_dimension_numbers<[1], [0], [0], [1], [0, 0, 1, 1], [], []>} : vector<32x256xbf16>, vector<256x256xbf16>, vector<32x256xf32> -> vector<32x256xf32>
    %281 = vector.broadcast %12 : vector<1x256xf32> to vector<32x256xf32>
    %282 = arith.addf %280, %281 : vector<32x256xf32>
    %283 = arith.addf %268, %282 : vector<32x256xf32>
    %cst_80 = arith.constant dense<0.000000e+00> : vector<32xf32>
    %284 = vector.multi_reduction <add>, %283, %cst_80 [1] : vector<32x256xf32> to vector<32xf32>
    %285 = vector.shape_cast %284 : vector<32xf32> to vector<32x1xf32>
    %cst_81 = arith.constant 2.560000e+02 : f32
    %286 = vector.broadcast %cst_81 : f32 to vector<32x1xf32>
    %287 = arith.divf %285, %286 : vector<32x1xf32>
    %288 = vector.broadcast %287 : vector<32x1xf32> to vector<32x256xf32>
    %289 = arith.subf %283, %288 : vector<32x256xf32>
    %290 = arith.mulf %289, %289 : vector<32x256xf32>
    %cst_82 = arith.constant dense<0.000000e+00> : vector<32xf32>
    %291 = vector.multi_reduction <add>, %290, %cst_82 [1] : vector<32x256xf32> to vector<32xf32>
    %292 = vector.shape_cast %291 : vector<32xf32> to vector<32x1xf32>
    %cst_83 = arith.constant 2.560000e+02 : f32
    %293 = vector.broadcast %cst_83 : f32 to vector<32x1xf32>
    %294 = arith.divf %292, %293 : vector<32x1xf32>
    %295 = vector.broadcast %287 : vector<32x1xf32> to vector<32x256xf32>
    %296 = arith.subf %283, %295 : vector<32x256xf32>
    %cst_84 = arith.constant 9.99999974E-6 : f32
    %297 = vector.broadcast %cst_84 : f32 to vector<32x1xf32>
    %298 = arith.addf %294, %297 : vector<32x1xf32>
    %299 = math.rsqrt %298 : vector<32x1xf32>
    %300 = vector.broadcast %299 : vector<32x1xf32> to vector<32x256xf32>
    %301 = arith.mulf %296, %300 : vector<32x256xf32>
    %302 = vector.broadcast %17 : vector<1x256xf32> to vector<32x256xf32>
    %303 = arith.mulf %301, %302 : vector<32x256xf32>
    %304 = vector.broadcast %18 : vector<1x256xf32> to vector<32x256xf32>
    %305 = arith.addf %303, %304 : vector<32x256xf32>
    %c0_85 = arith.constant 0 : index
    %c0_86 = arith.constant 0 : index
    %306 = vector.load %arg13[%c0_85, %c0_86] : memref<32x256xf32, #tpu.memory_space<vmem>>, vector<32x256xf32>
    tpu.vector_store %arg13[%c0_85, %c0_86], %305 {strides = array<i32>} : memref<32x256xf32, #tpu.memory_space<vmem>>, vector<32x256xf32>,
    %c1_i32 = arith.constant 1 : i32
    %307 = arith.cmpi eq, %arg0, %c1_i32 : i32
    %308 = arith.extui %307 : i1 to i32
    %c0_i32_87 = arith.constant 0 : i32
    %309 = arith.cmpi ne, %308, %c0_i32_87 : i32
    scf.if %309 {
      %c0_88 = arith.constant 0 : index
      %c0_89 = arith.constant 0 : index
      %310 = vector.load %arg12[%c0_88, %c0_89] : memref<2x256xf32, #tpu.memory_space<vmem>>, vector<2x256xf32>
      %311 = vector.extract_strided_slice %310 {offsets = [0, 0], sizes = [1, 256], strides = [1, 1]} : vector<2x256xf32> to vector<1x256xf32>
      %312 = vector.extract_strided_slice %310 {offsets = [1, 0], sizes = [1, 256], strides = [1, 1]} : vector<2x256xf32> to vector<1x256xf32>
      %cst_90 = arith.constant dense<0.000000e+00> : vector<32xf32>
      %313 = vector.multi_reduction <add>, %305, %cst_90 [1] : vector<32x256xf32> to vector<32xf32>
      %314 = vector.shape_cast %313 : vector<32xf32> to vector<32x1xf32>
      %cst_91 = arith.constant 2.560000e+02 : f32
      %315 = vector.broadcast %cst_91 : f32 to vector<32x1xf32>
      %316 = arith.divf %314, %315 : vector<32x1xf32>
      %317 = vector.broadcast %316 : vector<32x1xf32> to vector<32x256xf32>
      %318 = arith.subf %305, %317 : vector<32x256xf32>
      %319 = arith.mulf %318, %318 : vector<32x256xf32>
      %cst_92 = arith.constant dense<0.000000e+00> : vector<32xf32>
      %320 = vector.multi_reduction <add>, %319, %cst_92 [1] : vector<32x256xf32> to vector<32xf32>
      %321 = vector.shape_cast %320 : vector<32xf32> to vector<32x1xf32>
      %cst_93 = arith.constant 2.560000e+02 : f32
      %322 = vector.broadcast %cst_93 : f32 to vector<32x1xf32>
      %323 = arith.divf %321, %322 : vector<32x1xf32>
      %324 = vector.broadcast %316 : vector<32x1xf32> to vector<32x256xf32>
      %325 = arith.subf %305, %324 : vector<32x256xf32>
      %cst_94 = arith.constant 9.99999974E-6 : f32
      %326 = vector.broadcast %cst_94 : f32 to vector<32x1xf32>
      %327 = arith.addf %323, %326 : vector<32x1xf32>
      %328 = math.rsqrt %327 : vector<32x1xf32>
      %329 = vector.broadcast %328 : vector<32x1xf32> to vector<32x256xf32>
      %330 = arith.mulf %325, %329 : vector<32x256xf32>
      %331 = vector.broadcast %311 : vector<1x256xf32> to vector<32x256xf32>
      %332 = arith.mulf %330, %331 : vector<32x256xf32>
      %333 = vector.broadcast %312 : vector<1x256xf32> to vector<32x256xf32>
      %334 = arith.addf %332, %333 : vector<32x256xf32>
      %c0_95 = arith.constant 0 : index
      %c0_96 = arith.constant 0 : index
      %335 = vector.load %arg13[%c0_95, %c0_96] : memref<32x256xf32, #tpu.memory_space<vmem>>, vector<32x256xf32>
      tpu.vector_store %arg13[%c0_95, %c0_96], %334 {strides = array<i32>} : memref<32x256xf32, #tpu.memory_space<vmem>>, vector<32x256xf32>,
    } else {
    }
    return
  }
  func.func @transform_0(%arg0: i32) -> (i32, i32) {
    %c0_i32 = arith.constant 0 : i32
    %c0_i32_0 = arith.constant 0 : i32
    %c0_i32_1 = arith.constant 0 : i32
    return %c0_i32, %c0_i32_0 : i32, i32
  }
  func.func @transform_1(%arg0: i32) -> (i32, i32) {
    %c0_i32 = arith.constant 0 : i32
    %c0_i32_0 = arith.constant 0 : i32
    %c0_i32_1 = arith.constant 0 : i32
    return %c0_i32, %c0_i32_0 : i32, i32
  }
  func.func @transform_2(%arg0: i32) -> (i32, i32) {
    %c0_i32 = arith.constant 0 : i32
    %c0_i32_0 = arith.constant 0 : i32
    %c0_i32_1 = arith.constant 0 : i32
    return %c0_i32, %c0_i32_0 : i32, i32
  }
  func.func @transform_3(%arg0: i32) -> (i32, i32) {
    %c0_i32 = arith.constant 0 : i32
    %c0_i32_0 = arith.constant 0 : i32
    %c0_i32_1 = arith.constant 0 : i32
    return %c0_i32, %c0_i32_0 : i32, i32
  }
  func.func @transform_4(%arg0: i32) -> (i32, i32, i32) {
    %c0_i32 = arith.constant 0 : i32
    %c0_i32_0 = arith.constant 0 : i32
    %c0_i32_1 = arith.constant 0 : i32
    return %arg0, %c0_i32, %c0_i32_0 : i32, i32, i32
  }
  func.func @transform_5(%arg0: i32) -> (i32, i32, i32) {
    %c0_i32 = arith.constant 0 : i32
    %c0_i32_0 = arith.constant 0 : i32
    %c0_i32_1 = arith.constant 0 : i32
    return %arg0, %c0_i32, %c0_i32_0 : i32, i32, i32
  }
  func.func @transform_6(%arg0: i32) -> (i32, i32, i32) {
    %c0_i32 = arith.constant 0 : i32
    %c0_i32_0 = arith.constant 0 : i32
    %c0_i32_1 = arith.constant 0 : i32
    return %arg0, %c0_i32, %c0_i32_0 : i32, i32, i32
  }
  func.func @transform_7(%arg0: i32) -> (i32, i32, i32) {
    %c0_i32 = arith.constant 0 : i32
    %c0_i32_0 = arith.constant 0 : i32
    %c0_i32_1 = arith.constant 0 : i32
    return %arg0, %c0_i32, %c0_i32_0 : i32, i32, i32
  }
  func.func @transform_8(%arg0: i32) -> (i32, i32, i32) {
    %c0_i32 = arith.constant 0 : i32
    %c0_i32_0 = arith.constant 0 : i32
    %c0_i32_1 = arith.constant 0 : i32
    return %arg0, %c0_i32, %c0_i32_0 : i32, i32, i32
  }
  func.func @transform_9(%arg0: i32) -> (i32, i32, i32) {
    %c0_i32 = arith.constant 0 : i32
    %c0_i32_0 = arith.constant 0 : i32
    %c0_i32_1 = arith.constant 0 : i32
    return %arg0, %c0_i32, %c0_i32_0 : i32, i32, i32
  }
  func.func @transform_10(%arg0: i32) -> (i32, i32, i32) {
    %c0_i32 = arith.constant 0 : i32
    %c0_i32_0 = arith.constant 0 : i32
    %c0_i32_1 = arith.constant 0 : i32
    return %arg0, %c0_i32, %c0_i32_0 : i32, i32, i32
  }
  func.func @transform_11(%arg0: i32) -> (i32, i32) {
    %c0_i32 = arith.constant 0 : i32
    %c0_i32_0 = arith.constant 0 : i32
    %c0_i32_1 = arith.constant 0 : i32
    return %c0_i32, %c0_i32_0 : i32, i32
  }
  func.func @transform_12(%arg0: i32) -> (i32, i32) {
    %c0_i32 = arith.constant 0 : i32
    %c0_i32_0 = arith.constant 0 : i32
    %c0_i32_1 = arith.constant 0 : i32
    return %c0_i32, %c0_i32_0 : i32, i32
  }
}

</mosaic_0001>

<bundles_post_ra>
// kernel: tpu_custom_call.1
= control target key start
LH: loop header
LB: loop body
LE: loop exit
PB: predicated region body
PF: predicated region fallthrough
CT: control target
= control target key end

     0   :  { %s8607_s0 = inlined_call_operand.vmem [shape: f32[32,256], index: 0, kind: input, shape index: {}]   ;;  %s8608_s1 = inlined_call_operand.vmem [shape: bf16[32,256], index: 1, kind: input, shape index: {}]   ;;  %s8609_s2 = inlined_call_operand.vmem [shape: f32[32,32], index: 2, kind: input, shape index: {}]   ;;  %s8610_s3 = inlined_call_operand.vmem [shape: f32[32,32], index: 3, kind: input, shape index: {}]   ;;  %s8611_s4 = inlined_call_operand.hbm [shape: bf16[2,256,768], index: 4, kind: input, shape index: {}]   ;;  %s8612_s5 = inlined_call_operand.hbm [shape: bf16[2,256,256], index: 5, kind: input, shape index: {}]   ;;  %s8613_s6 = inlined_call_operand.hbm [shape: bf16[2,256,768], index: 6, kind: input, shape index: {}]   ;;  %s8614_s7 = inlined_call_operand.hbm [shape: bf16[2,256,256], index: 7, kind: input, shape index: {}]   ;;  %s8615_s8 = inlined_call_operand.hbm [shape: bf16[2,256,256], index: 8, kind: input, shape index: {}]   ;;  %s8616_s9 = inlined_call_operand.hbm [shape: bf16[2,256,256], index: 9, kind: input, shape index: {}]   ;;  %s8617_s10 = inlined_call_operand.vmem [shape: f32[2,12,768], index: 10, kind: input, shape index: {}]   ;;  %s8618_s11 = inlined_call_operand.vmem [shape: f32[2,256], index: 11, kind: input, shape index: {}]   ;;  %s8619_s12 = inlined_call_operand.hbm [shape: f32[32,256], index: 12, kind: output, shape index: {}]  }
   0x1   :  { %8635 = sst [smem:[#allocation22_spill]] %s8607_s0 }
   0x2   :  { %8636 = sst [smem:[#allocation23_spill]] %s8608_s1 }
   0x3   :  { %8637 = sst [smem:[#allocation24_spill]] %s8609_s2 }
   0x4   :  { %8638 = sst [smem:[#allocation25_spill]] %s8610_s3 }
   0x5   :  { %8639 = sst [smem:[#allocation26_spill]] %s8611_s4 }
   0x6   :  { %8640 = sst [smem:[#allocation27_spill]] %s8612_s5 }
   0x7   :  { %8641 = sst [smem:[#allocation28_spill]] %s8614_s7 }
   0x8   :  { %8642 = sst [smem:[#allocation29_spill]] %s8618_s11 }
   0x9   :  { %8643 = sst [smem:[#allocation30_spill]] %s8619_s12 }
   0xa   :  { %17 = vsyncpa [#allocation3], 0 }
   0xb   :  { %19 = vsyncpa [#allocation3 + $0x1], 0 }
   0xc   :  { %20 = vsyncpa [#allocation6], 0 }
   0xd   :  { %22 = vsyncpa [#allocation6 + $0x1], 0 }
   0xe   :  { %23 = vsyncpa [#allocation9], 0 }
   0xf   :  { %25 = vsyncpa [#allocation9 + $0x1], 0 }
  0x10   :  { %26 = vsyncpa [#allocation12], 0 }
  0x11   :  { %28 = vsyncpa [#allocation12 + $0x1], 0 }
  0x12   :  { %29 = vsyncpa [#allocation4], 0  ;;  %s7114_s21 = smov 0   ;;  %s7116_s22 = smov 0  }
  0x13   :  { %s7118_s23 = smov 0   ;;  %s7120_s24 = smov 0  }
  0x14 LB: > { %8644 = sst [smem:[#allocation19_spill]] %s7029_s23  ;;  %s7133_s25 = sadd.s32 4294967295, %s7033_s24   ;;  %s7033_s24 = sphi %s7120_s24, %s8666_s24   ;;  %s7029_s23 = sphi %s7118_s23, %s8671_s23   ;;  %s7025_s22 = sphi %s7116_s22, %s8670_s22   ;;  %s7021_s21 = sphi %s7114_s21, %s8669_s21  }
  0x15   : > { %s7136_s26 = sadd.s32 1, %s7033_s24   ;;  %s126_s28 = sadd.s32 1, %s7029_s23 }
  0x16   : > { %8645 = sst [smem:[#allocation20_spill]] %s7136_s26  ;;  %s123_s27 = ssub.s32 %s7033_s24, %s7136_s26 }
  0x17   : > { %p124_p0 = scmp.eq.s32.totalorder %s123_s27, 0  ;;  %p133_p1 = scmp.ne.s32.totalorder %s7029_s23, %s7025_s22 }
  0x18   : > { %p134_p2 = scmp.eq.s32.totalorder %s7033_s24, 0  ;;  %p139_p3 = scmp.ne.s32.totalorder %s7025_s22, %s7021_s21 }
  0x19   : > { %s7146_s29 = scalar_select %p124_p0, %s7029_s23, %s126_s28  }
  0x1a   : > { %p135_p4 = por %p134_p2, %p133_p1  ;;  %p140_p5 = scmp.eq.s32.totalorder %s7133_s25, 0 }
  0x1b   : > { %8646 = sst [smem:[#allocation21_spill]] %s7146_s29  ;;  %p6032_p6 = scmp.lt.s32.totalorder %s7033_s24, 2 }
  0x1c   : > { %p7150_p7 = por %p140_p5, %p139_p3  ;;  %s7155_s13 = sand.u32 1, %s7029_s23  }
  0x1d   : > { %p7157_p8 = pnand %p6032_p6, %p135_p4  ;;  %s8624_s15 = sand.u32 1, %s7033_s24  }
  0x1e   : > { %s8647_s30 = scalar_select %p7150_p7, 1, 0 }
  0x1f   : > { %s7163_s16 = sshll.u32 %s7155_s13, 8  ;;  %s7166_s17 = sshll.u32 %s7033_s24, 12 }
  0x20   : > { %s401_s18 = scalar_lea.vmem [#allocation5], %s7163_s16  ;;  %s8649_s5 = sld [smem:[#allocation27_spill]] }
  0x21   : > { %s408_s19 = sshll.u32 %s401_s18, 4  ;;  %s7179_s28 = scalar_lea.sflag [#allocation6], %s8624_s15  ;;  %s7175_s19 = int_to_ptr.vmem [resolvable:$true] %s408_s19 }
  0x22   : > { %p7185_p10 = pneg %p7157_p8 }
  0x26   : > { %s7173_s27 = scalar_lea.hbm %s8649_s5, %s7166_s17  ;;  %s6782_s21 = scalar_lea.hbm %s8649_s5, 8192 }
  0x27   : > { %s6777_s29 = scalar_lea.hbm %s7173_s27, 4096  ;;  %p6783_p13 = scmp.lt.u32.totalorder %s7173_s27, %s8649_s5 }
  0x28   : > { %p6778_p9 = scmp.ne.s32.totalorder %s7173_s27, %s6777_s29  ;;  %p6784_p0 = scmp.lt.u32.totalorder %s6782_s21, %s6777_s29 }
  0x29   : > { %p6786_p2 = scmp.lt.u32.totalorder %s6777_s29, %s7173_s27 }
  0x2a   : > { %p6780_p11 = pnand %p7185_p10, %p6778_p9  ;;  %p6785_p1 = por %p6784_p0, %p6783_p13 }
  0x2c   : > { %p6781_p12 = pneg %p6780_p11  ;;  %p6787_p3 = por %p6786_p2, %p6785_p1 }
  0x2e   : > { %p6788_p4 = pnand %p6787_p3, %p6781_p12 }
  0x30   : > { %6791 = shalt.err (!%p6788_p4)
}
  0x31   : > { %s6792_s15 = scalar_lea.vmem %s7175_s19, 4096  ;;  %s7035_s18 = smov [#allocation5]  }
  0x32   : > { %p6793_p5 = scmp.ne.s32.totalorder %s7175_s19, %s6792_s15  ;;  %s6797_s20 = sshll.u32 %s7035_s18, 4  ;;  %s6798_s20 = int_to_ptr.vmem [resolvable:$false] %s6797_s20 }
  0x33   : > { %s6799_s12 = scalar_lea.vmem %s6798_s20, 8192  ;;  %p6800_p11 = scmp.lt.s32.totalorder %s7175_s19, %s6798_s20 }
  0x34   : > { %p6795_p6 = pnand %p6793_p5, %p7185_p10  ;;  %p6801_p7 = scmp.lt.s32.totalorder %s6799_s12, %s6792_s15 }
  0x36   : > { %p6796_p9 = pneg %p6795_p6  ;;  %p6802_p13 = por %p6801_p7, %p6800_p11 }
  0x38   : > { %p6803_p0 = pnand %p6802_p13, %p6796_p9 }
  0x3a   : > { %6806 = shalt.err (!%p6803_p0)
}
  0x3b   : > { %s8626_s26 = smov 128   ;;  %s8628_s29 = smov 8  }
  0x3c   : > { %6019 = dma.hbm_to_vmem [thread:$0]  (!%p7157_p8), %s7173_s27, 4096, %s7175_s19, %s7179_s28, %s8626_s26, %s8626_s26, %s8628_s29  }
  0x3d   : > { %p5411_p7 = scmp.ge.s32.totalorder %s7033_s24, 1  ;;  %p508_p12 = scmp.lt.s32.totalorder %s7033_s24, 3 }
  0x3e   : > { %s8652_s7 = sld [smem:[#allocation28_spill]]  ;;  %s443_s12 = scalar_lea.vmem [#allocation8], %s7163_s16 }
  0x3f   : > { %p7214_p1 = pnand %p5411_p7, %p508_p12  ;;  %s450_s5 = sshll.u32 %s443_s12, 4  ;;  %s7225_s5 = int_to_ptr.vmem [resolvable:$true] %s450_s5 }
  0x40   : > { %s8633_s19 = smul.u32 768, %s7155_s13  ;;  %s8653_s27 = sand.u32 1, %s7033_s24  }
  0x41   : > { %s8651_s15 = scalar_select %p7214_p1, 1, 0 }
  0x42   : > { %s7230_s26 = scalar_lea.sflag [#allocation9], %s8653_s27 }
  0x44   : > { %s7222_s20 = scalar_lea.hbm %s8652_s7, %s7166_s17  ;;  %s6812_s11 = scalar_lea.hbm %s8652_s7, 8192 }
  0x45   : > { %s6807_s29 = scalar_lea.hbm %s7222_s20, 4096  ;;  %p6813_p5 = scmp.lt.u32.totalorder %s7222_s20, %s8652_s7 }
  0x46   : > { %p6808_p2 = scmp.ne.s32.totalorder %s7222_s20, %s6807_s29  ;;  %p6814_p6 = scmp.lt.u32.totalorder %s6812_s11, %s6807_s29 }
  0x47   : > { %p6816_p11 = scmp.lt.u32.totalorder %s6807_s29, %s7222_s20 }
  0x48   : > { %p6810_p3 = pnand %p6808_p2, %p7185_p10  ;;  %p6815_p9 = por %p6814_p6, %p6813_p5 }
  0x4a   : > { %p6811_p4 = pneg %p6810_p3  ;;  %p6817_p13 = por %p6816_p11, %p6815_p9 }
  0x4c   : > { %p6818_p0 = pnand %p6817_p13, %p6811_p4 }
  0x4e   : > { %6821 = shalt.err (!%p6818_p0)
}
  0x4f   : > { %s6822_s12 = scalar_lea.vmem %s7225_s5, 4096  ;;  %s7038_s27 = smov [#allocation8]  }
  0x50   : > { %p6823_p7 = scmp.ne.s32.totalorder %s7225_s5, %s6822_s12  ;;  %s6827_s21 = sshll.u32 %s7038_s27, 4  ;;  %s6828_s21 = int_to_ptr.vmem [resolvable:$false] %s6827_s21 }
  0x51   : > { %s6829_s1 = scalar_lea.vmem %s6828_s21, 8192  ;;  %p6830_p3 = scmp.lt.s32.totalorder %s7225_s5, %s6828_s21 }
  0x52   : > { %p6825_p12 = pnand %p6823_p7, %p7185_p10  ;;  %p6831_p1 = scmp.lt.s32.totalorder %s6829_s1, %s6822_s12 }
  0x54   : > { %p6826_p2 = pneg %p6825_p12  ;;  %p6832_p5 = por %p6831_p1, %p6830_p3 }
  0x56   : > { %p6833_p6 = pnand %p6832_p5, %p6826_p2 }
  0x58   : > { %6836 = shalt.err (!%p6833_p6)
}
  0x59   : > { %s8654_s3 = smov 8   ;;  %s8655_s11 = smov 128  }
  0x5a   : > { %6025 = dma.hbm_to_vmem [thread:$0]  (!%p7157_p8), %s7222_s20, 4096, %s7225_s5, %s7230_s26, %s8655_s11, %s8655_s11, %s8654_s3  }
  0x5b   : > { %s5992_s29 = smul.u32 12288, %s7033_s24  ;;  %s380_s18 = scalar_lea.vmem [#allocation2], %s8633_s19 }
  0x5c   : > { %s387_s12 = sshll.u32 %s380_s18, 4  ;;  %s8656_s4 = sld [smem:[#allocation26_spill]]  ;;  %s7267_s12 = int_to_ptr.vmem [resolvable:$true] %s387_s12 }
  0x5d   : > { %s377_s7 = scalar_lea.sflag [#allocation3], %s7155_s13 }
  0x62   : > { %s7265_s1 = scalar_lea.hbm %s8656_s4, %s5992_s29  ;;  %s6842_s18 = scalar_lea.hbm %s8656_s4, 24576 }
  0x63   : > { %s6837_s2 = scalar_lea.hbm %s7265_s1, 12288  ;;  %p6843_p11 = scmp.lt.u32.totalorder %s7265_s1, %s8656_s4 }
  0x64   : > { %p6838_p1 = scmp.ne.s32.totalorder %s7265_s1, %s6837_s2  ;;  %p6844_p13 = scmp.lt.u32.totalorder %s6842_s18, %s6837_s2 }
  0x65   : > { %p6846_p7 = scmp.lt.u32.totalorder %s6837_s2, %s7265_s1 }
  0x66   : > { %p6840_p4 = pnand %p6838_p1, %p7185_p10  ;;  %p6845_p0 = por %p6844_p13, %p6843_p11 }
  0x68   : > { %p6841_p9 = pneg %p6840_p4  ;;  %p6847_p12 = por %p6846_p7, %p6845_p0 }
  0x6a   : > { %p6848_p2 = pnand %p6847_p12, %p6841_p9 }
  0x6c   : > { %6851 = shalt.err (!%p6848_p2)
}
  0x6d   : > { %s6852_s21 = scalar_lea.vmem %s7267_s12, 12288  ;;  %s7039_s5 = smov [#allocation2]  }
  0x6e   : > { %p6853_p3 = scmp.ne.s32.totalorder %s7267_s12, %s6852_s21  ;;  %s6857_s20 = sshll.u32 %s7039_s5, 4  ;;  %s6858_s20 = int_to_ptr.vmem [resolvable:$false] %s6857_s20 }
  0x6f   : > { %s6859_s19 = scalar_lea.vmem %s6858_s20, 24576  ;;  %p6860_p1 = scmp.lt.s32.totalorder %s7267_s12, %s6858_s20 }
  0x70   : > { %p6855_p5 = pnand %p6853_p3, %p7185_p10  ;;  %p6861_p4 = scmp.lt.s32.totalorder %s6859_s19, %s6852_s21 }
  0x72   : > { %p6856_p6 = pneg %p6855_p5  ;;  %p6862_p11 = por %p6861_p4, %p6860_p1 }
  0x74   : > { %p6863_p13 = pnand %p6862_p11, %p6856_p6 }
  0x76   : > { %6866 = shalt.err (!%p6863_p13)
}
  0x77   : > { %s7040_s2 = smov 384   ;;  %s7041_s18 = smov 24  }
  0x78   : > { %6016 = dma.hbm_to_vmem [thread:$0]  (!%p7157_p8), %s7265_s1, 12288, %s7267_s12, %s377_s7, %s7040_s2, %s7040_s2, %s7041_s18  }
  0x79   : > { %s7301_s5 = scalar_lea.hbm %s8613_s6, %s5992_s29  ;;  %s8657_s20 = smul.u32 768, %s7155_s13 }
  0x7a   : > { %s6867_s0 = scalar_lea.hbm %s7301_s5, 12288  ;;  %s6872_s12 = scalar_lea.hbm %s8613_s6, 24576 }
  0x7b   : > { %s422_s19 = scalar_lea.vmem [#allocation7], %s8657_s20  ;;  %p6868_p9 = scmp.ne.s32.totalorder %s7301_s5, %s6867_s0 }
  0x7c   : > { %s429_s4 = sshll.u32 %s422_s19, 4  ;;  %p6873_p12 = scmp.lt.u32.totalorder %s7301_s5, %s8613_s6  ;;  %s7305_s4 = int_to_ptr.vmem [resolvable:$true] %s429_s4 }
  0x7d   : > { %p6870_p0 = pnand %p6868_p9, %p7185_p10  ;;  %p6874_p2 = scmp.lt.u32.totalorder %s6872_s12, %s6867_s0 }
  0x7e   : > { %p6876_p5 = scmp.lt.u32.totalorder %s6867_s0, %s7301_s5 }
  0x7f   : > { %p6871_p7 = pneg %p6870_p0  ;;  %p6875_p3 = por %p6874_p2, %p6873_p12 }
  0x81   : > { %p6877_p6 = por %p6876_p5, %p6875_p3 }
  0x83   : > { %p6878_p1 = pnand %p6877_p6, %p6871_p7 }
  0x85   : > { %6881 = shalt.err (!%p6878_p1)
}
  0x86   : > { %s6882_s27 = scalar_lea.vmem %s7305_s4, 12288  ;;  %s7042_s21 = smov [#allocation7]  }
  0x87   : > { %p6883_p4 = scmp.ne.s32.totalorder %s7305_s4, %s6882_s27  ;;  %s6887_s20 = sshll.u32 %s7042_s21, 4  ;;  %s6888_s20 = int_to_ptr.vmem [resolvable:$false] %s6887_s20 }
  0x88   : > { %s6889_s19 = scalar_lea.vmem %s6888_s20, 24576  ;;  %p6890_p9 = scmp.lt.s32.totalorder %s7305_s4, %s6888_s20 }
  0x89   : > { %p6885_p11 = pnand %p6883_p4, %p7185_p10  ;;  %p6891_p0 = scmp.lt.s32.totalorder %s6889_s19, %s6882_s27 }
  0x8b   : > { %p6886_p13 = pneg %p6885_p11  ;;  %p6892_p12 = por %p6891_p0, %p6890_p9 }
  0x8d   : > { %p6893_p2 = pnand %p6892_p12, %p6886_p13 }
  0x8f   : > { %6896 = shalt.err (!%p6893_p2)
}
  0x90   : > { %6022 = dma.hbm_to_vmem [thread:$0]  (!%p7157_p8), %s7301_s5, 12288, %s7305_s4, %s7179_s28, %s7040_s2, %s7040_s2, %s7041_s18  }
  0x91   : > { %s7336_s24 = scalar_lea.hbm %s8615_s8, %s7166_s17  ;;  %s464_s12 = scalar_lea.vmem [#allocation10], %s7163_s16 }
  0x92   : > { %s471_s29 = sshll.u32 %s464_s12, 4  ;;  %s6897_s1 = scalar_lea.hbm %s7336_s24, 4096  ;;  %s7339_s29 = int_to_ptr.vmem [resolvable:$true] %s471_s29 }
  0x93   : > { %p6898_p7 = scmp.ne.s32.totalorder %s7336_s24, %s6897_s1  ;;  %s6902_s28 = scalar_lea.hbm %s8615_s8, 8192 }
  0x94   : > { %p6903_p6 = scmp.lt.u32.totalorder %s7336_s24, %s8615_s8  ;;  %p6904_p1 = scmp.lt.u32.totalorder %s6902_s28, %s6897_s1 }
  0x95   : > { %p6900_p3 = pnand %p6898_p7, %p7185_p10  ;;  %p6906_p11 = scmp.lt.u32.totalorder %s6897_s1, %s7336_s24 }
  0x96   : > { %p6905_p4 = por %p6904_p1, %p6903_p6 }
  0x97   : > { %p6901_p5 = pneg %p6900_p3 }
  0x98   : > { %p6907_p13 = por %p6906_p11, %p6905_p4 }
  0x9a   : > { %p6908_p9 = pnand %p6907_p13, %p6901_p5 }
  0x9c   : > { %6911 = shalt.err (!%p6908_p9)
}
  0x9d   : > { %s6912_s5 = scalar_lea.vmem %s7339_s29, 4096  ;;  %s7043_s21 = smov [#allocation10]  }
  0x9e   : > { %p6913_p0 = scmp.ne.s32.totalorder %s7339_s29, %s6912_s5  ;;  %s6917_s20 = sshll.u32 %s7043_s21, 4  ;;  %s6918_s20 = int_to_ptr.vmem [resolvable:$false] %s6917_s20 }
  0x9f   : > { %s6919_s19 = scalar_lea.vmem %s6918_s20, 8192  ;;  %p6920_p7 = scmp.lt.s32.totalorder %s7339_s29, %s6918_s20 }
  0xa0   : > { %p6915_p12 = pnand %p6913_p0, %p7185_p10  ;;  %p6921_p3 = scmp.lt.s32.totalorder %s6919_s19, %s6912_s5 }
  0xa2   : > { %p6916_p2 = pneg %p6915_p12  ;;  %p6922_p6 = por %p6921_p3, %p6920_p7 }
  0xa4   : > { %p6923_p1 = pnand %p6922_p6, %p6916_p2 }
  0xa6   : > { %6926 = shalt.err (!%p6923_p1)
}
  0xa7   : > { %6028 = dma.hbm_to_vmem [thread:$0]  (!%p7157_p8), %s7336_s24, 4096, %s7339_s29, %s7230_s26, %s8655_s11, %s8655_s11, %s8654_s3  }
  0xa8   : > { %s7370_s12 = scalar_lea.hbm %s8616_s9, %s7166_s17  ;;  %s485_s1 = scalar_lea.vmem [#allocation11], %s7163_s16 }
  0xa9   : > { %s492_s27 = sshll.u32 %s485_s1, 4  ;;  %s482_s4 = scalar_lea.sflag [#allocation12], %s7155_s13  ;;  %s7373_s27 = int_to_ptr.vmem [resolvable:$true] %s492_s27 }
  0xaa   : > { %s6927_s28 = scalar_lea.hbm %s7370_s12, 4096  ;;  %s6932_s29 = scalar_lea.hbm %s8616_s9, 8192 }
  0xab   : > { %p6928_p5 = scmp.ne.s32.totalorder %s7370_s12, %s6927_s28  ;;  %p6933_p13 = scmp.lt.u32.totalorder %s7370_s12, %s8616_s9 }
  0xac   : > { %p6934_p9 = scmp.lt.u32.totalorder %s6932_s29, %s6927_s28  ;;  %p6936_p12 = scmp.lt.u32.totalorder %s6927_s28, %s7370_s12 }
  0xad   : > { %p6930_p4 = pnand %p6928_p5, %p7185_p10 }
  0xae   : > { %p6935_p0 = por %p6934_p9, %p6933_p13 }
  0xaf   : > { %p6931_p11 = pneg %p6930_p4 }
  0xb0   : > { %p6937_p2 = por %p6936_p12, %p6935_p0 }
  0xb2   : > { %p6938_p7 = pnand %p6937_p2, %p6931_p11 }
  0xb4   : > { %6941 = shalt.err (!%p6938_p7)
}
  0xb5   : > { %s6942_s16 = scalar_lea.vmem %s7373_s27, 4096  ;;  %s7044_s18 = smov [#allocation11]  }
  0xb6   : > { %p6943_p3 = scmp.ne.s32.totalorder %s7373_s27, %s6942_s16  ;;  %s6947_s5 = sshll.u32 %s7044_s18, 4  ;;  %s6948_s5 = int_to_ptr.vmem [resolvable:$false] %s6947_s5 }
  0xb7   : > { %s6949_s21 = scalar_lea.vmem %s6948_s5, 8192  ;;  %p6950_p5 = scmp.lt.s32.totalorder %s7373_s27, %s6948_s5 }
  0xb8   : > { %p6945_p6 = pnand %p6943_p3, %p7185_p10  ;;  %p6951_p4 = scmp.lt.s32.totalorder %s6949_s21, %s6942_s16 }
  0xba   : > { %p6946_p1 = pneg %p6945_p6  ;;  %p6952_p13 = por %p6951_p4, %p6950_p5 }
  0xbc   : > { %p6953_p9 = pnand %p6952_p13, %p6946_p1 }
  0xbe   : > { %6956 = shalt.err (!%p6953_p9)
}
  0xbf   : > { %6031 = dma.hbm_to_vmem [thread:$0]  (!%p7157_p8), %s7370_s12, 4096, %s7373_s27, %s482_s4, %s8655_s11, %s8655_s11, %s8654_s3  }
  0xc0   : > { %p8658_p10 = scmp.ne.s32.totalorder %s8651_s15, 0 }
  0xc1   : > { %s514_s23 = sand.u32 (!%p8658_p10), 1, %s7025_s22   ;;  %p8659_p11 = scmp.ne.s32.totalorder (!%p8658_p10), %s8647_s30, 0 }
  0xc2   : > { %512 = sbr.rel (%p8658_p10) target bundleno = 6630 (0x19e6), region = 68  ;;  %s515_s19 = scalar_lea.sflag (!%p8658_p10), [#allocation3], %s514_s23 }
  0xc3   : > { %s5995_s20 = smul.u32 (!%p8658_p10), 768, %s514_s23 }
  0xc5   : > { %s7405_s0 = scalar_lea.vmem (!%p8658_p10), [#allocation2], %s5995_s20 }
  0xc9   : > { %7000 = dma.done.wait (%p8659_p11), %s515_s19, 12288  }
  0xca   : > { %7002 = vsyncadd (%p8659_p11), %s515_s19, 4294955008  ;;  %s523_s13 = sand.u32 1, %s7133_s25   ;;  %s5412_s14 = sshll.u32 %s514_s23, 8 }
  0xcb   : > { %s524_s3 = scalar_lea.sflag [#allocation6], %s523_s13  ;;  %s7412_s11 = scalar_lea.vmem [#allocation5], %s5412_s14 }
  0xcc   : > { %7004 = dma.done.wait (%p8659_p11), %s524_s3, 16384  }
  0xcd   : > { %7006 = vsyncadd (%p8659_p11), %s524_s3, 4294950912  ;;  %s7418_s15 = scalar_lea.vmem [#allocation7], %s5995_s20  ;;  %s542_s7 = scalar_lea.sflag [#allocation9], %s523_s13 }
  0xce   : > { %s7420_s12 = scalar_lea.vmem [#allocation8], %s5412_s14 }
  0xcf   : > { %7008 = dma.done.wait (%p8659_p11), %s542_s7, 8192  }
  0xd0   : > { %7010 = vsyncadd (%p8659_p11), %s542_s7, 4294959104  ;;  %s7426_s1 = scalar_lea.vmem [#allocation10], %s5412_s14  ;;  %s560_s27 = scalar_lea.sflag [#allocation12], %s514_s23 }
  0xd1   : > { %s7428_s4 = scalar_lea.vmem [#allocation11], %s5412_s14 }
  0xd2   : > { %7012 = dma.done.wait (%p8659_p11), %s560_s27, 4096  }
  0xd3   : > { %7014 = vsyncadd (%p8659_p11), %s560_s27, 4294963200  ;;  %p629_p8 = scmp.lt.s32.totalorder %s7133_s25, 1  ;;  %p5417_p0 = scmp.ne.s32.totalorder %s7133_s25, 0 }
  0xd4   : > { %s8660_s18 = sld [smem:[#allocation22_spill]] (!%p5417_p0) }
  0xd5   : > { %s630_s28 = scalar_select %p629_p8, %s7133_s25, 1 }
  0xd6   : > { %638 = sbr.rel (%p5417_p0) target bundleno = 223 (0xdf), region = 96 }
  0xd7   : > { %s5996_s26 = smul.u32 96, %s630_s28 }
  0xd9   : > { %s7439_s17 = scalar_lea.vmem %s8617_s10, %s5996_s26 }
  0xda   : > { %v639_v0 = vld [vmem:[%s8660_s18] sm:$0xff] (!%p5417_p0)  ;;  %v640_v1 = vld [vmem:[%s8660_s18 + $0x8] sm:$0xff] (!%p5417_p0)  ;;  %v641_v2 = vld [vmem:[%s8660_s18 + $0x10] sm:$0xff] (!%p5417_p0) }
  0xdb   : > { %647 = vst [vmem:[#allocation13] sm:$0xff] (!%p5417_p0), %v639_v0  ;;  %648 = vst [vmem:[#allocation13 + $0x8] sm:$0xff] (!%p5417_p0), %v640_v1  ;;  %v642_v3 = vld [vmem:[%s8660_s18 + $0x18] sm:$0xff] (!%p5417_p0)  ;;  %v643_v4 = vld [vmem:[%s8660_s18 + $0x20] sm:$0xff] (!%p5417_p0) }
  0xdc   : > { %649 = vst [vmem:[#allocation13 + $0x10] sm:$0xff] (!%p5417_p0), %v641_v2  ;;  %v644_v5 = vld [vmem:[%s8660_s18 + $0x28] sm:$0xff] (!%p5417_p0)  ;;  %650 = vst [vmem:[#allocation13 + $0x18] sm:$0xff] (!%p5417_p0), %v642_v3  ;;  %v645_v6 = vld [vmem:[%s8660_s18 + $0x30] sm:$0xff] (!%p5417_p0) }
  0xdd   : > { %651 = vst [vmem:[#allocation13 + $0x20] sm:$0xff] %v643_v4  ;;  %652 = vst [vmem:[#allocation13 + $0x28] sm:$0xff] %v644_v5  ;;  %v646_v7 = vld [vmem:[%s8660_s18 + $0x38] sm:$0xff] }
  0xde   : > { %653 = vst [vmem:[#allocation13 + $0x30] sm:$0xff] %v645_v6  ;;  %654 = vst [vmem:[#allocation13 + $0x38] sm:$0xff] %v646_v7 }
  0xdf PF: > { %v6115_v8 = vld [vmem:[%s7405_s0 + $0xc] ss:$24 sps:$4 sm:$0xff]   ;;  %v6117_v9 = vld [vmem:[%s7405_s0 + $0x8] ss:$24 sps:$4 sm:$0xff]   ;;  %v6121_v12 = vld [vmem:[%s7405_s0 + $0x3c] ss:$24 sps:$4 sm:$0xff]  }
  0xe0   : > { %1340 = vmatprep.subr.bf16.mxu1 %v6115_v8  ;;  %v6118_v10 = vld [vmem:[%s7405_s0 + $0x4] ss:$24 sps:$4 sm:$0xff]   ;;  %v6120_v11 = vld [vmem:[%s7405_s0] ss:$24 sps:$4 sm:$0xff]   ;;  %v6124_v14 = vld [vmem:[%s7405_s0 + $0x34] ss:$24 sps:$4 sm:$0xff]  }
  0xe1   : > { %1341 = vmatpush1.bf16.msra.mxu1 %v6117_v9  ;;  %v6123_v13 = vld [vmem:[%s7405_s0 + $0x38] ss:$24 sps:$4 sm:$0xff]   ;;  %1287 = vmatprep.subr.bf16.mxu0 %v6118_v10  ;;  %v6127_v16 = vld [vmem:[%s7405_s0 + $0x6c] ss:$24 sps:$4 sm:$0xff]   ;;  %v6129_v17 = vld [vmem:[%s7405_s0 + $0x68] ss:$24 sps:$4 sm:$0xff]  }
  0xe2   : > { %1288 = vmatpush1.bf16.msra.mxu0 %v6120_v11  ;;  %1342 = vmatprep.subr.bf16.mxu1 %v6121_v12  ;;  %v6126_v15 = vld [vmem:[%s7405_s0 + $0x30] ss:$24 sps:$4 sm:$0xff]   ;;  %v6130_v18 = vld [vmem:[%s7405_s0 + $0x64] ss:$24 sps:$4 sm:$0xff]   ;;  %v6132_v20 = vld [vmem:[%s7405_s0 + $0x60] ss:$24 sps:$4 sm:$0xff]  }
  0xe3   : > { %1289 = vmatprep.subr.bf16.mxu0 %v6124_v14  ;;  %v6133_v19 = vld [vmem:[%s7405_s0 + $0x9c] ss:$24 sps:$4 sm:$0xff]   ;;  %v6135_v22 = vld [vmem:[%s7405_s0 + $0x98] ss:$24 sps:$4 sm:$0xff]   ;;  %v6139_v23 = vld [vmem:[%s7405_s0 + $0xcc] ss:$24 sps:$4 sm:$0xff]  }
  0xe4   : > { %v6136_v21 = vld [vmem:[%s7405_s0 + $0x94] ss:$24 sps:$4 sm:$0xff]   ;;  %v6138_v24 = vld [vmem:[%s7405_s0 + $0x90] ss:$24 sps:$4 sm:$0xff]   ;;  %v6142_v25 = vld [vmem:[%s7405_s0 + $0xc4] ss:$24 sps:$4 sm:$0xff]  }
  0xe5   : > { %1343 = vmatpush1.bf16.msra.mxu1 %v6123_v13  ;;  %v6141_v26 = vld [vmem:[%s7405_s0 + $0xc8] ss:$24 sps:$4 sm:$0xff]   ;;  %v6145_v27 = vld [vmem:[%s7405_s0 + $0xfc] ss:$24 sps:$4 sm:$0xff]   ;;  %v6147_v30 = vld [vmem:[%s7405_s0 + $0xf8] ss:$24 sps:$4 sm:$0xff]  }
  0xe6   : > { %1344 = vmatprep.subr.bf16.mxu1 %v6127_v16  ;;  %1290 = vmatpush1.bf16.msra.mxu0 %v6126_v15  ;;  %v6144_v28 = vld [vmem:[%s7405_s0 + $0xc0] ss:$24 sps:$4 sm:$0xff]   ;;  %v6148_v29 = vld [vmem:[%s7405_s0 + $0xf4] ss:$24 sps:$4 sm:$0xff]   ;;  %v6150_v32 = vld [vmem:[%s7405_s0 + $0xf0] ss:$24 sps:$4 sm:$0xff]  }
  0xe7   : > { %1291 = vmatprep.subr.bf16.mxu0 %v6130_v18  ;;  %v6151_v31 = vld [vmem:[%s7405_s0 + $0x12c] ss:$24 sps:$4 sm:$0xff]   ;;  %v6153_v34 = vld [vmem:[%s7405_s0 + $0x128] ss:$24 sps:$4 sm:$0xff]   ;;  %v6157_v35 = vld [vmem:[%s7405_s0 + $0x15c] ss:$24 sps:$4 sm:$0xff]  }
  0xe8   : > { %v6154_v33 = vld [vmem:[%s7405_s0 + $0x124] ss:$24 sps:$4 sm:$0xff]   ;;  %v6156_v36 = vld [vmem:[%s7405_s0 + $0x120] ss:$24 sps:$4 sm:$0xff]   ;;  %v6160_v37 = vld [vmem:[%s7405_s0 + $0x154] ss:$24 sps:$4 sm:$0xff]  }
  0xe9   : > { %1345 = vmatpush1.bf16.msra.mxu1 %v6129_v17  ;;  %v6159_v38 = vld [vmem:[%s7405_s0 + $0x158] ss:$24 sps:$4 sm:$0xff]   ;;  %v6163_v39 = vld [vmem:[%s7405_s0 + $0x18c] ss:$24 sps:$4 sm:$0xff]   ;;  %v6165_v42 = vld [vmem:[%s7405_s0 + $0x188] ss:$24 sps:$4 sm:$0xff]  }
  0xea   : > { %1346 = vmatprep.subr.bf16.mxu1 %v6133_v19  ;;  %1292 = vmatpush1.bf16.msra.mxu0 %v6132_v20  ;;  %v6162_v40 = vld [vmem:[%s7405_s0 + $0x150] ss:$24 sps:$4 sm:$0xff]   ;;  %v6166_v41 = vld [vmem:[%s7405_s0 + $0x184] ss:$24 sps:$4 sm:$0xff]   ;;  %v6168_v44 = vld [vmem:[%s7405_s0 + $0x180] ss:$24 sps:$4 sm:$0xff]  }
  0xeb   : > { %1293 = vmatprep.subr.bf16.mxu0 %v6136_v21  ;;  %v6169_v43 = vld [vmem:[%s7405_s0 + $0x1bc] ss:$24 sps:$4 sm:$0xff]   ;;  %v6171_v46 = vld [vmem:[%s7405_s0 + $0x1b8] ss:$24 sps:$4 sm:$0xff]   ;;  %v6175_v47 = vld [vmem:[%s7405_s0 + $0x1ec] ss:$24 sps:$4 sm:$0xff]  }
  0xec   : > { %v6172_v45 = vld [vmem:[%s7405_s0 + $0x1b4] ss:$24 sps:$4 sm:$0xff]   ;;  %v6174_v48 = vld [vmem:[%s7405_s0 + $0x1b0] ss:$24 sps:$4 sm:$0xff]   ;;  %v6178_v49 = vld [vmem:[%s7405_s0 + $0x1e4] ss:$24 sps:$4 sm:$0xff]  }
  0xed   : > { %1347 = vmatpush1.bf16.msra.mxu1 %v6135_v22  ;;  %v6177_v50 = vld [vmem:[%s7405_s0 + $0x1e8] ss:$24 sps:$4 sm:$0xff]   ;;  %v6181_v51 = vld [vmem:[%s7405_s0 + $0x21c] ss:$24 sps:$4 sm:$0xff]   ;;  %v6183_v56 = vld [vmem:[%s7405_s0 + $0x218] ss:$24 sps:$4 sm:$0xff]  }
  0xee   : > { %1348 = vmatprep.subr.bf16.mxu1 %v6139_v23  ;;  %1294 = vmatpush1.bf16.msra.mxu0 %v6138_v24  ;;  %v6180_v52 = vld [vmem:[%s7405_s0 + $0x1e0] ss:$24 sps:$4 sm:$0xff]   ;;  %v6184_v53 = vld [vmem:[%s7405_s0 + $0x214] ss:$24 sps:$4 sm:$0xff]   ;;  %v6186_v59 = vld [vmem:[%s7405_s0 + $0x210] ss:$24 sps:$4 sm:$0xff]  }
  0xef   : > { %1295 = vmatprep.subr.bf16.mxu0 %v6142_v25  ;;  %v656_v54 = vld [vmem:[#allocation13 + $0x8] sm:$0xff]  ;;  %v658_v55 = vld [vmem:[#allocation13 + $0x18] sm:$0xff]  ;;  %v655_v10 = vld [vmem:[#allocation13] sm:$0xff]  ;;  %vm1492_vm0 = vcmask 523264   ;;  %s8661_s16 = sld [smem:[#allocation24_spill]]  ;;  %vm1554_vm1 = vcmask 261120  }
  0xf0   : > { %v7513_v57 = vpack.c.bf16 %v658_v55, %v656_v54  ;;  %v6187_v58 = vld [vmem:[%s7405_s0 + $0x24c] ss:$24 sps:$4 sm:$0xff]   ;;  %v6189_v61 = vld [vmem:[%s7405_s0 + $0x248] ss:$24 sps:$4 sm:$0xff]   ;;  %v6193_v62 = vld [vmem:[%s7405_s0 + $0x27c] ss:$24 sps:$4 sm:$0xff]  }
  0xf1   : > { %1349 = vmatpush1.bf16.msra.mxu1 %v6141_v26  ;;  %v6190_v60 = vld [vmem:[%s7405_s0 + $0x244] ss:$24 sps:$4 sm:$0xff]   ;;  %v6192_v63 = vld [vmem:[%s7405_s0 + $0x240] ss:$24 sps:$4 sm:$0xff]   ;;  %v6196_v0 = vld [vmem:[%s7405_s0 + $0x274] ss:$24 sps:$4 sm:$0xff]  }
  0xf2   : > { %1350 = vmatprep.subr.bf16.mxu1 %v6145_v27  ;;  %1296 = vmatpush1.bf16.msra.mxu0 %v6144_v28  ;;  %v6195_v1 = vld [vmem:[%s7405_s0 + $0x278] ss:$24 sps:$4 sm:$0xff]   ;;  %v6199_v2 = vld [vmem:[%s7405_s0 + $0x2ac] ss:$24 sps:$4 sm:$0xff]   ;;  %v6201_v5 = vld [vmem:[%s7405_s0 + $0x2a8] ss:$24 sps:$4 sm:$0xff]  }
  0xf3   : > { %1297 = vmatprep.subr.bf16.mxu0 %v6148_v29  ;;  %1372 = vmatprep.mubr.bf16.mxu1 %v7513_v57  ;;  %v6198_v3 = vld [vmem:[%s7405_s0 + $0x270] ss:$24 sps:$4 sm:$0xff]   ;;  %v6202_v4 = vld [vmem:[%s7405_s0 + $0x2a4] ss:$24 sps:$4 sm:$0xff]   ;;  %v6204_v6 = vld [vmem:[%s7405_s0 + $0x2a0] ss:$24 sps:$4 sm:$0xff]  }
  0xf4   : > { %1319 = vmatprep.mubr.bf16.mxu0 %v7513_v57  ;;  %v6205_v7 = vld [vmem:[%s7405_s0 + $0x2dc] ss:$24 sps:$4 sm:$0xff]   ;;  %v6207_v8 = vld [vmem:[%s7405_s0 + $0x2d8] ss:$24 sps:$4 sm:$0xff]   ;;  %v660_v12 = vld [vmem:[#allocation13 + $0x28] sm:$0xff]  ;;  %s8662_s14 = sld [smem:[#allocation23_spill]] }
  0xf5   : > { %1351 = vmatpush1.bf16.msra.mxu1 %v6147_v30  ;;  %v6208_v9 = vld [vmem:[%s7405_s0 + $0x2d4] ss:$24 sps:$4 sm:$0xff]   ;;  %v662_v13 = vld [vmem:[#allocation13 + $0x38] sm:$0xff]  ;;  %v6210_v14 = vld [vmem:[%s7405_s0 + $0x2d0] ss:$24 sps:$4 sm:$0xff]   ;;  %s8663_s5 = sld [smem:[#allocation25_spill]] }
  0xf6   : > { %1352 = vmatprep.subr.bf16.mxu1 %v6151_v31  ;;  %1298 = vmatpush1.bf16.msra.mxu0 %v6150_v32  ;;  %v657_v11 = vld [vmem:[#allocation13 + $0x10] sm:$0xff]  ;;  %v7537_v17 = vpack.c.bf16 %v662_v13, %v660_v12  ;;  %v659_v19 = vld [vmem:[#allocation13 + $0x20] sm:$0xff]  ;;  %p5774_p12 = scmp.ne.s32.totalorder %s7133_s25, 1 }
  0xf7   : > { %1299 = vmatprep.subr.bf16.mxu0 %v6154_v33  ;;  %v7534_v15 = vpack.c.bf16 %v657_v11, %v655_v10  ;;  %v6213_v16 = vld [vmem:[%s7405_s0 + $0x14] ss:$24 sps:$4 sm:$0xff]   ;;  %v6211_v18 = vld [vmem:[%s7405_s0 + $0x10] ss:$24 sps:$4 sm:$0xff]   ;;  %v6216_v21 = vld [vmem:[%s7405_s0 + $0x44] ss:$24 sps:$4 sm:$0xff]  }
  0xf8   : > { %v661_v20 = vld [vmem:[#allocation13 + $0x30] sm:$0xff]  ;;  %v6214_v22 = vld [vmem:[%s7405_s0 + $0x40] ss:$24 sps:$4 sm:$0xff]   ;;  %v6222_v26 = vld [vmem:[%s7405_s0 + $0xa4] ss:$24 sps:$4 sm:$0xff]  }
  0xf9   : > { %1353 = vmatpush1.bf16.msra.mxu1 %v6153_v34  ;;  %v6219_v23 = vld [vmem:[%s7405_s0 + $0x74] ss:$24 sps:$4 sm:$0xff]   ;;  %v685_v24 = vpack.c.bf16 %v661_v20, %v659_v19  ;;  %v6217_v25 = vld [vmem:[%s7405_s0 + $0x70] ss:$24 sps:$4 sm:$0xff]   ;;  %v6220_v27 = vld [vmem:[%s7405_s0 + $0xa0] ss:$24 sps:$4 sm:$0xff]  }
  0xfa   : > { %1354 = vmatprep.subr.bf16.mxu1 %v6157_v35  ;;  %1300 = vmatpush1.bf16.msra.mxu0 %v6156_v36  ;;  %v6225_v28 = vld [vmem:[%s7405_s0 + $0xd4] ss:$24 sps:$4 sm:$0xff]   ;;  %v6223_v29 = vld [vmem:[%s7405_s0 + $0xd0] ss:$24 sps:$4 sm:$0xff]   ;;  %v6228_v30 = vld [vmem:[%s7405_s0 + $0x104] ss:$24 sps:$4 sm:$0xff]  }
  0xfb   : > { %1301 = vmatprep.subr.bf16.mxu0 %v6160_v37  ;;  %v6226_v31 = vld [vmem:[%s7405_s0 + $0x100] ss:$24 sps:$4 sm:$0xff]   ;;  %v6231_v32 = vld [vmem:[%s7405_s0 + $0x134] ss:$24 sps:$4 sm:$0xff]   ;;  %v6229_v33 = vld [vmem:[%s7405_s0 + $0x130] ss:$24 sps:$4 sm:$0xff]  }
  0xfc   : > { %v6234_v34 = vld [vmem:[%s7405_s0 + $0x164] ss:$24 sps:$4 sm:$0xff]   ;;  %v6232_v35 = vld [vmem:[%s7405_s0 + $0x160] ss:$24 sps:$4 sm:$0xff]   ;;  %v6237_v36 = vld [vmem:[%s7405_s0 + $0x194] ss:$24 sps:$4 sm:$0xff]  }
  0xfd   : > { %1355 = vmatpush1.bf16.msra.mxu1 %v6159_v38  ;;  %v6235_v37 = vld [vmem:[%s7405_s0 + $0x190] ss:$24 sps:$4 sm:$0xff]   ;;  %v6240_v38 = vld [vmem:[%s7405_s0 + $0x1c4] ss:$24 sps:$4 sm:$0xff]  }
  0xfe   : > { %1356 = vmatprep.subr.bf16.mxu1 %v6163_v39  ;;  %1302 = vmatpush1.bf16.msra.mxu0 %v6162_v40  ;;  %v6238_v39 = vld [vmem:[%s7405_s0 + $0x1c0] ss:$24 sps:$4 sm:$0xff]   ;;  %v6243_v40 = vld [vmem:[%s7405_s0 + $0x1f4] ss:$24 sps:$4 sm:$0xff]  }
  0xff   : > { %1303 = vmatprep.subr.bf16.mxu0 %v6166_v41  ;;  %v6241_v41 = vld [vmem:[%s7405_s0 + $0x1f0] ss:$24 sps:$4 sm:$0xff]  }
 0x100   : > { %v669_v55 = vld [vmem:[%s7439_s17 + $0x10] sm:$0xff] }
 0x101   : > { %1357 = vmatpush1.bf16.msra.mxu1 %v6165_v42  ;;  %v6246_v42 = vld [vmem:[%s7405_s0 + $0x224] ss:$24 sps:$4 sm:$0xff]  }
 0x102   : > { %1358 = vmatprep.subr.bf16.mxu1 %v6169_v43  ;;  %1304 = vmatpush1.bf16.msra.mxu0 %v6168_v44  ;;  %v6244_v43 = vld [vmem:[%s7405_s0 + $0x220] ss:$24 sps:$4 sm:$0xff]   ;;  %v6249_v44 = vld [vmem:[%s7405_s0 + $0x254] ss:$24 sps:$4 sm:$0xff]  }
 0x103   : > { %1305 = vmatprep.subr.bf16.mxu0 %v6172_v45  ;;  %v6247_v45 = vld [vmem:[%s7405_s0 + $0x250] ss:$24 sps:$4 sm:$0xff]  }
 0x105   : > { %1359 = vmatpush1.bf16.msra.mxu1 %v6171_v46  ;;  %v6252_v46 = vld [vmem:[%s7405_s0 + $0x284] ss:$24 sps:$4 sm:$0xff]  }
 0x106   : > { %1360 = vmatprep.subr.bf16.mxu1 %v6175_v47  ;;  %1306 = vmatpush1.bf16.msra.mxu0 %v6174_v48  ;;  %v6250_v47 = vld [vmem:[%s7405_s0 + $0x280] ss:$24 sps:$4 sm:$0xff]   ;;  %v6255_v48 = vld [vmem:[%s7405_s0 + $0x2b4] ss:$24 sps:$4 sm:$0xff]  }
 0x107   : > { %1307 = vmatprep.subr.bf16.mxu0 %v6178_v49  ;;  %v6253_v49 = vld [vmem:[%s7405_s0 + $0x2b0] ss:$24 sps:$4 sm:$0xff]  }
 0x109   : > { %1361 = vmatpush1.bf16.msra.mxu1 %v6177_v50  ;;  %v6258_v50 = vld [vmem:[%s7405_s0 + $0x2e4] ss:$24 sps:$4 sm:$0xff]  }
 0x10a   : > { %1362 = vmatprep.subr.bf16.mxu1 %v6181_v51  ;;  %1308 = vmatpush1.bf16.msra.mxu0 %v6180_v52  ;;  %v6256_v51 = vld [vmem:[%s7405_s0 + $0x2e0] ss:$24 sps:$4 sm:$0xff]   ;;  %v783_v52 = vlaneseq  ;;  %s7045_s0 = smov 64  }
 0x10b   : > { %1309 = vmatprep.subr.bf16.mxu0 %v6184_v53 }
 0x10c   : > { %v7577_v53 = vshrl.u32 %v783_v52, 7 }
 0x10d   : > { %1363 = vmatpush1.bf16.msra.mxu1 %v6183_v56  ;;  %v667_v56 = vld [vmem:[%s7439_s17] sm:$0xff] }
 0x10e   : > { %1364 = vmatprep.subr.bf16.mxu1 %v6187_v58  ;;  %1310 = vmatpush1.bf16.msra.mxu0 %v6186_v59  ;;  %v7580_v54 = vsub.s32 0, %v7577_v53  ;;  %v668_v58 = vld [vmem:[%s7439_s17 + $0x8] sm:$0xff] }
 0x10f   : > { %1311 = vmatprep.subr.bf16.mxu0 %v6190_v60 }
 0x110   : > { %v794_v59 = vrot.slane %v669_v55, %v7580_v54  ;;  %v786_v60 = vrot.slane %v667_v56, %v7580_v54 }
 0x111   : > { %1365 = vmatpush1.bf16.msra.mxu1 %v6189_v61 }
 0x112   : > { %1366 = vmatprep.subr.bf16.mxu1 %v6193_v62  ;;  %1312 = vmatpush1.bf16.msra.mxu0 %v6192_v63  ;;  %v790_v63 = vrot.slane %v668_v58, %v7580_v54 }
 0x113   : > { %1313 = vmatprep.subr.bf16.mxu0 %v6196_v0 }
 0x115   : > { %1367 = vmatpush1.bf16.msra.mxu1 %v6195_v1 }
 0x116   : > { %1368 = vmatprep.subr.bf16.mxu1 %v6199_v2  ;;  %1314 = vmatpush1.bf16.msra.mxu0 %v6198_v3 }
 0x117   : > { %1315 = vmatprep.subr.bf16.mxu0 %v6202_v4 }
 0x119   : > { %1369 = vmatpush1.bf16.msra.mxu1 %v6201_v5 }
 0x11a   : > { %1370 = vmatprep.subr.bf16.mxu1 %v6205_v7  ;;  %1316 = vmatpush1.bf16.msra.mxu0 %v6204_v6 }
 0x11b   : > { %1317 = vmatprep.subr.bf16.mxu0 %v6208_v9 }
 0x11d   : > { %1371 = vmatpush1.bf16.msra.mxu1 %v6207_v8 }
 0x11e   : > { %1318 = vmatpush1.bf16.msra.mxu0 %v6210_v14 }
 0x11f   : > { %1393 = vmatprep.subr.bf16.mxu0 %v6213_v16 }
 0x120   : > { %1373 = vmatmul.mubr.bf16.vlgmr.msra.gmra.mrb[0].mxu1 %v7534_v15 }
 0x121   : > { %1382 = vmatprep.mubr.bf16.mxu1 %v7537_v17  ;;  %1320 = vmatmul.mubr.bf16.vlgmr.msra.gmra.mrb[0].mxu0 %v7534_v15 }
 0x122   : > { %1329 = vmatprep.mubr.bf16.mxu0 %v7537_v17  ;;  %1394 = vmatpush1.bf16.msra.mxu0 %v6211_v18 }
 0x123   : > { %1395 = vmatprep.subr.bf16.mxu0 %v6216_v21 }
 0x126   : > { %1396 = vmatpush1.bf16.msra.mxu0 %v6214_v22 }
 0x127   : > { %1397 = vmatprep.subr.bf16.mxu0 %v6219_v23 }
 0x128   : > { %1383 = vmatmul.mubr.bf16.gmra.mrb[4].mxu1 %v685_v24 }
 0x129   : > { %1330 = vmatmul.mubr.bf16.gmra.mrb[4].mxu0 %v685_v24 }
 0x12a   : > { %1398 = vmatpush1.bf16.msra.mxu0 %v6217_v25  ;;  %1425 = vmatprep.mubr.bf16.mxu0 %v7513_v57  ;;  %v670_v57 = vld [vmem:[%s7439_s17 + $0x18] sm:$0xff] }
 0x12b   : > { %1399 = vmatprep.subr.bf16.mxu0 %v6222_v26  ;;  %v798_v62 = vrot.slane %v670_v57, %v7580_v54 }
 0x12e   : > { %1400 = vmatpush1.bf16.msra.mxu0 %v6220_v27 }
 0x12f   : > { %1401 = vmatprep.subr.bf16.mxu0 %v6225_v28 }
 0x132   : > { %1402 = vmatpush1.bf16.msra.mxu0 %v6223_v29 }
 0x133   : > { %1403 = vmatprep.subr.bf16.mxu0 %v6228_v30 }
 0x136   : > { %1404 = vmatpush1.bf16.msra.mxu0 %v6226_v31 }
 0x137   : > { %1405 = vmatprep.subr.bf16.mxu0 %v6231_v32 }
 0x13a   : > { %1406 = vmatpush1.bf16.msra.mxu0 %v6229_v33 }
 0x13b   : > { %1407 = vmatprep.subr.bf16.mxu0 %v6234_v34 }
 0x13e   : > { %1408 = vmatpush1.bf16.msra.mxu0 %v6232_v35 }
 0x13f   : > { %1409 = vmatprep.subr.bf16.mxu0 %v6237_v36 }
 0x142   : > { %1410 = vmatpush1.bf16.msra.mxu0 %v6235_v37 }
 0x143   : > { %1411 = vmatprep.subr.bf16.mxu0 %v6240_v38 }
 0x146   : > { %1412 = vmatpush1.bf16.msra.mxu0 %v6238_v39 }
 0x147   : > { %1413 = vmatprep.subr.bf16.mxu0 %v6243_v40 }
 0x14a   : > { %1414 = vmatpush1.bf16.msra.mxu0 %v6241_v41 }
 0x14b   : > { %1415 = vmatprep.subr.bf16.mxu0 %v6246_v42 }
 0x14e   : > { %1416 = vmatpush1.bf16.msra.mxu0 %v6244_v43 }
 0x14f   : > { %1417 = vmatprep.subr.bf16.mxu0 %v6249_v44 }
 0x152   : > { %1418 = vmatpush1.bf16.msra.mxu0 %v6247_v45 }
 0x153   : > { %1419 = vmatprep.subr.bf16.mxu0 %v6252_v46 }
 0x156   : > { %1420 = vmatpush1.bf16.msra.mxu0 %v6250_v47 }
 0x157   : > { %1421 = vmatprep.subr.bf16.mxu0 %v6255_v48 }
 0x15a   : > { %1422 = vmatpush1.bf16.msra.mxu0 %v6253_v49  ;;  %v671_v49 = vld [vmem:[%s7439_s17 + $0x20] sm:$0xff] }
 0x15b   : > { %1423 = vmatprep.subr.bf16.mxu0 %v6258_v50  ;;  %v672_v50 = vld [vmem:[%s7439_s17 + $0x28] sm:$0xff] }
 0x15c   : > { %v806_v52 = vrot.slane %v672_v50, %v7580_v54 }
 0x15e   : > { %1424 = vmatpush1.bf16.msra.mxu0 %v6256_v51  ;;  %v802_v51 = vrot.slane %v671_v49, %v7580_v54 }
 0x161   : > { %1426 = vmatmul.mubr.bf16.vlgmr.msra.gmra.mrb[8].mxu0 %v7534_v15 }
 0x162   : > { %1435 = vmatprep.mubr.bf16.mxu0 %v7537_v17 }
 0x169   : > { %1436 = vmatmul.mubr.bf16.gmra.mrb[12].mxu0 %v685_v24 }
 0x1f3   : > { %v1374_v61 = vpop.f32.mrb[0].mxu1 }
 0x1f4   : > { %v1376_v0 = vpop.f32.mrb[1].mxu1  ;;  %v1321_v2 = vpop.f32.mrb[0].mxu0  ;;  %v1375_v3 = vadd.f32 %v1374_v61, %v794_v59 }
 0x1f5   : > { %v1378_v1 = vpop.f32.mrb[2].mxu1  ;;  %v1322_v5 = vadd.f32 %v1321_v2, %v786_v60  ;;  %v1323_v7 = vpop.f32.mrb[1].mxu0  ;;  %v1377_v8 = vadd.f32 %v1376_v0, %v798_v62 }
 0x1f6   : > { %v1379_v4 = vadd.f32 %v1378_v1, %v794_v59  ;;  %v1380_v6 = vpop.f32.mrb[3].mxu1  ;;  %v1324_v10 = vadd.f32 %v1323_v7, %v790_v63  ;;  %v1325_v11 = vpop.f32.mrb[2].mxu0 }
 0x1f7   : > { %v1381_v9 = vadd.f32 %v1380_v6, %v798_v62  ;;  %v1446_v13 = vmul.f32 0.125, %v1322_v5  ;;  %v1326_v14 = vadd.f32 %v1325_v11, %v786_v60  ;;  %v1327_v15 = vpop.f32.mrb[3].mxu0 }
 0x1f8   : > { %v1488_v12 = vpack.c.bf16 %v1379_v4, %v1375_v3  ;;  %v1447_v17 = vmul.f32 0.125, %v1324_v10  ;;  %v1328_v18 = vadd.f32 %v1327_v15, %v790_v63 }
 0x1f9   : > { %v7590_v16 = vpack.c.bf16 %v1381_v9, %v1377_v8  ;;  %v1448_v19 = vmul.f32 0.125, %v1326_v14 }
 0x1fa   : > { %1664 = vrot.lane.b32.xlu0 %v1488_v12, %s7045_s0  ;;  %5975 = vmatprep.subr.msk.bf16.mxu0 %vm1492_vm0, %v1488_v12  ;;  %v1500_v20 = vsel %vm1492_vm0, %v1488_v12, 0  ;;  %v1449_v21 = vmul.f32 0.125, %v1328_v18  ;;  %v7633_v18 = vld [vmem:[%s8661_s16] sm:$0xff] }
 0x1fb   : > { %v1384_v22 = vpop.f32.mrb[4].mxu1  ;;  %5848 = vmatpush3.bf16.xpose.msra.mxu0 %v1500_v20  ;;  %v1486_v24 = vpack.c.bf16 %v1448_v19, %v1446_v13  ;;  %v7638_v20 = vld [vmem:[%s8661_s16 + $0x10] sm:$0xff] }
 0x1fc   : > { %v1386_v23 = vpop.f32.mrb[5].mxu1  ;;  %v7595_v25 = vpack.c.bf16 %v1449_v21, %v1447_v17  ;;  %v1331_v27 = vpop.f32.mrb[4].mxu0  ;;  %v1385_v28 = vadd.f32 %v1384_v22, %v794_v59  ;;  %v7643_v22 = vld [vmem:[%s8661_s16 + $0x8] sm:$0xff] }
 0x1fd   : > { %v1388_v26 = vpop.f32.mrb[6].mxu1  ;;  %v1332_v30 = vadd.f32 %v1331_v27, %v786_v60  ;;  %v1333_v32 = vpop.f32.mrb[5].mxu0  ;;  %1658 = vrot.lane.b32.xlu1 %v1486_v24, %s7045_s0  ;;  %5851 = vmatprep.mubr.msk.bf16.mxu0 %vm1492_vm0, %v1486_v24  ;;  %v1387_v33 = vadd.f32 %v1386_v23, %v798_v62 }
 0x1fe   : > { %v1389_v29 = vadd.f32 %v1388_v26, %v794_v59  ;;  %v1390_v31 = vpop.f32.mrb[7].mxu1  ;;  %v1334_v35 = vadd.f32 %v1333_v32, %v790_v63  ;;  %v1335_v36 = vpop.f32.mrb[6].mxu0 }
 0x1ff   : > { %v1391_v34 = vadd.f32 %v1390_v31, %v798_v62  ;;  %v1450_v38 = vmul.f32 0.125, %v1332_v30  ;;  %v1336_v39 = vadd.f32 %v1335_v36, %v786_v60  ;;  %v1337_v40 = vpop.f32.mrb[7].mxu0  ;;  %v7652_v30 = vld [vmem:[%s8661_s16 + $0x18] sm:$0xff] }
 0x200   : > { %v1489_v37 = vpack.c.bf16 %v1389_v29, %v1385_v28  ;;  %v1451_v42 = vmul.f32 0.125, %v1334_v35  ;;  %v1338_v43 = vadd.f32 %v1337_v40, %v790_v63 }
 0x201   : > { %v7599_v41 = vpack.c.bf16 %v1391_v34, %v1387_v33  ;;  %v1452_v44 = vmul.f32 0.125, %v1336_v39 }
 0x202   : > { %1666 = vrot.lane.b32.xlu0 %v1489_v37, %s7045_s0  ;;  %5976 = vmatprep.subr.msk.bf16.mxu0 %vm1492_vm0, %v1489_v37  ;;  %v1503_v45 = vsel %vm1492_vm0, %v1489_v37, 0  ;;  %v1453_v46 = vmul.f32 0.125, %v1338_v43 }
 0x203   : > { %5850 = vmatpush3.bf16.xpose.msra.mxu0 %v1503_v45  ;;  %v1487_v47 = vpack.c.bf16 %v1452_v44, %v1450_v38 }
 0x204   : > { %v7604_v48 = vpack.c.bf16 %v1453_v46, %v1451_v42 }
 0x205   : > { %1660 = vrot.lane.b32.xlu1 %v1487_v47, %s7045_s0 }
 0x20a   : > { %5852 = vmatmul.mubr.msk.bf16.vlgmr.msra.gmra.mrb[16].mxu0 %vm1492_vm0, %v1487_v47 }
 0x234   : > { %v1427_v55 = vpop.f32.mrb[8].mxu0 }
 0x235   : > { %v1428_v56 = vadd.f32 %v1427_v55, %v802_v51  ;;  %v1429_v57 = vpop.f32.mrb[9].mxu0 }
 0x236   : > { %v1430_v58 = vadd.f32 %v1429_v57, %v806_v52  ;;  %v1431_v59 = vpop.f32.mrb[10].mxu0 }
 0x237   : > { %v1432_v60 = vadd.f32 %v1431_v59, %v802_v51  ;;  %v1433_v61 = vpop.f32.mrb[11].mxu0 }
 0x238   : > { %v1434_v62 = vadd.f32 %v1433_v61, %v806_v52 }
 0x239   : > { %v7612_v63 = vpack.c.bf16 %v1432_v60, %v1428_v56 }
 0x23a   : > { %v7614_v0 = vpack.c.bf16 %v1434_v62, %v1430_v58 }
 0x23b   : > { %5855 = vmatprep.subr.bf16.mxu1 %v7612_v63 }
 0x23c   : > { %v1437_v1 = vpop.f32.mrb[12].mxu0  ;;  %5856 = vmatpush3.bf16.msra.mxu1 %v7612_v63 }
 0x23d   : > { %v1438_v2 = vadd.f32 %v1437_v1, %v802_v51  ;;  %v1439_v3 = vpop.f32.mrb[13].mxu0 }
 0x23e   : > { %v1440_v4 = vadd.f32 %v1439_v3, %v806_v52  ;;  %v1441_v5 = vpop.f32.mrb[14].mxu0 }
 0x23f   : > { %v1442_v6 = vadd.f32 %v1441_v5, %v802_v51  ;;  %v1443_v7 = vpop.f32.mrb[15].mxu0 }
 0x240   : > { %v1444_v8 = vadd.f32 %v1443_v7, %v806_v52 }
 0x241   : > { %v7618_v9 = vpack.c.bf16 %v1442_v6, %v1438_v2 }
 0x242   : > { %v7620_v10 = vpack.c.bf16 %v1444_v8, %v1440_v4 }
 0x243   : > { %5857 = vmatprep.subr.bf16.mxu1 %v7618_v9 }
 0x244   : > { %5858 = vmatpush3.bf16.msra.mxu1 %v7618_v9 }
 0x26c   : > { %v1665_v11 = vpop.permute.xlu0 %1664 }
 0x26d   : > { %5977 = vmatprep.subr.msk.bf16.mxu0 %vm1492_vm0, %v1665_v11  ;;  %v1675_v12 = vsel %vm1492_vm0, %v1665_v11, 0 }
 0x26e   : > { %5864 = vmatpush3.bf16.xpose.msra.mxu0 %v1675_v12 }
 0x26f   : > { %v1659_v13 = vpop.permute.xlu1 %1658 }
 0x270   : > { %5867 = vmatprep.mubr.msk.bf16.mxu0 %vm1492_vm0, %v1659_v13 }
 0x274   : > { %v1667_v14 = vpop.permute.xlu0 %1666 }
 0x275   : > { %5978 = vmatprep.subr.msk.bf16.mxu0 %vm1492_vm0, %v1667_v14  ;;  %v1678_v15 = vsel %vm1492_vm0, %v1667_v14, 0 }
 0x276   : > { %5866 = vmatpush3.bf16.xpose.msra.mxu0 %v1678_v15 }
 0x277   : > { %v1661_v17 = vpop.permute.xlu1 %1660 }
 0x27d   : > { %5868 = vmatmul.mubr.msk.bf16.vlgmr.msra.gmra.mrb[20].mxu0 %vm1492_vm0, %v1661_v17 }
 0x2dd   : > { %v5853_v19 = vpop.f32.mrb[16].mxu0 }
 0x2de   : > { %v1539_v21 = vpop.f32.mrb[17].mxu0  ;;  %v1548_v27 = vadd.f32 %v5853_v19, %v7638_v20 }
 0x2df   : > { %v1540_v23 = vadd.f32 %v1539_v21, %v7633_v18  ;;  %v5854_v24 = vpop.f32.mrb[18].mxu0 }
 0x2e0   : > { %v1542_v26 = vpop.f32.mrb[19].mxu0  ;;  %v1551_v32 = vadd.f32 %v5854_v24, %v7652_v30  ;;  %v1561_v33 = vsel %vm1554_vm1, %v1548_v27, -inf }
 0x2e1   : > { %v1543_v28 = vadd.f32 %v1542_v26, %v7643_v22  ;;  %v1555_v29 = vsel %vm1554_vm1, %v1540_v23, -inf }
 0x2e2   : > { %1556 = vmax.xlane.f32.xlu0 %v1555_v29  ;;  %v1564_v34 = vsel %vm1554_vm1, %v1551_v32, -inf }
 0x2e3   : > { %v1558_v31 = vsel %vm1554_vm1, %v1543_v28, -inf }
 0x2e4   : > { %1559 = vmax.xlane.f32.xlu1 %v1558_v31 }
 0x2e6   : > { %1562 = vmax.xlane.f32.xlu0 %v1561_v33 }
 0x2ea   : > { %1565 = vmax.xlane.f32.xlu0 %v1564_v34 }
 0x350   : > { %v5869_v35 = vpop.f32.mrb[20].mxu0 }
 0x351   : > { %v1714_v36 = vpop.f32.mrb[21].mxu0  ;;  %v1723_v40 = vadd.f32 %v5869_v35, %v7638_v20 }
 0x352   : > { %v1715_v37 = vadd.f32 %v1714_v36, %v7633_v18  ;;  %v5870_v38 = vpop.f32.mrb[22].mxu0 }
 0x353   : > { %v1717_v39 = vpop.f32.mrb[23].mxu0  ;;  %v1726_v44 = vadd.f32 %v5870_v38, %v7652_v30  ;;  %v1735_v46 = vsel %vm1554_vm1, %v1723_v40, -inf }
 0x354   : > { %v1718_v42 = vadd.f32 %v1717_v39, %v7643_v22  ;;  %v1729_v43 = vsel %vm1554_vm1, %v1715_v37, -inf }
 0x355   : > { %1730 = vmax.xlane.f32.xlu1 %v1729_v43  ;;  %v1738_v47 = vsel %vm1554_vm1, %v1726_v44, -inf }
 0x356   : > { %v1732_v45 = vsel %vm1554_vm1, %v1718_v42, -inf }
 0x357   : > { %1733 = vmax.xlane.f32.xlu0 %v1732_v45 }
 0x359   : > { %1736 = vmax.xlane.f32.xlu1 %v1735_v46 }
 0x35b   : > { %1739 = vmax.xlane.f32.xlu0 %v1738_v47 }
 0x36f   : > { %v1557_v49 = vpop.xlane.xlu0 %1556 }
 0x370   : > { %v1567_v50 = vsub.f32 %v1540_v23, %v1557_v49 }
 0x371   : > { %v1560_v51 = vpop.xlane.xlu1 %1559 }
 0x372   : > { %v1571_v56 = vmul.f32 1.442695, %v1567_v50  ;;  %v1568_v57 = vsub.f32 %v1543_v28, %v1560_v51 }
 0x373   : > { %v1563_v52 = vpop.xlane.xlu0 %1562 }
 0x374   : > { %v1569_v55 = vsub.f32 %v1548_v27, %v1563_v52  ;;  %v1573_v61 = vmul.f32 1.442695, %v1568_v57 }
 0x376   : > { %v1575_v58 = vmul.f32 1.442695, %v1569_v55 }
 0x377   : > { %v1566_v59 = vpop.xlane.xlu0 %1565 }
 0x378   : > { %6601 = vpow2.f32 %v1575_v58  ;;  %v1570_v60 = vsub.f32 %v1551_v32, %v1566_v59 }
 0x379   : > { %6603 = vpow2.f32 %v1571_v56 }
 0x37a   : > { %v1577_v62 = vmul.f32 1.442695, %v1570_v60 }
 0x37c   : > { %6605 = vpow2.f32 %v1577_v62 }
 0x37d   : > { %6607 = vpow2.f32 %v1573_v61 }
 0x382   : > { %v6602_v1 = vpop.eup %6601 }
 0x383   : > { %v1585_v2 = vsel %vm1554_vm1, %v6602_v1, 0.0  ;;  %v6604_v3 = vpop.eup %6603 }
 0x384   : > { %1586 = vadd.xlane.f32.xlu1 %v1585_v2  ;;  %v1579_v5 = vsel %vm1554_vm1, %v6604_v3, 0.0 }
 0x386   : > { %v6606_v4 = vpop.eup %6605 }
 0x387   : > { %v1588_v6 = vsel %vm1554_vm1, %v6606_v4, 0.0  ;;  %v6608_v7 = vpop.eup %6607 }
 0x388   : > { %1580 = vadd.xlane.f32.xlu1 %v1579_v5  ;;  %1589 = vadd.xlane.f32.xlu0 %v1588_v6  ;;  %v1582_v8 = vsel %vm1554_vm1, %v6608_v7, 0.0 }
 0x38c   : > { %1583 = vadd.xlane.f32.xlu0 %v1582_v8 }
 0x3e2   : > { %v1731_v11 = vpop.xlane.xlu1 %1730 }
 0x3e3   : > { %v1741_v12 = vsub.f32 %v1715_v37, %v1731_v11 }
 0x3e4   : > { %v1734_v13 = vpop.xlane.xlu0 %1733 }
 0x3e5   : > { %v1742_v15 = vsub.f32 %v1718_v42, %v1734_v13  ;;  %v1745_v19 = vmul.f32 1.442695, %v1741_v12 }
 0x3e6   : > { %v1737_v14 = vpop.xlane.xlu1 %1736 }
 0x3e7   : > { %v1743_v17 = vsub.f32 %v1723_v40, %v1737_v14  ;;  %v1747_v26 = vmul.f32 1.442695, %v1742_v15  ;;  %v1851_v14 = vsel %vm1492_vm0, %v7590_v16, 0 }
 0x3e8   : > { %v1740_v21 = vpop.xlane.xlu0 %1739 }
 0x3e9   : > { %v1749_v23 = vmul.f32 1.442695, %v1743_v17  ;;  %v1744_v24 = vsub.f32 %v1726_v44, %v1740_v21  ;;  %v1854_v17 = vsel %vm1492_vm0, %v7599_v41, 0 }
 0x3eb   : > { %6609 = vpow2.f32 %v1749_v23  ;;  %v1751_v27 = vmul.f32 1.442695, %v1744_v24 }
 0x3ec   : > { %6611 = vpow2.f32 %v1745_v19 }
 0x3ed   : > { %6613 = vpow2.f32 %v1751_v27 }
 0x3ee   : > { %6615 = vpow2.f32 %v1747_v26 }
 0x3f5   : > { %v7670_v28 = vpop.eup %6609 }
 0x3f6   : > { %v7672_v29 = vpop.eup %6611  ;;  %v1759_v31 = vsel %vm1554_vm1, %v7670_v28, 0.0 }
 0x3f7   : > { %v6614_v32 = vpop.eup %6613  ;;  %1760 = vadd.xlane.f32.xlu1 %v1759_v31  ;;  %v1753_v35 = vsel %vm1554_vm1, %v7672_v29, 0.0 }
 0x3f8   : > { %v1762_v33 = vsel %vm1554_vm1, %v6614_v32, 0.0  ;;  %v6616_v34 = vpop.eup %6615 }
 0x3f9   : > { %1763 = vadd.xlane.f32.xlu0 %v1762_v33  ;;  %v1756_v36 = vsel %vm1554_vm1, %v6616_v34, 0.0 }
 0x3fb   : > { %1754 = vadd.xlane.f32.xlu1 %v1753_v35 }
 0x3fd   : > { %1757 = vadd.xlane.f32.xlu0 %v1756_v36 }
 0x40c   : > { %1777 = vrot.lane.b32.xlu1 %v7612_v63, %s7045_s0 }
 0x410   : > { %2014 = vrot.lane.b32.xlu1 %v7590_v16, %s7045_s0 }
 0x411   : > { %v1587_v37 = vpop.xlane.xlu1 %1586 }
 0x413   : > { %1779 = vrot.lane.b32.xlu0 %v7618_v9, %s7045_s0 }
 0x414   : > { %2016 = vrot.lane.b32.xlu1 %v7599_v41, %s7045_s0 }
 0x415   : > { %v1581_v38 = vpop.xlane.xlu1 %1580  ;;  %v1590_v39 = vpop.xlane.xlu0 %1589 }
 0x416   : > { %6617 = vrcp.f32 %v1590_v39 }
 0x417   : > { %2008 = vrot.lane.b32.xlu0 %v7595_v25, %s7045_s0  ;;  %6619 = vrcp.f32 %v1581_v38 }
 0x418   : > { %2010 = vrot.lane.b32.xlu1 %v7604_v48, %s7045_s0  ;;  %6621 = vrcp.f32 %v1587_v37 }
 0x419   : > { %v1584_v63 = vpop.xlane.xlu0 %1583 }
 0x41a   : > { %6623 = vrcp.f32 %v1584_v63 }
 0x420   : > { %v6618_v40 = vpop.eup %6617 }
 0x421   : > { %v6620_v42 = vpop.eup %6619  ;;  %v1598_v44 = vmul.f32 %v6618_v40, %v6606_v4 }
 0x422   : > { %v6622_v43 = vpop.eup %6621  ;;  %v1595_v45 = vmul.f32 %v6620_v42, %v6604_v3 }
 0x423   : > { %v1597_v47 = vmul.f32 %v6622_v43, %v6602_v1 }
 0x424   : > { %v6624_v9 = vpop.eup %6623 }
 0x425   : > { %v1596_v46 = vmul.f32 %v6624_v9, %v6608_v7  ;;  %v1600_v50 = vpack.c.bf16 %v1598_v44, %v1597_v47 }
 0x427   : > { %v1599_v49 = vpack.c.bf16 %v1596_v46, %v1595_v45 }
 0x429   : > { %5859 = vmatprep.mubr.msk.bf16.mxu1 %vm1554_vm1, %v1599_v49 }
 0x42a   : > { %5860 = vmatmul.mubr.msk.bf16.vlgmr.msra.gmra.mrb[8].mxu1 %vm1554_vm1, %v1600_v50 }
 0x484   : > { %v1761_v51 = vpop.xlane.xlu1 %1760 }
 0x486   : > { %v1764_v52 = vpop.xlane.xlu0 %1763 }
 0x487   : > { %6625 = vrcp.f32 %v1764_v52 }
 0x488   : > { %v1755_v55 = vpop.xlane.xlu1 %1754 }
 0x489   : > { %6627 = vrcp.f32 %v1755_v55 }
 0x48a   : > { %6629 = vrcp.f32 %v1761_v51  ;;  %v1758_v56 = vpop.xlane.xlu0 %1757 }
 0x48b   : > { %6631 = vrcp.f32 %v1758_v56 }
 0x48c   : > { %v1778_v57 = vpop.permute.xlu1 %1777 }
 0x48d   : > { %5871 = vmatprep.subr.bf16.mxu1 %v1778_v57 }
 0x48e   : > { %5872 = vmatpush3.bf16.msra.mxu1 %v1778_v57  ;;  %v1780_v58 = vpop.permute.xlu0 %1779 }
 0x48f   : > { %5873 = vmatprep.subr.bf16.mxu1 %v1780_v58 }
 0x490   : > { %v2015_v59 = vpop.permute.xlu1 %2014 }
 0x491   : > { %v2025_v60 = vsel %vm1492_vm0, %v2015_v59, 0  ;;  %5981 = vmatprep.subr.msk.bf16.mxu0 %vm1492_vm0, %v2015_v59  ;;  %v6626_v61 = vpop.eup %6625 }
 0x492   : > { %5874 = vmatpush3.bf16.msra.mxu1 %v1780_v58  ;;  %5896 = vmatpush3.bf16.xpose.msra.mxu0 %v2025_v60  ;;  %v2009_v62 = vpop.permute.xlu0 %2008  ;;  %v1772_v5 = vmul.f32 %v6626_v61, %v6614_v32 }
 0x493   : > { %v6628_v1 = vpop.eup %6627  ;;  %5979 = vmatprep.subr.msk.bf16.mxu1 %vm1492_vm0, %v7590_v16  ;;  %5899 = vmatprep.mubr.msk.bf16.mxu0 %vm1492_vm0, %v2009_v62 }
 0x494   : > { %v6630_v2 = vpop.eup %6629  ;;  %v2017_v3 = vpop.permute.xlu1 %2016  ;;  %v1769_v6 = vmul.f32 %v6628_v1, %v7672_v29 }
 0x495   : > { %v6632_v4 = vpop.eup %6631  ;;  %5982 = vmatprep.subr.msk.bf16.mxu0 %vm1492_vm0, %v2017_v3  ;;  %v1771_v8 = vmul.f32 %v6630_v2, %v7670_v28  ;;  %v2028_v12 = vsel %vm1492_vm0, %v2017_v3, 0 }
 0x496   : > { %v1770_v7 = vmul.f32 %v6632_v4, %v6616_v34 }
 0x497   : > { %v1774_v13 = vpack.c.bf16 %v1772_v5, %v1771_v8 }
 0x498   : > { %v1773_v11 = vpack.c.bf16 %v1770_v7, %v1769_v6  ;;  %v2011_v15 = vpop.permute.xlu1 %2010 }
 0x49a   : > { %5875 = vmatprep.mubr.msk.bf16.mxu1 %vm1554_vm1, %v1773_v11  ;;  %5898 = vmatpush3.bf16.xpose.msra.mxu0 %v2028_v12 }
 0x49b   : > { %5876 = vmatmul.mubr.msk.bf16.vlgmr.msra.gmra.mrb[12].mxu1 %vm1554_vm1, %v1774_v13 }
 0x49c   : > { %5880 = vmatpush3.bf16.xpose.msra.mxu1 %v1851_v14  ;;  %5883 = vmatprep.mubr.msk.bf16.mxu1 %vm1492_vm0, %v7595_v25 }
 0x49d   : > { %5980 = vmatprep.subr.msk.bf16.mxu1 %vm1492_vm0, %v7599_v41 }
 0x4a1   : > { %5900 = vmatmul.mubr.msk.bf16.vlgmr.msra.gmra.mrb[24].mxu0 %vm1492_vm0, %v2011_v15 }
 0x4a4   : > { %5882 = vmatpush3.bf16.xpose.msra.mxu1 %v1854_v17 }
 0x4a5   : > { %5887 = vmatprep.subr.bf16.mxu1 %v7614_v0 }
 0x4ab   : > { %5884 = vmatmul.mubr.msk.bf16.vlgmr.msra.gmra.mrb[16].mxu1 %vm1492_vm0, %v7604_v48 }
 0x4ac   : > { %5888 = vmatpush3.bf16.msra.mxu1 %v7614_v0 }
 0x4ad   : > { %5889 = vmatprep.subr.bf16.mxu1 %v7620_v10 }
 0x4b0   : > { %5890 = vmatpush3.bf16.msra.mxu1 %v7620_v10 }
 0x4fd   : > { %v7720_v16 = vpop.f32.mrb[8].mxu1 }
 0x4fe   : > { %v7722_v25 = vpop.f32.mrb[9].mxu1 }
 0x4ff   : > { %v7724_v19 = vpop.f32.mrb[10].mxu1 }
 0x500   : > { %v7726_v21 = vpop.f32.mrb[11].mxu1 }
 0x56e   : > { %v7728_v41 = vpop.f32.mrb[12].mxu1 }
 0x56f   : > { %v7730_v23 = vpop.f32.mrb[13].mxu1 }
 0x570   : > { %v7732_v24 = vpop.f32.mrb[14].mxu1 }
 0x571   : > { %v6090_v48 = vpack.i.bf16 %v7732_v24, %v7728_v41  ;;  %v7736_v26 = vpop.f32.mrb[15].mxu1 }
 0x572   : > { %v6080_v27 = vpack.i.bf16 %v7736_v26, %v7730_v23 }
 0x574   : > { %v5901_v28 = vpop.f32.mrb[24].mxu0 }
 0x575   : > { %v2064_v29 = vpop.f32.mrb[25].mxu0  ;;  %v2073_v44 = vadd.f32 %v5901_v28, %v7638_v20 }
 0x576   : > { %v5902_v31 = vpop.f32.mrb[26].mxu0  ;;  %v2065_v40 = vadd.f32 %v2064_v29, %v7633_v18 }
 0x577   : > { %v2067_v32 = vpop.f32.mrb[27].mxu0  ;;  %v2076_v49 = vadd.f32 %v5902_v31, %v7652_v30 }
 0x578   : > { %v2079_v45 = vsel %vm1554_vm1, %v2065_v40, -inf  ;;  %v2068_v46 = vadd.f32 %v2067_v32, %v7643_v22 }
 0x579   : > { %v2088_v51 = vsel %vm1554_vm1, %v2076_v49, -inf }
 0x57a   : > { %v2082_v50 = vsel %vm1554_vm1, %v2068_v46, -inf }
 0x57e   : > { %v5885_v33 = vpop.f32.mrb[16].mxu1 }
 0x57f   : > { %v1890_v34 = vpop.f32.mrb[17].mxu1  ;;  %v1899_v38 = vadd.f32 %v5885_v33, %v7638_v20 }
 0x580   : > { %v1891_v35 = vadd.f32 %v1890_v34, %v7633_v18  ;;  %v5886_v36 = vpop.f32.mrb[18].mxu1  ;;  %v2085_v18 = vsel %vm1554_vm1, %v2073_v44, -inf }
 0x581   : > { %v1893_v37 = vpop.f32.mrb[19].mxu1  ;;  %v1902_v43 = vadd.f32 %v5886_v36, %v7652_v30  ;;  %v1911_v9 = vsel %vm1554_vm1, %v1899_v38, -inf }
 0x582   : > { %v1894_v39 = vadd.f32 %v1893_v37, %v7643_v22  ;;  %v1905_v63 = vsel %vm1554_vm1, %v1891_v35, -inf }
 0x583   : > { %1906 = vmax.xlane.f32.xlu0 %v1905_v63  ;;  %v1914_v47 = vsel %vm1554_vm1, %v1902_v43, -inf }
 0x584   : > { %v1908_v42 = vsel %vm1554_vm1, %v1894_v39, -inf }
 0x585   : > { %1909 = vmax.xlane.f32.xlu1 %v1908_v42 }
 0x587   : > { %1912 = vmax.xlane.f32.xlu0 %v1911_v9 }
 0x589   : > { %2080 = vmax.xlane.f32.xlu1 %v2079_v45 }
 0x58b   : > { %1915 = vmax.xlane.f32.xlu0 %v1914_v47 }
 0x58d   : > { %2086 = vmax.xlane.f32.xlu1 %v2085_v18 }
 0x58f   : > { %2083 = vmax.xlane.f32.xlu0 %v2082_v50 }
 0x593   : > { %2089 = vmax.xlane.f32.xlu0 %v2088_v51 }
 0x610   : > { %v1907_v20 = vpop.xlane.xlu0 %1906 }
 0x611   : > { %v1917_v2 = vsub.f32 %v1891_v35, %v1907_v20 }
 0x612   : > { %v1910_v52 = vpop.xlane.xlu1 %1909 }
 0x613   : > { %v1918_v5 = vsub.f32 %v1894_v39, %v1910_v52  ;;  %v1921_v11 = vmul.f32 1.442695, %v1917_v2 }
 0x614   : > { %v1913_v55 = vpop.xlane.xlu0 %1912 }
 0x615   : > { %v1919_v22 = vsub.f32 %v1899_v38, %v1913_v55  ;;  %v1923_v12 = vmul.f32 1.442695, %v1918_v5 }
 0x616   : > { %v2081_v56 = vpop.xlane.xlu1 %2080 }
 0x617   : > { %v2091_v57 = vsub.f32 %v2065_v40, %v2081_v56  ;;  %v1925_v1 = vmul.f32 1.442695, %v1919_v22 }
 0x618   : > { %v1916_v58 = vpop.xlane.xlu0 %1915 }
 0x619   : > { %v2095_v59 = vmul.f32 1.442695, %v2091_v57  ;;  %v1920_v61 = vsub.f32 %v1902_v43, %v1916_v58 }
 0x61a   : > { %v2087_v60 = vpop.xlane.xlu1 %2086 }
 0x61b   : > { %6633 = vpow2.f32 %v2095_v59  ;;  %v2093_v62 = vsub.f32 %v2073_v44, %v2087_v60  ;;  %v1927_v6 = vmul.f32 1.442695, %v1920_v61 }
 0x61c   : > { %v2084_v30 = vpop.xlane.xlu0 %2083 }
 0x61d   : > { %v2099_v3 = vmul.f32 1.442695, %v2093_v62  ;;  %v2092_v4 = vsub.f32 %v2068_v46, %v2084_v30 }
 0x61f   : > { %6635 = vpow2.f32 %v2099_v3  ;;  %v2097_v7 = vmul.f32 1.442695, %v2092_v4 }
 0x620   : > { %6637 = vpow2.f32 %v1925_v1  ;;  %v2090_v8 = vpop.xlane.xlu0 %2089 }
 0x621   : > { %6639 = vpow2.f32 %v2097_v7  ;;  %v2094_v13 = vsub.f32 %v2076_v49, %v2090_v8  ;;  %v6259_v7 = vld [vmem:[%s7412_s11] ss:$8 sps:$4 sm:$0xff]   ;;  %v6261_v8 = vld [vmem:[%s7412_s11 + $0x4] ss:$8 sps:$4 sm:$0xff]  }
 0x622   : > { %6641 = vpow2.f32 %v1927_v6  ;;  %2400 = vmatprep.subr.bf16.mxu0 %v6261_v8 }
 0x623   : > { %6643 = vpow2.f32 %v1921_v11  ;;  %v2101_v17 = vmul.f32 1.442695, %v2094_v13  ;;  %v6264_v11 = vld [vmem:[%s7412_s11 + $0x14] ss:$8 sps:$4 sm:$0xff]   ;;  %2401 = vmatpush1.bf16.msra.mxu0 %v6259_v7  ;;  %v6267_v13 = vld [vmem:[%s7412_s11 + $0x24] ss:$8 sps:$4 sm:$0xff]  }
 0x624   : > { %6645 = vpow2.f32 %v1923_v12  ;;  %v6262_v12 = vld [vmem:[%s7412_s11 + $0x10] ss:$8 sps:$4 sm:$0xff]   ;;  %2402 = vmatprep.subr.bf16.mxu0 %v6264_v11 }
 0x625   : > { %v6634_v14 = vpop.eup %6633  ;;  %6647 = vpow2.f32 %v2101_v17  ;;  %v6268_v17 = vld [vmem:[%s7412_s11 + $0x30] ss:$8 sps:$4 sm:$0xff]  }
 0x626   : > { %v2103_v15 = vsel %vm1554_vm1, %v6634_v14, 0.0 }
 0x627   : > { %2104 = vadd.xlane.f32.xlu1 %v2103_v15  ;;  %2403 = vmatpush1.bf16.msra.mxu0 %v6262_v12  ;;  %v6270_v15 = vld [vmem:[%s7412_s11 + $0x34] ss:$8 sps:$4 sm:$0xff]  }
 0x628   : > { %2404 = vmatprep.subr.bf16.mxu0 %v6267_v13 }
 0x629   : > { %v7757_v28 = vpop.eup %6635 }
 0x62a   : > { %v6638_v29 = vpop.eup %6637  ;;  %v2109_v31 = vsel %vm1554_vm1, %v7757_v28, 0.0 }
 0x62b   : > { %v6640_v32 = vpop.eup %6639  ;;  %2110 = vadd.xlane.f32.xlu1 %v2109_v31  ;;  %v1935_v35 = vsel %vm1554_vm1, %v6638_v29, 0.0  ;;  %v6276_v31 = vld [vmem:[%s7412_s11 + $0x54] ss:$8 sps:$4 sm:$0xff]  }
 0x62c   : > { %v2106_v33 = vsel %vm1554_vm1, %v6640_v32, 0.0  ;;  %v6642_v34 = vpop.eup %6641 }
 0x62d   : > { %2107 = vadd.xlane.f32.xlu0 %v2106_v33  ;;  %v6644_v36 = vpop.eup %6643  ;;  %v1938_v37 = vsel %vm1554_vm1, %v6642_v34, 0.0  ;;  %v6279_v33 = vld [vmem:[%s7412_s11 + $0x64] ss:$8 sps:$4 sm:$0xff]  }
 0x62e   : > { %v6646_v38 = vpop.eup %6645  ;;  %v1929_v39 = vsel %vm1554_vm1, %v6644_v36, 0.0 }
 0x62f   : > { %1936 = vadd.xlane.f32.xlu1 %v1935_v35  ;;  %v1932_v63 = vsel %vm1554_vm1, %v6646_v38, 0.0  ;;  %v6648_v40 = vpop.eup %6647  ;;  %v6282_v35 = vld [vmem:[%s7412_s11 + $0x74] ss:$8 sps:$4 sm:$0xff]  }
 0x630   : > { %v2112_v42 = vsel %vm1554_vm1, %v6648_v40, 0.0 }
 0x631   : > { %1939 = vadd.xlane.f32.xlu0 %v1938_v37  ;;  %v6285_v37 = vld [vmem:[%s7412_s11 + $0x84] ss:$8 sps:$4 sm:$0xff]  }
 0x633   : > { %1930 = vadd.xlane.f32.xlu1 %v1929_v39  ;;  %v6288_v39 = vld [vmem:[%s7412_s11 + $0x94] ss:$8 sps:$4 sm:$0xff]  }
 0x635   : > { %1933 = vadd.xlane.f32.xlu0 %v1932_v63  ;;  %v6286_v63 = vld [vmem:[%s7412_s11 + $0x90] ss:$8 sps:$4 sm:$0xff]  }
 0x639   : > { %2113 = vadd.xlane.f32.xlu0 %v2112_v42  ;;  %v6289_v42 = vld [vmem:[%s7412_s11 + $0xa0] ss:$8 sps:$4 sm:$0xff]  }
 0x644   : > { %2127 = vrot.lane.b32.xlu1 %v7614_v0, %s7045_s0 }
 0x64f   : > { %2129 = vrot.lane.b32.xlu0 %v7620_v10, %s7045_s0 }
 0x6b4   : > { %v2105_v43 = vpop.xlane.xlu1 %2104 }
 0x6b5   : > { %6649 = vrcp.f32 %v2105_v43  ;;  %v6294_v43 = vld [vmem:[%s7412_s11 + $0xb4] ss:$8 sps:$4 sm:$0xff]  }
 0x6b8   : > { %v2111_v9 = vpop.xlane.xlu1 %2110 }
 0x6ba   : > { %v2108_v44 = vpop.xlane.xlu0 %2107 }
 0x6bb   : > { %6651 = vrcp.f32 %v2108_v44  ;;  %v6297_v44 = vld [vmem:[%s7412_s11 + $0xc4] ss:$8 sps:$4 sm:$0xff]  }
 0x6bc   : > { %v1937_v45 = vpop.xlane.xlu1 %1936 }
 0x6be   : > { %v1940_v46 = vpop.xlane.xlu0 %1939 }
 0x6bf   : > { %6653 = vrcp.f32 %v1940_v46  ;;  %v6650_v0 = vpop.eup %6649  ;;  %v6300_v46 = vld [vmem:[%s7412_s11 + $0xd4] ss:$8 sps:$4 sm:$0xff]  }
 0x6c0   : > { %v1931_v47 = vpop.xlane.xlu1 %1930  ;;  %v2119_v61 = vmul.f32 %v6650_v0, %v6634_v14  ;;  %v6265_v14 = vld [vmem:[%s7412_s11 + $0x20] ss:$8 sps:$4 sm:$0xff]   ;;  %v6303_v0 = vld [vmem:[%s7412_s11 + $0xe4] ss:$8 sps:$4 sm:$0xff]  }
 0x6c1   : > { %6655 = vrcp.f32 %v1931_v47  ;;  %2405 = vmatpush1.bf16.msra.mxu0 %v6265_v14  ;;  %v6298_v47 = vld [vmem:[%s7412_s11 + $0xd0] ss:$8 sps:$4 sm:$0xff]  }
 0x6c2   : > { %6657 = vrcp.f32 %v1937_v45  ;;  %v1934_v18 = vpop.xlane.xlu0 %1933  ;;  %2406 = vmatprep.subr.bf16.mxu0 %v6270_v15  ;;  %v6295_v45 = vld [vmem:[%s7412_s11 + $0xc0] ss:$8 sps:$4 sm:$0xff]  }
 0x6c3   : > { %6659 = vrcp.f32 %v1934_v18 }
 0x6c4   : > { %v2128_v49 = vpop.permute.xlu1 %2127 }
 0x6c5   : > { %5903 = vmatprep.subr.bf16.mxu1 %v2128_v49  ;;  %v6652_v51 = vpop.eup %6651  ;;  %2407 = vmatpush1.bf16.msra.mxu0 %v6268_v17 }
 0x6c6   : > { %v2114_v50 = vpop.xlane.xlu0 %2113  ;;  %v2120_v58 = vmul.f32 %v6652_v51, %v6640_v32  ;;  %v6274_v32 = vld [vmem:[%s7412_s11 + $0x50] ss:$8 sps:$4 sm:$0xff]  }
 0x6c7   : > { %6661 = vrcp.f32 %v2114_v50  ;;  %v6301_v50 = vld [vmem:[%s7412_s11 + $0xe0] ss:$8 sps:$4 sm:$0xff]  }
 0x6c8   : > { %6663 = vrcp.f32 %v2111_v9  ;;  %v2123_v30 = vpack.c.bf16 %v2120_v58, %v2119_v61  ;;  %v6292_v9 = vld [vmem:[%s7412_s11 + $0xb0] ss:$8 sps:$4 sm:$0xff]  }
 0x6c9   : > { %v6654_v10 = vpop.eup %6653 }
 0x6ca   : > { %v1948_v56 = vmul.f32 %v6654_v10, %v6642_v34  ;;  %v2130_v3 = vpop.permute.xlu0 %2129  ;;  %v6277_v34 = vld [vmem:[%s7412_s11 + $0x60] ss:$8 sps:$4 sm:$0xff]  }
 0x6cb   : > { %v6656_v20 = vpop.eup %6655 }
 0x6cc   : > { %v6658_v52 = vpop.eup %6657  ;;  %v1945_v57 = vmul.f32 %v6656_v20, %v6644_v36  ;;  %v6280_v36 = vld [vmem:[%s7412_s11 + $0x70] ss:$8 sps:$4 sm:$0xff]   ;;  %v6306_v20 = vld [vmem:[%s7412_s11 + $0xf4] ss:$8 sps:$4 sm:$0xff]  }
 0x6cd   : > { %v6660_v55 = vpop.eup %6659  ;;  %v1947_v59 = vmul.f32 %v6658_v52, %v6638_v29  ;;  %v6271_v29 = vld [vmem:[%s7412_s11 + $0x40] ss:$8 sps:$4 sm:$0xff]   ;;  %v6304_v52 = vld [vmem:[%s7412_s11 + $0xf0] ss:$8 sps:$4 sm:$0xff]  }
 0x6ce   : > { %v1946_v22 = vmul.f32 %v6660_v55, %v6646_v38  ;;  %v6283_v38 = vld [vmem:[%s7412_s11 + $0x80] ss:$8 sps:$4 sm:$0xff]  }
 0x6cf   : > { %v1950_v62 = vpack.c.bf16 %v1948_v56, %v1947_v59 }
 0x6d0   : > { %v1949_v60 = vpack.c.bf16 %v1946_v22, %v1945_v57 }
 0x6d1   : > { %v6662_v1 = vpop.eup %6661 }
 0x6d2   : > { %5891 = vmatprep.mubr.msk.bf16.mxu1 %vm1554_vm1, %v1949_v60  ;;  %v6664_v2 = vpop.eup %6663  ;;  %v2122_v4 = vmul.f32 %v6662_v1, %v6648_v40  ;;  %v6291_v40 = vld [vmem:[%s7412_s11 + $0xa4] ss:$8 sps:$4 sm:$0xff]  }
 0x6d3   : > { %5892 = vmatmul.mubr.msk.bf16.vlgmr.msra.gmra.mrb[20].mxu1 %vm1554_vm1, %v1950_v62  ;;  %v2121_v5 = vmul.f32 %v6664_v2, %v7757_v28  ;;  %v6273_v28 = vld [vmem:[%s7412_s11 + $0x44] ss:$8 sps:$4 sm:$0xff]  }
 0x6d4   : > { %5904 = vmatpush3.bf16.msra.mxu1 %v2128_v49  ;;  %5907 = vmatprep.mubr.msk.bf16.mxu1 %vm1554_vm1, %v2123_v30 }
 0x6d5   : > { %5905 = vmatprep.subr.bf16.mxu1 %v2130_v3  ;;  %v2124_v6 = vpack.c.bf16 %v2122_v4, %v2121_v5  ;;  %2408 = vmatprep.subr.bf16.mxu0 %v6273_v28  ;;  %v7831_v28 = vsub.s32 2, %v7577_v53 }
 0x6d6   : > { %2409 = vmatpush1.bf16.msra.mxu0 %v6271_v29  ;;  %v7839_v29 = vld [vmem:[%s7439_s17 + $0x8] sm:$0xff] }
 0x6d7   : > { %2410 = vmatprep.subr.bf16.mxu0 %v6276_v31  ;;  %v2239_v31 = vrot.slane %v7839_v29, %v7831_v28 }
 0x6d8   : > { %5906 = vmatpush3.bf16.msra.mxu1 %v2130_v3 }
 0x6da   : > { %2411 = vmatpush1.bf16.msra.mxu0 %v6274_v32 }
 0x6db   : > { %5908 = vmatmul.mubr.msk.bf16.vlgmr.msra.gmra.mrb[24].mxu1 %vm1554_vm1, %v2124_v6  ;;  %2412 = vmatprep.subr.bf16.mxu0 %v6279_v33 }
 0x6de   : > { %2413 = vmatpush1.bf16.msra.mxu0 %v6277_v34 }
 0x6df   : > { %2414 = vmatprep.subr.bf16.mxu0 %v6282_v35  ;;  %v6755_v35 = vld [vmem:[#allocation13] sm:$0xff] }
 0x6e2   : > { %2415 = vmatpush1.bf16.msra.mxu0 %v6280_v36 }
 0x6e3   : > { %2416 = vmatprep.subr.bf16.mxu0 %v6285_v37 }
 0x6e6   : > { %2417 = vmatpush1.bf16.msra.mxu0 %v6283_v38 }
 0x6e7   : > { %2418 = vmatprep.subr.bf16.mxu0 %v6288_v39  ;;  %v6756_v39 = vld [vmem:[#allocation13 + $0x8] sm:$0xff] }
 0x6ea   : > { %2419 = vmatpush1.bf16.msra.mxu0 %v6286_v63 }
 0x6eb   : > { %2420 = vmatprep.subr.bf16.mxu0 %v6291_v40 }
 0x6ee   : > { %2421 = vmatpush1.bf16.msra.mxu0 %v6289_v42  ;;  %v6757_v42 = vld [vmem:[#allocation13 + $0x10] sm:$0xff] }
 0x6ef   : > { %2422 = vmatprep.subr.bf16.mxu0 %v6294_v43 }
 0x6f2   : > { %2423 = vmatpush1.bf16.msra.mxu0 %v6292_v9  ;;  %v6758_v9 = vld [vmem:[#allocation13 + $0x18] sm:$0xff] }
 0x6f3   : > { %2424 = vmatprep.subr.bf16.mxu0 %v6297_v44 }
 0x6f6   : > { %2425 = vmatpush1.bf16.msra.mxu0 %v6295_v45 }
 0x6f7   : > { %2426 = vmatprep.subr.bf16.mxu0 %v6300_v46 }
 0x6fa   : > { %2427 = vmatpush1.bf16.msra.mxu0 %v6298_v47 }
 0x6fb   : > { %2428 = vmatprep.subr.bf16.mxu0 %v6303_v0 }
 0x6fe   : > { %2429 = vmatpush1.bf16.msra.mxu0 %v6301_v50 }
 0x6ff   : > { %2430 = vmatprep.subr.bf16.mxu0 %v6306_v20 }
 0x702   : > { %2431 = vmatpush1.bf16.msra.mxu0 %v6304_v52 }
 0x7a6   : > { %v5893_v18 = vpop.f32.mrb[20].mxu1 }
 0x7a7   : > { %v1991_v49 = vpop.f32.mrb[21].mxu1 }
 0x7a8   : > { %v5894_v51 = vpop.f32.mrb[22].mxu1 }
 0x7a9   : > { %v1994_v10 = vpop.f32.mrb[23].mxu1 }
 0x7ae   : > { %v5909_v55 = vpop.f32.mrb[24].mxu1 }
 0x7af   : > { %v2173_v56 = vpop.f32.mrb[25].mxu1 }
 0x7b0   : > { %v5910_v57 = vpop.f32.mrb[26].mxu1 }
 0x7b1   : > { %v6085_v22 = vpack.i.bf16 %v5910_v57, %v5909_v55  ;;  %v2176_v58 = vpop.f32.mrb[27].mxu1  ;;  %v6760_v55 = vld [vmem:[#allocation13 + $0x28] sm:$0xff] }
 0x7b2   : > { %v6075_v59 = vpack.i.bf16 %v2176_v58, %v2173_v56 }
 0x7b3   : > { %6086 = vrot.lane.b32.xlu0 %v6085_v22, %s7045_s0  ;;  %v6761_v22 = vld [vmem:[#allocation13 + $0x30] sm:$0xff] }
 0x7b4   : > { %6076 = vrot.lane.b32.xlu1 %v6075_v59, %s7045_s0  ;;  %v6762_v59 = vld [vmem:[#allocation13 + $0x38] sm:$0xff] }
 0x7b8   : > { %6081 = vrot.lane.b32.xlu1 %v6080_v27, %s7045_s0 }
 0x7bc   : > { %6091 = vrot.lane.b32.xlu1 %v6090_v48, %s7045_s0 }
 0x825   : > { %v6087_v60 = vpop.permute.xlu0 %6086 }
 0x826   : > { %v6089_v61 = vunpack.i.h.bf16 %v6087_v60  ;;  %v6088_v62 = vunpack.i.l.bf16 %v6087_v60  ;;  %v6077_v1 = vpop.permute.xlu1 %6076 }
 0x827   : > { %v6079_v30 = vunpack.i.h.bf16 %v6077_v1  ;;  %v6078_v2 = vunpack.i.l.bf16 %v6077_v1  ;;  %v6307_v1 = vld [vmem:[%s7418_s15 + $0x8] ss:$24 sps:$4 sm:$0xff]  }
 0x828   : > { %v2226_v3 = vsel %vm1492_vm0, %v5893_v18, %v6088_v62  ;;  %v2227_v4 = vsel %vm1492_vm0, %v5894_v51, %v6089_v61  ;;  %v6759_v51 = vld [vmem:[#allocation13 + $0x20] sm:$0xff] }
 0x829   : > { %v2224_v5 = vsel %vm1492_vm0, %v1991_v49, %v6078_v2  ;;  %v2225_v23 = vsel %vm1492_vm0, %v1994_v10, %v6079_v30  ;;  %v2231_v26 = vpack.c.bf16 %v2227_v4, %v2226_v3  ;;  %v6309_v30 = vld [vmem:[%s7418_s15 + $0xc] ss:$24 sps:$4 sm:$0xff]   ;;  %v6312_v2 = vld [vmem:[%s7418_s15 + $0x3c] ss:$24 sps:$4 sm:$0xff]   ;;  %v6313_v3 = vld [vmem:[%s7418_s15] ss:$24 sps:$4 sm:$0xff]  }
 0x82a   : > { %v6082_v27 = vpop.permute.xlu1 %6081  ;;  %v2229_v6 = vpack.c.bf16 %v2225_v23, %v2224_v5  ;;  %v6315_v4 = vld [vmem:[%s7418_s15 + $0x4] ss:$24 sps:$4 sm:$0xff]   ;;  %3243 = vmatprep.subr.bf16.mxu0 %v6309_v30  ;;  %v6310_v5 = vld [vmem:[%s7418_s15 + $0x38] ss:$24 sps:$4 sm:$0xff]   ;;  %v6321_v23 = vld [vmem:[%s7418_s15 + $0x34] ss:$24 sps:$4 sm:$0xff]  }
 0x82b   : > { %v6084_v7 = vunpack.i.h.bf16 %v6082_v27  ;;  %v6083_v41 = vunpack.i.l.bf16 %v6082_v27  ;;  %2826 = vmatprep.subr.bf16.mxu1 %v6315_v4  ;;  %v6319_v27 = vld [vmem:[%s7418_s15 + $0x30] ss:$24 sps:$4 sm:$0xff]  }
 0x82c   : > { %2432 = vmatprep.mubr.bf16.mxu0 %v2229_v6  ;;  %2827 = vmatpush1.bf16.msra.mxu1 %v6313_v3  ;;  %v6327_v6 = vld [vmem:[%s7418_s15 + $0x64] ss:$24 sps:$4 sm:$0xff]  }
 0x82d   : > { %v2221_v24 = vsel %vm1492_vm0, %v7726_v21, %v6084_v7  ;;  %v2220_v48 = vsel %vm1492_vm0, %v7722_v25, %v6083_v41  ;;  %v7834_v21 = vld [vmem:[%s7439_s17] sm:$0xff]  ;;  %2828 = vmatprep.subr.bf16.mxu1 %v6321_v23  ;;  %v6324_v41 = vld [vmem:[%s7418_s15 + $0x9c] ss:$24 sps:$4 sm:$0xff]  }
 0x82e   : > { %v2228_v8 = vpack.c.bf16 %v2221_v24, %v2220_v48  ;;  %v6092_v11 = vpop.permute.xlu1 %6091  ;;  %v2235_v25 = vrot.slane %v7834_v21, %v7831_v28  ;;  %v6316_v7 = vld [vmem:[%s7418_s15 + $0x68] ss:$24 sps:$4 sm:$0xff]   ;;  %v6333_v48 = vld [vmem:[%s7418_s15 + $0x94] ss:$24 sps:$4 sm:$0xff]  }
 0x82f   : > { %v6094_v12 = vunpack.i.h.bf16 %v6092_v11  ;;  %v6093_v13 = vunpack.i.l.bf16 %v6092_v11  ;;  %v6325_v24 = vld [vmem:[%s7418_s15 + $0x60] ss:$24 sps:$4 sm:$0xff]   ;;  %v6330_v11 = vld [vmem:[%s7418_s15 + $0xcc] ss:$24 sps:$4 sm:$0xff]  }
 0x830   : > { %2433 = vmatmul.mubr.bf16.vlgmr.msra.gmra.mrb[28].mxu0 %v2228_v8  ;;  %2829 = vmatpush1.bf16.msra.mxu1 %v6319_v27  ;;  %v6322_v8 = vld [vmem:[%s7418_s15 + $0x98] ss:$24 sps:$4 sm:$0xff]  }
 0x831   : > { %2442 = vmatprep.mubr.bf16.mxu0 %v2231_v26  ;;  %v2222_v14 = vsel %vm1492_vm0, %v7720_v16, %v6093_v13  ;;  %v2223_v15 = vsel %vm1492_vm0, %v7724_v19, %v6094_v12  ;;  %3244 = vmatpush1.bf16.msra.mxu0 %v6307_v1  ;;  %v6318_v26 = vld [vmem:[%s7418_s15 + $0x6c] ss:$24 sps:$4 sm:$0xff]   ;;  %v6331_v12 = vld [vmem:[%s7418_s15 + $0x90] ss:$24 sps:$4 sm:$0xff]  }
 0x832   : > { %v2230_v17 = vpack.c.bf16 %v2223_v15, %v2222_v14  ;;  %3245 = vmatprep.subr.bf16.mxu0 %v6312_v2  ;;  %2830 = vmatprep.subr.bf16.mxu1 %v6327_v6  ;;  %v6339_v13 = vld [vmem:[%s7418_s15 + $0xc4] ss:$24 sps:$4 sm:$0xff]   ;;  %v6328_v14 = vld [vmem:[%s7418_s15 + $0xc8] ss:$24 sps:$4 sm:$0xff]  }
 0x833   : > { %v6336_v15 = vld [vmem:[%s7418_s15 + $0xfc] ss:$24 sps:$4 sm:$0xff]  }
 0x834   : > { %2831 = vmatpush1.bf16.msra.mxu1 %v6325_v24 }
 0x835   : > { %3246 = vmatpush1.bf16.msra.mxu0 %v6310_v5  ;;  %2832 = vmatprep.subr.bf16.mxu1 %v6333_v48 }
 0x836   : > { %3247 = vmatprep.subr.bf16.mxu0 %v6318_v26 }
 0x838   : > { %2443 = vmatmul.mubr.bf16.gmra.mrb[32].mxu0 %v2230_v17  ;;  %2833 = vmatpush1.bf16.msra.mxu1 %v6331_v12  ;;  %v6337_v17 = vld [vmem:[%s7418_s15 + $0xc0] ss:$24 sps:$4 sm:$0xff]   ;;  %v6378_v12 = vld [vmem:[%s7418_s15 + $0x24c] ss:$24 sps:$4 sm:$0xff]  }
 0x839   : > { %3248 = vmatpush1.bf16.msra.mxu0 %v6316_v7  ;;  %2834 = vmatprep.subr.bf16.mxu1 %v6339_v13  ;;  %v6381_v13 = vld [vmem:[%s7418_s15 + $0x214] ss:$24 sps:$4 sm:$0xff]  }
 0x83a   : > { %3249 = vmatprep.subr.bf16.mxu0 %v6324_v41 }
 0x83c   : > { %2835 = vmatpush1.bf16.msra.mxu1 %v6337_v17  ;;  %v6382_v17 = vld [vmem:[%s7418_s15 + $0x278] ss:$24 sps:$4 sm:$0xff]  }
 0x83d   : > { %3250 = vmatpush1.bf16.msra.mxu0 %v6322_v8 }
 0x83e   : > { %3251 = vmatprep.subr.bf16.mxu0 %v6330_v11  ;;  %v6375_v11 = vld [vmem:[%s7418_s15 + $0x1e4] ss:$24 sps:$4 sm:$0xff]  }
 0x841   : > { %3252 = vmatpush1.bf16.msra.mxu0 %v6328_v14  ;;  %v6379_v14 = vld [vmem:[%s7418_s15 + $0x210] ss:$24 sps:$4 sm:$0xff]  }
 0x842   : > { %3253 = vmatprep.subr.bf16.mxu0 %v6336_v15  ;;  %v6384_v15 = vld [vmem:[%s7418_s15 + $0x27c] ss:$24 sps:$4 sm:$0xff]  }
 0x903   : > { %v2434_v32 = vpop.f32.mrb[28].mxu0 }
 0x904   : > { %v2435_v16 = vadd.f32 %v2434_v32, %v2235_v25  ;;  %v2436_v33 = vpop.f32.mrb[29].mxu0  ;;  %v6342_v32 = vld [vmem:[%s7418_s15 + $0x12c] ss:$24 sps:$4 sm:$0xff]  }
 0x905   : > { %v2437_v34 = vadd.f32 %v2436_v33, %v2239_v31  ;;  %v2438_v19 = vpop.f32.mrb[30].mxu0  ;;  %v6351_v33 = vld [vmem:[%s7418_s15 + $0x124] ss:$24 sps:$4 sm:$0xff]  }
 0x906   : > { %v7843_v36 = vadd.f32 %v6755_v35, %v2435_v16  ;;  %v2439_v37 = vadd.f32 %v2438_v19, %v2235_v25  ;;  %v2440_v38 = vpop.f32.mrb[31].mxu0  ;;  %v6343_v16 = vld [vmem:[%s7418_s15 + $0xf0] ss:$24 sps:$4 sm:$0xff]   ;;  %v6348_v19 = vld [vmem:[%s7418_s15 + $0x15c] ss:$24 sps:$4 sm:$0xff]  }
 0x907   : > { %v7845_v63 = vadd.f32 %v6756_v39, %v2437_v34  ;;  %v2441_v40 = vadd.f32 %v2440_v38, %v2239_v31  ;;  %v6340_v34 = vld [vmem:[%s7418_s15 + $0x128] ss:$24 sps:$4 sm:$0xff]   ;;  %v6346_v38 = vld [vmem:[%s7418_s15 + $0x158] ss:$24 sps:$4 sm:$0xff]   ;;  %v6354_v39 = vld [vmem:[%s7418_s15 + $0x18c] ss:$24 sps:$4 sm:$0xff]  }
 0x908   : > { %v7847_v43 = vadd.f32 %v6757_v42, %v2439_v37  ;;  %v6349_v35 = vld [vmem:[%s7418_s15 + $0x120] ss:$24 sps:$4 sm:$0xff]   ;;  %v6357_v37 = vld [vmem:[%s7418_s15 + $0x154] ss:$24 sps:$4 sm:$0xff]   ;;  %v6363_v42 = vld [vmem:[%s7418_s15 + $0x184] ss:$24 sps:$4 sm:$0xff]  }
 0x909   : > { %v7849_v44 = vadd.f32 %v6758_v9, %v2441_v40  ;;  %v2461_v45 = vadd.f32 %v7845_v63, %v7843_v36  ;;  %v6355_v40 = vld [vmem:[%s7418_s15 + $0x150] ss:$24 sps:$4 sm:$0xff]  }
 0x90a   : > { %v6352_v9 = vld [vmem:[%s7418_s15 + $0x188] ss:$24 sps:$4 sm:$0xff]  }
 0x90b   : > { %v2444_v46 = vpop.f32.mrb[32].mxu0  ;;  %2462 = vadd.xlane.f32.xlu0 %v2461_v45  ;;  %v2464_v47 = vadd.f32 %v7849_v44, %v7847_v43  ;;  %v6360_v45 = vld [vmem:[%s7418_s15 + $0x1bc] ss:$24 sps:$4 sm:$0xff]  }
 0x90c   : > { %v2445_v18 = vadd.f32 %v2444_v46, %v2235_v25  ;;  %v2446_v49 = vpop.f32.mrb[33].mxu0  ;;  %v6361_v46 = vld [vmem:[%s7418_s15 + $0x180] ss:$24 sps:$4 sm:$0xff]  }
 0x90d   : > { %v2447_v50 = vadd.f32 %v2446_v49, %v2239_v31  ;;  %v2448_v0 = vpop.f32.mrb[34].mxu0  ;;  %2465 = vadd.xlane.f32.xlu1 %v2464_v47  ;;  %v6369_v47 = vld [vmem:[%s7418_s15 + $0x1b4] ss:$24 sps:$4 sm:$0xff]  }
 0x90e   : > { %v7855_v10 = vadd.f32 %v6759_v51, %v2445_v18  ;;  %v2449_v20 = vadd.f32 %v2448_v0, %v2235_v25  ;;  %v2450_v52 = vpop.f32.mrb[35].mxu0  ;;  %v6345_v25 = vld [vmem:[%s7418_s15 + $0xf4] ss:$24 sps:$4 sm:$0xff]   ;;  %v6358_v18 = vld [vmem:[%s7418_s15 + $0x1b8] ss:$24 sps:$4 sm:$0xff]  }
 0x90f   : > { %v7857_v56 = vadd.f32 %v6760_v55, %v2447_v50  ;;  %v2451_v57 = vadd.f32 %v2450_v52, %v2239_v31  ;;  %v6334_v31 = vld [vmem:[%s7418_s15 + $0xf8] ss:$24 sps:$4 sm:$0xff]   ;;  %2836 = vmatprep.subr.bf16.mxu1 %v6345_v25  ;;  %v6366_v49 = vld [vmem:[%s7418_s15 + $0x1ec] ss:$24 sps:$4 sm:$0xff]   ;;  %v6364_v0 = vld [vmem:[%s7418_s15 + $0x1e8] ss:$24 sps:$4 sm:$0xff]  }
 0x910   : > { %v7859_v58 = vadd.f32 %v6761_v22, %v2449_v20  ;;  %3254 = vmatpush1.bf16.msra.mxu0 %v6334_v31  ;;  %2837 = vmatpush1.bf16.msra.mxu1 %v6343_v16  ;;  %v6367_v50 = vld [vmem:[%s7418_s15 + $0x1b0] ss:$24 sps:$4 sm:$0xff]   ;;  %v6372_v51 = vld [vmem:[%s7418_s15 + $0x21c] ss:$24 sps:$4 sm:$0xff]   ;;  %v6385_v31 = vld [vmem:[%s7418_s15 + $0x240] ss:$24 sps:$4 sm:$0xff]  }
 0x911   : > { %v7861_v60 = vadd.f32 %v6762_v59, %v2451_v57  ;;  %v2467_v61 = vadd.f32 %v7857_v56, %v7855_v10  ;;  %3255 = vmatprep.subr.bf16.mxu0 %v6342_v32  ;;  %2838 = vmatprep.subr.bf16.mxu1 %v6351_v33  ;;  %v6370_v20 = vld [vmem:[%s7418_s15 + $0x218] ss:$24 sps:$4 sm:$0xff]   ;;  %v6387_v25 = vld [vmem:[%s7418_s15 + $0x244] ss:$24 sps:$4 sm:$0xff]   ;;  %v6388_v16 = vld [vmem:[%s7418_s15 + $0x2a8] ss:$24 sps:$4 sm:$0xff]  }
 0x912   : > { %v6390_v32 = vld [vmem:[%s7418_s15 + $0x2ac] ss:$24 sps:$4 sm:$0xff]  }
 0x913   : > { %2468 = vadd.xlane.f32.xlu0 %v2467_v61  ;;  %v2470_v62 = vadd.f32 %v7861_v60, %v7859_v58  ;;  %v6393_v33 = vld [vmem:[%s7418_s15 + $0x274] ss:$24 sps:$4 sm:$0xff]  }
 0x914   : > { %3256 = vmatpush1.bf16.msra.mxu0 %v6340_v34  ;;  %2839 = vmatpush1.bf16.msra.mxu1 %v6349_v35  ;;  %v6391_v34 = vld [vmem:[%s7418_s15 + $0x270] ss:$24 sps:$4 sm:$0xff]  }
 0x915   : > { %3257 = vmatprep.subr.bf16.mxu0 %v6348_v19  ;;  %2840 = vmatprep.subr.bf16.mxu1 %v6357_v37  ;;  %v6396_v19 = vld [vmem:[%s7418_s15 + $0x2dc] ss:$24 sps:$4 sm:$0xff]   ;;  %v6394_v35 = vld [vmem:[%s7418_s15 + $0x2d8] ss:$24 sps:$4 sm:$0xff]  }
 0x916   : > { %v6397_v37 = vld [vmem:[%s7418_s15 + $0x2a0] ss:$24 sps:$4 sm:$0xff]  }
 0x917   : > { %2471 = vadd.xlane.f32.xlu0 %v2470_v62 }
 0x918   : > { %3258 = vmatpush1.bf16.msra.mxu0 %v6346_v38  ;;  %2841 = vmatpush1.bf16.msra.mxu1 %v6355_v40  ;;  %v6399_v38 = vld [vmem:[%s7418_s15 + $0x2a4] ss:$24 sps:$4 sm:$0xff]  }
 0x919   : > { %3259 = vmatprep.subr.bf16.mxu0 %v6354_v39  ;;  %2842 = vmatprep.subr.bf16.mxu1 %v6363_v42  ;;  %v7972_v39 = vld [vmem:[%s8662_s14] ss:$8 sps:$4 sm:$0xff]   ;;  %v7977_v40 = vld [vmem:[%s8662_s14 + $0x4] ss:$8 sps:$4 sm:$0xff]  }
 0x91a   : > { %v6405_v42 = vld [vmem:[%s7418_s15 + $0x2d4] ss:$24 sps:$4 sm:$0xff]   ;;  %3275 = vmatprep.mubr.bf16.mxu0 %v7977_v40 }
 0x91c   : > { %3260 = vmatpush1.bf16.msra.mxu0 %v6352_v9  ;;  %2843 = vmatpush1.bf16.msra.mxu1 %v6361_v46  ;;  %v6403_v9 = vld [vmem:[%s7418_s15 + $0x2d0] ss:$24 sps:$4 sm:$0xff]  }
 0x91d   : > { %3261 = vmatprep.subr.bf16.mxu0 %v6360_v45  ;;  %2844 = vmatprep.subr.bf16.mxu1 %v6369_v47  ;;  %v7986_v45 = vld [vmem:[%s8662_s14 + $0x14] ss:$8 sps:$4 sm:$0xff]   ;;  %v7991_v46 = vld [vmem:[%s8662_s14 + $0x10] ss:$8 sps:$4 sm:$0xff]  }
 0x920   : > { %3262 = vmatpush1.bf16.msra.mxu0 %v6358_v18  ;;  %2845 = vmatpush1.bf16.msra.mxu1 %v6367_v50 }
 0x921   : > { %3263 = vmatprep.subr.bf16.mxu0 %v6366_v49  ;;  %2846 = vmatprep.subr.bf16.mxu1 %v6375_v11 }
 0x924   : > { %3264 = vmatpush1.bf16.msra.mxu0 %v6364_v0 }
 0x925   : > { %3265 = vmatprep.subr.bf16.mxu0 %v6372_v51 }
 0x928   : > { %3266 = vmatpush1.bf16.msra.mxu0 %v6370_v20 }
 0x929   : > { %3267 = vmatprep.subr.bf16.mxu0 %v6378_v12 }
 0x998   : > { %v2463_v52 = vpop.xlane.xlu0 %2462 }
 0x999   : > { %v2474_v55 = vmul.f32 0.00390625, %v2463_v52 }
 0x99a   : > { %v2466_v57 = vpop.xlane.xlu1 %2465 }
 0x99b   : > { %v7912_v22 = vsub.f32 %v7843_v36, %v2474_v55  ;;  %v7915_v59 = vsub.f32 %v7845_v63, %v2474_v55  ;;  %v2475_v61 = vmul.f32 0.00390625, %v2466_v57  ;;  %v2528_v55 = vsub.s32 6, %v7577_v53 }
 0x99d   : > { %v7918_v62 = vsub.f32 %v7847_v43, %v2475_v61  ;;  %v7921_v1 = vsub.f32 %v7849_v44, %v2475_v61  ;;  %v2486_v30 = vmul.f32 %v7912_v22, %v7912_v22  ;;  %v2487_v2 = vmul.f32 %v7915_v59, %v7915_v59 }
 0x99f   : > { %v2494_v3 = vadd.f32 %v2487_v2, %v2486_v30  ;;  %v2488_v36 = vmul.f32 %v7918_v62, %v7918_v62  ;;  %v2489_v63 = vmul.f32 %v7921_v1, %v7921_v1  ;;  %v2544_v2 = vsub.s32 7, %v7577_v53 }
 0x9a0   : > { %v2469_v4 = vpop.xlane.xlu0 %2468 }
 0x9a1   : > { %v2476_v5 = vmul.f32 0.00390625, %v2469_v4  ;;  %2495 = vadd.xlane.f32.xlu1 %v2494_v3  ;;  %v2497_v43 = vadd.f32 %v2489_v63, %v2488_v36  ;;  %v2533_v3 = vrot.slane %v7839_v29, %v2528_v55  ;;  %v2529_v36 = vrot.slane %v7834_v21, %v2528_v55 }
 0x9a3   : > { %v7932_v44 = vsub.f32 %v7855_v10, %v2476_v5  ;;  %v7935_v23 = vsub.f32 %v7857_v56, %v2476_v5  ;;  %2498 = vadd.xlane.f32.xlu0 %v2497_v43 }
 0x9a4   : > { %v2472_v26 = vpop.xlane.xlu0 %2471 }
 0x9a5   : > { %v2477_v27 = vmul.f32 0.00390625, %v2472_v26  ;;  %v2490_v6 = vmul.f32 %v7932_v44, %v7932_v44  ;;  %v2491_v7 = vmul.f32 %v7935_v23, %v7935_v23 }
 0x9a7   : > { %v7942_v41 = vsub.f32 %v7859_v58, %v2477_v27  ;;  %v7945_v10 = vsub.f32 %v7861_v60, %v2477_v27  ;;  %v2500_v56 = vadd.f32 %v2491_v7, %v2490_v6  ;;  %v6373_v58 = vld [vmem:[%s7418_s15 + $0x1e0] ss:$24 sps:$4 sm:$0xff]   ;;  %v2549_v27 = vrot.slane %v7839_v29, %v2544_v2 }
 0x9a8   : > { %v6376_v60 = vld [vmem:[%s7418_s15 + $0x248] ss:$24 sps:$4 sm:$0xff]   ;;  %2847 = vmatpush1.bf16.msra.mxu1 %v6373_v58  ;;  %v2545_v6 = vrot.slane %v7834_v21, %v2544_v2 }
 0x9a9   : > { %2501 = vadd.xlane.f32.xlu1 %v2500_v56  ;;  %v2492_v24 = vmul.f32 %v7942_v41, %v7942_v41  ;;  %v2493_v48 = vmul.f32 %v7945_v10, %v7945_v10  ;;  %3268 = vmatpush1.bf16.msra.mxu0 %v6376_v60 }
 0x9aa   : > { %2848 = vmatprep.subr.bf16.mxu1 %v6381_v13  ;;  %3269 = vmatprep.subr.bf16.mxu0 %v6384_v15 }
 0x9ab   : > { %v2503_v8 = vadd.f32 %v2493_v48, %v2492_v24 }
 0x9ac   : > { %2849 = vmatpush1.bf16.msra.mxu1 %v6379_v14 }
 0x9ad   : > { %2504 = vadd.xlane.f32.xlu0 %v2503_v8  ;;  %3270 = vmatpush1.bf16.msra.mxu0 %v6382_v17 }
 0x9ae   : > { %2850 = vmatprep.subr.bf16.mxu1 %v6387_v25  ;;  %3271 = vmatprep.subr.bf16.mxu0 %v6390_v32 }
 0x9b0   : > { %2851 = vmatpush1.bf16.msra.mxu1 %v6385_v31 }
 0x9b1   : > { %3272 = vmatpush1.bf16.msra.mxu0 %v6388_v16  ;;  %2852 = vmatprep.subr.bf16.mxu1 %v6393_v33 }
 0x9b2   : > { %3273 = vmatprep.subr.bf16.mxu0 %v6396_v19 }
 0x9b4   : > { %2853 = vmatpush1.bf16.msra.mxu1 %v6391_v34 }
 0x9b5   : > { %3274 = vmatpush1.bf16.msra.mxu0 %v6394_v35  ;;  %2854 = vmatprep.subr.bf16.mxu1 %v6399_v38 }
 0x9b8   : > { %2855 = vmatpush1.bf16.msra.mxu1 %v6397_v37  ;;  %3276 = vmatmul.mubr.bf16.vlgmr.msra.gmra.mrb[36].mxu0 %v7972_v39  ;;  %v6763_v37 = vld [vmem:[%s7439_s17 + $0x10] sm:$0xff] }
 0x9b9   : > { %2856 = vmatprep.subr.bf16.mxu1 %v6405_v42  ;;  %3285 = vmatprep.mubr.bf16.mxu0 %v7986_v45  ;;  %v6764_v42 = vld [vmem:[%s7439_s17 + $0x18] sm:$0xff] }
 0x9bc   : > { %2857 = vmatpush1.bf16.msra.mxu1 %v6403_v9 }
 0x9c0   : > { %3286 = vmatmul.mubr.bf16.gmra.mrb[40].mxu0 %v7991_v46 }
 0xa2e   : > { %v2496_v47 = vpop.xlane.xlu1 %2495 }
 0xa2f   : > { %v2506_v18 = vmul.f32 0.00390625, %v2496_v47 }
 0xa30   : > { %v2499_v49 = vpop.xlane.xlu0 %2498 }
 0xa31   : > { %v2510_v50 = vadd.f32 1e-05, %v2506_v18  ;;  %v2507_v0 = vmul.f32 0.00390625, %v2499_v49 }
 0xa33   : > { %6665 = vrsqrt.f32 %v2510_v50  ;;  %v2511_v51 = vadd.f32 1e-05, %v2507_v0 }
 0xa35   : > { %6667 = vrsqrt.f32 %v2511_v51 }
 0xa36   : > { %v2502_v20 = vpop.xlane.xlu1 %2501 }
 0xa37   : > { %v2508_v52 = vmul.f32 0.00390625, %v2502_v20 }
 0xa39   : > { %v2512_v57 = vadd.f32 1e-05, %v2508_v52 }
 0xa3a   : > { %v2505_v61 = vpop.xlane.xlu0 %2504 }
 0xa3b   : > { %6669 = vrsqrt.f32 %v2512_v57  ;;  %v2509_v30 = vmul.f32 0.00390625, %v2505_v61 }
 0xa3d   : > { %v6666_v63 = vpop.eup %6665  ;;  %v2513_v4 = vadd.f32 1e-05, %v2509_v30 }
 0xa3e   : > { %v2518_v5 = vmul.f32 %v6666_v63, %v7912_v22  ;;  %v2519_v43 = vmul.f32 %v6666_v63, %v7915_v59 }
 0xa3f   : > { %v6668_v26 = vpop.eup %6667  ;;  %6671 = vrsqrt.f32 %v2513_v4 }
 0xa40   : > { %v2520_v7 = vmul.f32 %v6668_v26, %v7918_v62  ;;  %v2521_v56 = vmul.f32 %v6668_v26, %v7921_v1  ;;  %v2535_v24 = vmul.f32 %v2533_v3, %v2519_v43  ;;  %v2534_v48 = vmul.f32 %v2529_v36, %v2518_v5 }
 0xa42   : > { %v2537_v8 = vmul.f32 %v2533_v3, %v2521_v56  ;;  %v2536_v11 = vmul.f32 %v2529_v36, %v2520_v7  ;;  %v8005_v58 = vadd.f32 %v2549_v27, %v2535_v24  ;;  %v8009_v22 = vadd.f32 %v2545_v6, %v2534_v48 }
 0xa44   : > { %v8007_v12 = vadd.f32 %v2549_v27, %v2537_v8  ;;  %v8011_v59 = vadd.f32 %v2545_v6, %v2536_v11 }
 0xa45   : > { %v6670_v60 = vpop.eup %6669 }
 0xa46   : > { %v2559_v13 = vpack.c.bf16 %v8007_v12, %v8005_v58  ;;  %v2558_v62 = vpack.c.bf16 %v8011_v59, %v8009_v22  ;;  %v2523_v1 = vmul.f32 %v6670_v60, %v7935_v23  ;;  %v2522_v14 = vmul.f32 %v6670_v60, %v7932_v44 }
 0xa48   : > { %2858 = vmatprep.mubr.bf16.mxu1 %v2559_v13  ;;  %v2539_v25 = vmul.f32 %v2533_v3, %v2523_v1  ;;  %v2538_v32 = vmul.f32 %v2529_v36, %v2522_v14 }
 0xa49   : > { %v6672_v15 = vpop.eup %6671  ;;  %2859 = vmatmul.mubr.bf16.vlgmr.msra.gmra.mrb[28].mxu1 %v2558_v62 }
 0xa4a   : > { %v2525_v17 = vmul.f32 %v6672_v15, %v7945_v10  ;;  %v2524_v31 = vmul.f32 %v6672_v15, %v7942_v41  ;;  %v8021_v34 = vadd.f32 %v2549_v27, %v2539_v25  ;;  %v8025_v23 = vadd.f32 %v2545_v6, %v2538_v32 }
 0xa4b   : > { %v8035_v41 = vsub.s32 1, %v7577_v53 }
 0xa4c   : > { %v2541_v16 = vmul.f32 %v2533_v3, %v2525_v17  ;;  %v2540_v33 = vmul.f32 %v2529_v36, %v2524_v31 }
 0xa4d   : > { %v2890_v38 = vrot.slane %v6763_v37, %v8035_v41  ;;  %v2894_v9 = vrot.slane %v6764_v42, %v8035_v41  ;;  %v2661_v7 = vrot.slane %v7834_v21, %v8035_v41  ;;  %v2665_v56 = vrot.slane %v7839_v29, %v8035_v41 }
 0xa4e   : > { %v8023_v19 = vadd.f32 %v2549_v27, %v2541_v16  ;;  %v8027_v44 = vadd.f32 %v2545_v6, %v2540_v33 }
 0xa50   : > { %v2561_v35 = vpack.c.bf16 %v8023_v19, %v8021_v34  ;;  %v2560_v10 = vpack.c.bf16 %v8027_v44, %v8025_v23 }
 0xa52   : > { %2868 = vmatprep.mubr.bf16.mxu1 %v2561_v35 }
 0xa53   : > { %2869 = vmatmul.mubr.bf16.gmra.mrb[32].mxu1 %v2560_v10 }
 0xa54   : > { %3328 = vmatprep.mubr.bf16.mxu1 %v7977_v40 }
 0xa8b   : > { %v3277_v47 = vpop.f32.mrb[36].mxu0 }
 0xa8c   : > { %v3278_v18 = vadd.f32 %v3277_v47, %v2890_v38  ;;  %v3279_v49 = vpop.f32.mrb[37].mxu0 }
 0xa8d   : > { %v3280_v50 = vadd.f32 %v3279_v49, %v2894_v9  ;;  %v3281_v0 = vpop.f32.mrb[38].mxu0 }
 0xa8e   : > { %v3282_v51 = vadd.f32 %v3281_v0, %v2890_v38  ;;  %v3283_v20 = vpop.f32.mrb[39].mxu0 }
 0xa8f   : > { %v3284_v52 = vadd.f32 %v3283_v20, %v2894_v9 }
 0xa90   : > { %v3383_v55 = vpack.c.bf16 %v3282_v51, %v3278_v18 }
 0xa91   : > { %v8041_v57 = vpack.c.bf16 %v3284_v52, %v3280_v50  ;;  %v6409_v52 = vld [vmem:[%s7418_s15 + $0x10] ss:$24 sps:$4 sm:$0xff]  }
 0xa92   : > { %5983 = vmatprep.subr.msk.bf16.mxu0 %vm1492_vm0, %v3383_v55  ;;  %3557 = vrot.lane.b32.xlu1 %v3383_v55, %s7045_s0  ;;  %v3394_v40 = vsel %vm1492_vm0, %v3383_v55, 0  ;;  %v6411_v55 = vld [vmem:[%s7418_s15 + $0x14] ss:$24 sps:$4 sm:$0xff]  }
 0xa93   : > { %v3287_v61 = vpop.f32.mrb[40].mxu0  ;;  %5912 = vmatpush3.bf16.xpose.msra.mxu0 %v3394_v40  ;;  %v6414_v40 = vld [vmem:[%s7418_s15 + $0x44] ss:$24 sps:$4 sm:$0xff]   ;;  %3296 = vmatprep.subr.bf16.mxu1 %v6411_v55 }
 0xa94   : > { %v3288_v30 = vadd.f32 %v3287_v61, %v2890_v38  ;;  %v3289_v2 = vpop.f32.mrb[41].mxu0  ;;  %3297 = vmatpush1.bf16.msra.mxu1 %v6409_v52  ;;  %v6412_v61 = vld [vmem:[%s7418_s15 + $0x40] ss:$24 sps:$4 sm:$0xff]  }
 0xa95   : > { %v3291_v3 = vpop.f32.mrb[42].mxu0  ;;  %v3290_v36 = vadd.f32 %v3289_v2, %v2894_v9  ;;  %3298 = vmatprep.subr.bf16.mxu1 %v6414_v40  ;;  %v6415_v2 = vld [vmem:[%s7418_s15 + $0x70] ss:$24 sps:$4 sm:$0xff]  }
 0xa96   : > { %v3292_v63 = vadd.f32 %v3291_v3, %v2890_v38  ;;  %v3293_v4 = vpop.f32.mrb[43].mxu0 }
 0xa97   : > { %v3294_v5 = vadd.f32 %v3293_v4, %v2894_v9  ;;  %v6423_v4 = vld [vmem:[%s7418_s15 + $0xd4] ss:$24 sps:$4 sm:$0xff]  }
 0xa98   : > { %v3384_v43 = vpack.c.bf16 %v3292_v63, %v3288_v30  ;;  %v6417_v30 = vld [vmem:[%s7418_s15 + $0x74] ss:$24 sps:$4 sm:$0xff]   ;;  %3299 = vmatpush1.bf16.msra.mxu1 %v6412_v61  ;;  %v6418_v63 = vld [vmem:[%s7418_s15 + $0xa0] ss:$24 sps:$4 sm:$0xff]  }
 0xa99   : > { %v8046_v26 = vpack.c.bf16 %v3294_v5, %v3290_v36  ;;  %3300 = vmatprep.subr.bf16.mxu1 %v6417_v30  ;;  %v6420_v36 = vld [vmem:[%s7418_s15 + $0xa4] ss:$24 sps:$4 sm:$0xff]   ;;  %v6421_v5 = vld [vmem:[%s7418_s15 + $0xd0] ss:$24 sps:$4 sm:$0xff]  }
 0xa9a   : > { %5984 = vmatprep.subr.msk.bf16.mxu0 %vm1492_vm0, %v3384_v43  ;;  %3559 = vrot.lane.b32.xlu0 %v3384_v43, %s7045_s0  ;;  %v3397_v27 = vsel %vm1492_vm0, %v3384_v43, 0  ;;  %v6426_v43 = vld [vmem:[%s7418_s15 + $0x104] ss:$24 sps:$4 sm:$0xff]  }
 0xa9b   : > { %5914 = vmatpush3.bf16.xpose.msra.mxu0 %v3397_v27 }
 0xa9c   : > { %3301 = vmatpush1.bf16.msra.mxu1 %v6415_v2 }
 0xa9d   : > { %3302 = vmatprep.subr.bf16.mxu1 %v6420_v36 }
 0xaa0   : > { %3303 = vmatpush1.bf16.msra.mxu1 %v6418_v63 }
 0xaa1   : > { %3304 = vmatprep.subr.bf16.mxu1 %v6423_v4 }
 0xaa4   : > { %3305 = vmatpush1.bf16.msra.mxu1 %v6421_v5 }
 0xaa5   : > { %3306 = vmatprep.subr.bf16.mxu1 %v6426_v43 }
 0xb04   : > { %v3558_v6 = vpop.permute.xlu1 %3557 }
 0xb05   : > { %5985 = vmatprep.subr.msk.bf16.mxu0 %vm1492_vm0, %v3558_v6  ;;  %v3568_v50 = vsel %vm1492_vm0, %v3558_v6, 0  ;;  %v6424_v6 = vld [vmem:[%s7418_s15 + $0x100] ss:$24 sps:$4 sm:$0xff]  }
 0xb06   : > { %3307 = vmatpush1.bf16.msra.mxu1 %v6424_v6 }
 0xb0c   : > { %v3560_v51 = vpop.permute.xlu0 %3559 }
 0xb0d   : > { %v3571_v20 = vsel %vm1492_vm0, %v3560_v51, 0 }
 0xb1c   : > { %v2860_v24 = vpop.f32.mrb[28].mxu1 }
 0xb1d   : > { %v2861_v48 = vadd.f32 %v2860_v24, %v2661_v7  ;;  %v2862_v8 = vpop.f32.mrb[29].mxu1  ;;  %v6432_v24 = vld [vmem:[%s7418_s15 + $0x164] ss:$24 sps:$4 sm:$0xff]  }
 0xb1e   : > { %v2863_v11 = vadd.f32 %v2862_v8, %v2665_v56  ;;  %v2864_v60 = vpop.f32.mrb[30].mxu1  ;;  %v6435_v8 = vld [vmem:[%s7418_s15 + $0x194] ss:$24 sps:$4 sm:$0xff]  }
 0xb1f   : > { %v2865_v13 = vadd.f32 %v2864_v60, %v2661_v7  ;;  %v2866_v62 = vpop.f32.mrb[31].mxu1  ;;  %v2879_v14 = vmul.f32 0.125, %v2861_v48  ;;  %v6430_v48 = vld [vmem:[%s7418_s15 + $0x160] ss:$24 sps:$4 sm:$0xff]   ;;  %v6438_v60 = vld [vmem:[%s7418_s15 + $0x1c4] ss:$24 sps:$4 sm:$0xff]  }
 0xb20   : > { %v2867_v1 = vadd.f32 %v2866_v62, %v2665_v56  ;;  %v2880_v17 = vmul.f32 0.125, %v2863_v11  ;;  %v6433_v11 = vld [vmem:[%s7418_s15 + $0x190] ss:$24 sps:$4 sm:$0xff]   ;;  %v6441_v62 = vld [vmem:[%s7418_s15 + $0x1f4] ss:$24 sps:$4 sm:$0xff]  }
 0xb21   : > { %v2881_v15 = vmul.f32 0.125, %v2865_v13  ;;  %v6436_v13 = vld [vmem:[%s7418_s15 + $0x1c0] ss:$24 sps:$4 sm:$0xff]  }
 0xb22   : > { %v2882_v25 = vmul.f32 0.125, %v2867_v1  ;;  %v6439_v1 = vld [vmem:[%s7418_s15 + $0x1f0] ss:$24 sps:$4 sm:$0xff]  }
 0xb23   : > { %v3381_v31 = vpack.c.bf16 %v2881_v15, %v2879_v14  ;;  %v6444_v14 = vld [vmem:[%s7418_s15 + $0x224] ss:$24 sps:$4 sm:$0xff]   ;;  %v6442_v15 = vld [vmem:[%s7418_s15 + $0x220] ss:$24 sps:$4 sm:$0xff]  }
 0xb24   : > { %v8056_v32 = vpack.c.bf16 %v2882_v25, %v2880_v17  ;;  %v6447_v17 = vld [vmem:[%s7418_s15 + $0x254] ss:$24 sps:$4 sm:$0xff]   ;;  %v6445_v25 = vld [vmem:[%s7418_s15 + $0x250] ss:$24 sps:$4 sm:$0xff]  }
 0xb25   : > { %3551 = vrot.lane.b32.xlu1 %v3381_v31, %s7045_s0  ;;  %5915 = vmatprep.mubr.msk.bf16.mxu0 %vm1492_vm0, %v3381_v31  ;;  %v6450_v31 = vld [vmem:[%s7418_s15 + $0x284] ss:$24 sps:$4 sm:$0xff]  }
 0xb26   : > { %v2870_v21 = vpop.f32.mrb[32].mxu1 }
 0xb27   : > { %v2871_v29 = vadd.f32 %v2870_v21, %v2661_v7  ;;  %v2872_v16 = vpop.f32.mrb[33].mxu1  ;;  %v6448_v21 = vld [vmem:[%s7418_s15 + $0x280] ss:$24 sps:$4 sm:$0xff]  }
 0xb28   : > { %v2873_v33 = vadd.f32 %v2872_v16, %v2665_v56  ;;  %v2874_v35 = vpop.f32.mrb[34].mxu1  ;;  %v6451_v16 = vld [vmem:[%s7418_s15 + $0x2b0] ss:$24 sps:$4 sm:$0xff]  }
 0xb29   : > { %v2875_v10 = vadd.f32 %v2874_v35, %v2661_v7  ;;  %v2876_v37 = vpop.f32.mrb[35].mxu1  ;;  %v2883_v42 = vmul.f32 0.125, %v2871_v29  ;;  %v6429_v7 = vld [vmem:[%s7418_s15 + $0x134] ss:$24 sps:$4 sm:$0xff]   ;;  %v6454_v35 = vld [vmem:[%s7418_s15 + $0x2e0] ss:$24 sps:$4 sm:$0xff]  }
 0xb2a   : > { %v2877_v38 = vadd.f32 %v2876_v37, %v2665_v56  ;;  %v2884_v47 = vmul.f32 0.125, %v2873_v33  ;;  %v6427_v56 = vld [vmem:[%s7418_s15 + $0x130] ss:$24 sps:$4 sm:$0xff]   ;;  %3308 = vmatprep.subr.bf16.mxu1 %v6429_v7  ;;  %v6453_v29 = vld [vmem:[%s7418_s15 + $0x2b4] ss:$24 sps:$4 sm:$0xff]  }
 0xb2b   : > { %v2885_v9 = vmul.f32 0.125, %v2875_v10  ;;  %3309 = vmatpush1.bf16.msra.mxu1 %v6427_v56  ;;  %v6456_v33 = vld [vmem:[%s7418_s15 + $0x2e4] ss:$24 sps:$4 sm:$0xff]  }
 0xb2c   : > { %v2886_v18 = vmul.f32 0.125, %v2877_v38  ;;  %3310 = vmatprep.subr.bf16.mxu1 %v6432_v24  ;;  %v8107_v10 = vld [vmem:[%s8663_s5] sm:$0xff]  ;;  %v8112_v38 = vld [vmem:[%s8663_s5 + $0x10] sm:$0xff] }
 0xb2d   : > { %v3382_v49 = vpack.c.bf16 %v2885_v9, %v2883_v42 }
 0xb2e   : > { %v8061_v0 = vpack.c.bf16 %v2886_v18, %v2884_v47 }
 0xb2f   : > { %3553 = vrot.lane.b32.xlu1 %v3382_v49, %s7045_s0  ;;  %5916 = vmatmul.mubr.msk.bf16.vlgmr.msra.gmra.mrb[44].mxu0 %vm1492_vm0, %v3382_v49 }
 0xb30   : > { %5928 = vmatpush3.bf16.xpose.msra.mxu0 %v3568_v50  ;;  %3311 = vmatpush1.bf16.msra.mxu1 %v6430_v48  ;;  %v8126_v50 = vld [vmem:[%s8663_s5 + $0x18] sm:$0xff] }
 0xb31   : > { %5986 = vmatprep.subr.msk.bf16.mxu0 %vm1492_vm0, %v3560_v51  ;;  %3312 = vmatprep.subr.bf16.mxu1 %v6435_v8 }
 0xb34   : > { %3313 = vmatpush1.bf16.msra.mxu1 %v6433_v11 }
 0xb35   : > { %3314 = vmatprep.subr.bf16.mxu1 %v6438_v60 }
 0xb38   : > { %5930 = vmatpush3.bf16.xpose.msra.mxu0 %v3571_v20  ;;  %3315 = vmatpush1.bf16.msra.mxu1 %v6436_v13 }
 0xb39   : > { %3316 = vmatprep.subr.bf16.mxu1 %v6441_v62 }
 0xb3c   : > { %3317 = vmatpush1.bf16.msra.mxu1 %v6439_v1 }
 0xb3d   : > { %3318 = vmatprep.subr.bf16.mxu1 %v6444_v14 }
 0xb40   : > { %3319 = vmatpush1.bf16.msra.mxu1 %v6442_v15 }
 0xb41   : > { %3320 = vmatprep.subr.bf16.mxu1 %v6447_v17  ;;  %v6765_v17 = vld [vmem:[%s7439_s17 + $0x20] sm:$0xff] }
 0xb44   : > { %3321 = vmatpush1.bf16.msra.mxu1 %v6445_v25  ;;  %v2898_v25 = vrot.slane %v6765_v17, %v8035_v41 }
 0xb45   : > { %3322 = vmatprep.subr.bf16.mxu1 %v6450_v31  ;;  %v6766_v31 = vld [vmem:[%s7439_s17 + $0x28] sm:$0xff] }
 0xb48   : > { %3323 = vmatpush1.bf16.msra.mxu1 %v6448_v21  ;;  %v2902_v21 = vrot.slane %v6766_v31, %v8035_v41 }
 0xb49   : > { %3324 = vmatprep.subr.bf16.mxu1 %v6453_v29 }
 0xb4c   : > { %3325 = vmatpush1.bf16.msra.mxu1 %v6451_v16 }
 0xb4d   : > { %3326 = vmatprep.subr.bf16.mxu1 %v6456_v33 }
 0xb50   : > { %3327 = vmatpush1.bf16.msra.mxu1 %v6454_v35 }
 0xb53   : > { %3329 = vmatmul.mubr.bf16.vlgmr.msra.gmra.mrb[36].mxu1 %v7972_v39  ;;  %v8117_v39 = vld [vmem:[%s8663_s5 + $0x8] sm:$0xff] }
 0xb54   : > { %3338 = vmatprep.mubr.bf16.mxu1 %v7986_v45 }
 0xb5b   : > { %3339 = vmatmul.mubr.bf16.gmra.mrb[40].mxu1 %v7991_v46 }
 0xb97   : > { %v3552_v3 = vpop.permute.xlu1 %3551 }
 0xb98   : > { %5931 = vmatprep.mubr.msk.bf16.mxu0 %vm1492_vm0, %v3552_v3 }
 0xba1   : > { %v3554_v27 = vpop.permute.xlu1 %3553 }
 0xba2   : > { %5932 = vmatmul.mubr.msk.bf16.vlgmr.msra.gmra.mrb[48].mxu0 %vm1492_vm0, %v3554_v27 }
 0xc02   : > { %v5917_v37 = vpop.f32.mrb[44].mxu0 }
 0xc03   : > { %v3433_v42 = vpop.f32.mrb[45].mxu0  ;;  %v3442_v47 = vadd.f32 %v5917_v37, %v8112_v38 }
 0xc04   : > { %v3434_v45 = vadd.f32 %v3433_v42, %v8107_v10  ;;  %v5918_v46 = vpop.f32.mrb[46].mxu0 }
 0xc05   : > { %v3436_v9 = vpop.f32.mrb[47].mxu0  ;;  %v3445_v20 = vadd.f32 %v5918_v46, %v8126_v50  ;;  %v3454_v52 = vsel %vm1554_vm1, %v3442_v47, -inf }
 0xc06   : > { %v3437_v18 = vadd.f32 %v3436_v9, %v8117_v39  ;;  %v3448_v49 = vsel %vm1554_vm1, %v3434_v45, -inf }
 0xc07   : > { %3449 = vmax.xlane.f32.xlu0 %v3448_v49  ;;  %v3457_v55 = vsel %vm1554_vm1, %v3445_v20, -inf }
 0xc08   : > { %v3451_v51 = vsel %vm1554_vm1, %v3437_v18, -inf }
 0xc09   : > { %3452 = vmax.xlane.f32.xlu1 %v3451_v51 }
 0xc0b   : > { %3455 = vmax.xlane.f32.xlu0 %v3454_v52 }
 0xc0f   : > { %3458 = vmax.xlane.f32.xlu0 %v3457_v55 }
 0xc26   : > { %v3330_v29 = vpop.f32.mrb[36].mxu1 }
 0xc27   : > { %v3331_v16 = vadd.f32 %v3330_v29, %v2898_v25  ;;  %v3332_v33 = vpop.f32.mrb[37].mxu1 }
 0xc28   : > { %v3333_v35 = vadd.f32 %v3332_v33, %v2902_v21  ;;  %v3334_v37 = vpop.f32.mrb[38].mxu1 }
 0xc29   : > { %v3336_v46 = vpop.f32.mrb[39].mxu1 }
 0xc75   : > { %v5933_v40 = vpop.f32.mrb[48].mxu0 }
 0xc76   : > { %v3607_v61 = vpop.f32.mrb[49].mxu0  ;;  %v8136_v36 = vadd.f32 %v5933_v40, %v8112_v38 }
 0xc77   : > { %v8133_v30 = vadd.f32 %v3607_v61, %v8107_v10  ;;  %v5934_v2 = vpop.f32.mrb[50].mxu0 }
 0xc78   : > { %v3610_v3 = vpop.f32.mrb[51].mxu0  ;;  %v8144_v5 = vadd.f32 %v5934_v2, %v8126_v50  ;;  %v3628_v27 = vsel %vm1554_vm1, %v8136_v36, -inf  ;;  %v3340_v2 = vpop.f32.mrb[40].mxu1 }
 0xc79   : > { %v8139_v63 = vadd.f32 %v3610_v3, %v8117_v39  ;;  %v3622_v4 = vsel %vm1554_vm1, %v8133_v30, -inf  ;;  %v3342_v3 = vpop.f32.mrb[41].mxu1 }
 0xc7a   : > { %3623 = vmax.xlane.f32.xlu1 %v3622_v4  ;;  %v3631_v6 = vsel %vm1554_vm1, %v8144_v5, -inf  ;;  %v3344_v4 = vpop.f32.mrb[42].mxu1 }
 0xc7b   : > { %v3625_v43 = vsel %vm1554_vm1, %v8139_v63, -inf }
 0xc7c   : > { %3626 = vmax.xlane.f32.xlu0 %v3625_v43  ;;  %v3346_v43 = vpop.f32.mrb[43].mxu1 }
 0xc7e   : > { %3629 = vmax.xlane.f32.xlu1 %v3628_v27  ;;  %v3341_v27 = vadd.f32 %v3340_v2, %v2898_v25 }
 0xc80   : > { %3632 = vmax.xlane.f32.xlu0 %v3631_v6  ;;  %v3343_v6 = vadd.f32 %v3342_v3, %v2902_v21 }
 0xc94   : > { %v3450_v7 = vpop.xlane.xlu0 %3449 }
 0xc95   : > { %v3460_v56 = vsub.f32 %v3434_v45, %v3450_v7  ;;  %v3335_v45 = vadd.f32 %v3334_v37, %v2898_v25  ;;  %v3345_v7 = vadd.f32 %v3344_v4, %v2898_v25 }
 0xc96   : > { %v3453_v24 = vpop.xlane.xlu1 %3452 }
 0xc97   : > { %v3464_v11 = vmul.f32 1.442695, %v3460_v56  ;;  %v3461_v60 = vsub.f32 %v3437_v18, %v3453_v24  ;;  %v3385_v49 = vpack.c.bf16 %v3335_v45, %v3331_v16  ;;  %v3347_v56 = vadd.f32 %v3346_v43, %v2902_v21 }
 0xc98   : > { %v3456_v48 = vpop.xlane.xlu0 %3455  ;;  %v3386_v24 = vpack.c.bf16 %v3345_v7, %v3341_v27 }
 0xc99   : > { %v3462_v8 = vsub.f32 %v3442_v47, %v3456_v48  ;;  %v3466_v14 = vmul.f32 1.442695, %v3461_v60  ;;  %v3337_v47 = vadd.f32 %v3336_v46, %v2902_v21  ;;  %5919 = vmatprep.subr.bf16.mxu1 %v3385_v49  ;;  %v8176_v48 = vpack.c.bf16 %v3347_v56, %v3343_v6 }
 0xc9a   : > { %5920 = vmatpush3.bf16.msra.mxu1 %v3385_v49 }
 0xc9b   : > { %v3468_v13 = vmul.f32 1.442695, %v3462_v8  ;;  %v8162_v51 = vpack.c.bf16 %v3337_v47, %v3333_v35  ;;  %5921 = vmatprep.subr.bf16.mxu1 %v3386_v24 }
 0xc9c   : > { %v3459_v62 = vpop.xlane.xlu0 %3458 }
 0xc9d   : > { %6673 = vpow2.f32 %v3468_v13  ;;  %v3463_v1 = vsub.f32 %v3445_v20, %v3459_v62  ;;  %5951 = vmatprep.subr.bf16.mxu0 %v8162_v51 }
 0xc9e   : > { %6675 = vpow2.f32 %v3464_v11  ;;  %5952 = vmatpush3.bf16.msra.mxu0 %v8162_v51  ;;  %5922 = vmatpush3.bf16.msra.mxu1 %v3386_v24 }
 0xc9f   : > { %v3470_v15 = vmul.f32 1.442695, %v3463_v1  ;;  %5953 = vmatprep.subr.bf16.mxu0 %v8176_v48 }
 0xca1   : > { %6677 = vpow2.f32 %v3470_v15 }
 0xca2   : > { %6679 = vpow2.f32 %v3466_v14  ;;  %5954 = vmatpush3.bf16.msra.mxu0 %v8176_v48 }
 0xca7   : > { %v8156_v42 = vpop.eup %6673 }
 0xca8   : > { %v3478_v9 = vsel %vm1554_vm1, %v8156_v42, 0.0  ;;  %v8160_v18 = vpop.eup %6675 }
 0xca9   : > { %3479 = vadd.xlane.f32.xlu1 %v3478_v9  ;;  %v3472_v52 = vsel %vm1554_vm1, %v8160_v18, 0.0 }
 0xcab   : > { %v8164_v20 = vpop.eup %6677 }
 0xcac   : > { %v3481_v55 = vsel %vm1554_vm1, %v8164_v20, 0.0  ;;  %v8171_v40 = vpop.eup %6679 }
 0xcad   : > { %3473 = vadd.xlane.f32.xlu1 %v3472_v52  ;;  %3482 = vadd.xlane.f32.xlu0 %v3481_v55  ;;  %v3475_v61 = vsel %vm1554_vm1, %v8171_v40, 0.0 }
 0xcb1   : > { %3476 = vadd.xlane.f32.xlu0 %v3475_v61 }
 0xd07   : > { %v3624_v8 = vpop.xlane.xlu1 %3623 }
 0xd08   : > { %v3634_v11 = vsub.f32 %v8133_v30, %v3624_v8 }
 0xd09   : > { %v3627_v60 = vpop.xlane.xlu0 %3626 }
 0xd0a   : > { %v3635_v62 = vsub.f32 %v8139_v63, %v3627_v60  ;;  %v3638_v14 = vmul.f32 1.442695, %v3634_v11 }
 0xd0b   : > { %v3630_v13 = vpop.xlane.xlu1 %3629 }
 0xd0c   : > { %v3636_v1 = vsub.f32 %v8136_v36, %v3630_v13  ;;  %v3640_v31 = vmul.f32 1.442695, %v3635_v62 }
 0xd0d   : > { %v3633_v15 = vpop.xlane.xlu0 %3632 }
 0xd0e   : > { %v3642_v17 = vmul.f32 1.442695, %v3636_v1  ;;  %v3637_v25 = vsub.f32 %v8144_v5, %v3633_v15 }
 0xd10   : > { %6681 = vpow2.f32 %v3642_v17  ;;  %v3644_v21 = vmul.f32 1.442695, %v3637_v25  ;;  %v3744_v17 = vsel %vm1492_vm0, %v8041_v57, 0  ;;  %v3747_v25 = vsel %vm1492_vm0, %v8046_v26, 0 }
 0xd11   : > { %6683 = vpow2.f32 %v3638_v14 }
 0xd12   : > { %6685 = vpow2.f32 %v3644_v21 }
 0xd13   : > { %6687 = vpow2.f32 %v3640_v31 }
 0xd1a   : > { %v6682_v29 = vpop.eup %6681 }
 0xd1b   : > { %v6684_v16 = vpop.eup %6683  ;;  %v3652_v30 = vsel %vm1554_vm1, %v6682_v29, 0.0 }
 0xd1c   : > { %v6686_v33 = vpop.eup %6685  ;;  %3653 = vadd.xlane.f32.xlu1 %v3652_v30  ;;  %v3646_v35 = vsel %vm1554_vm1, %v6684_v16, 0.0 }
 0xd1d   : > { %v3655_v63 = vsel %vm1554_vm1, %v6686_v33, 0.0  ;;  %v6688_v36 = vpop.eup %6687 }
 0xd1e   : > { %3656 = vadd.xlane.f32.xlu0 %v3655_v63  ;;  %v3649_v5 = vsel %vm1554_vm1, %v6688_v36, 0.0 }
 0xd20   : > { %3647 = vadd.xlane.f32.xlu1 %v3646_v35 }
 0xd22   : > { %3650 = vadd.xlane.f32.xlu0 %v3649_v5 }
 0xd31   : > { %3670 = vrot.lane.b32.xlu1 %v3385_v49, %s7045_s0 }
 0xd36   : > { %v3480_v37 = vpop.xlane.xlu1 %3479 }
 0xd38   : > { %3672 = vrot.lane.b32.xlu0 %v3386_v24, %s7045_s0 }
 0xd3a   : > { %v3474_v45 = vpop.xlane.xlu1 %3473  ;;  %v3483_v46 = vpop.xlane.xlu0 %3482 }
 0xd3b   : > { %6689 = vrcp.f32 %v3483_v46 }
 0xd3c   : > { %6691 = vrcp.f32 %v3474_v45 }
 0xd3d   : > { %6693 = vrcp.f32 %v3480_v37 }
 0xd3e   : > { %v3477_v9 = vpop.xlane.xlu0 %3476 }
 0xd3f   : > { %6695 = vrcp.f32 %v3477_v9 }
 0xd45   : > { %v6690_v47 = vpop.eup %6689 }
 0xd46   : > { %v6692_v52 = vpop.eup %6691  ;;  %v3491_v2 = vmul.f32 %v6690_v47, %v8164_v20 }
 0xd47   : > { %v6694_v55 = vpop.eup %6693  ;;  %v3488_v3 = vmul.f32 %v6692_v52, %v8160_v18 }
 0xd48   : > { %v3490_v4 = vmul.f32 %v6694_v55, %v8156_v42 }
 0xd49   : > { %v6696_v61 = vpop.eup %6695 }
 0xd4a   : > { %v3489_v49 = vmul.f32 %v6696_v61, %v8171_v40  ;;  %v3493_v27 = vpack.c.bf16 %v3491_v2, %v3490_v4 }
 0xd4c   : > { %v3492_v43 = vpack.c.bf16 %v3489_v49, %v3488_v3 }
 0xd4e   : > { %5923 = vmatprep.mubr.msk.bf16.mxu1 %vm1554_vm1, %v3492_v43 }
 0xd4f   : > { %5924 = vmatmul.mubr.msk.bf16.vlgmr.msra.gmra.mrb[44].mxu1 %vm1554_vm1, %v3493_v27 }
 0xda9   : > { %v3654_v6 = vpop.xlane.xlu1 %3653 }
 0xdab   : > { %v3657_v7 = vpop.xlane.xlu0 %3656 }
 0xdac   : > { %6697 = vrcp.f32 %v3657_v7 }
 0xdad   : > { %v3648_v56 = vpop.xlane.xlu1 %3647 }
 0xdae   : > { %6699 = vrcp.f32 %v3648_v56 }
 0xdaf   : > { %6701 = vrcp.f32 %v3654_v6  ;;  %v3651_v24 = vpop.xlane.xlu0 %3650 }
 0xdb0   : > { %6703 = vrcp.f32 %v3651_v24 }
 0xdb1   : > { %v3671_v20 = vpop.permute.xlu1 %3670 }
 0xdb2   : > { %5935 = vmatprep.subr.bf16.mxu1 %v3671_v20 }
 0xdb3   : > { %5936 = vmatpush3.bf16.msra.mxu1 %v3671_v20  ;;  %v3673_v18 = vpop.permute.xlu0 %3672 }
 0xdb4   : > { %5937 = vmatprep.subr.bf16.mxu1 %v3673_v18 }
 0xdb6   : > { %v6698_v42 = vpop.eup %6697 }
 0xdb7   : > { %5938 = vmatpush3.bf16.msra.mxu1 %v3673_v18  ;;  %v3665_v60 = vmul.f32 %v6698_v42, %v6686_v33 }
 0xdb8   : > { %v6700_v40 = vpop.eup %6699  ;;  %5987 = vmatprep.subr.msk.bf16.mxu1 %vm1492_vm0, %v8041_v57 }
 0xdb9   : > { %v6702_v8 = vpop.eup %6701  ;;  %v3662_v13 = vmul.f32 %v6700_v40, %v6684_v16 }
 0xdba   : > { %v6704_v11 = vpop.eup %6703  ;;  %v3664_v1 = vmul.f32 %v6702_v8, %v6682_v29 }
 0xdbb   : > { %v3663_v62 = vmul.f32 %v6704_v11, %v6688_v36 }
 0xdbc   : > { %v3667_v15 = vpack.c.bf16 %v3665_v60, %v3664_v1 }
 0xdbd   : > { %v3666_v14 = vpack.c.bf16 %v3663_v62, %v3662_v13 }
 0xdbf   : > { %5939 = vmatprep.mubr.msk.bf16.mxu1 %vm1554_vm1, %v3666_v14 }
 0xdc0   : > { %5940 = vmatmul.mubr.msk.bf16.vlgmr.msra.gmra.mrb[48].mxu1 %vm1554_vm1, %v3667_v15 }
 0xdc1   : > { %5944 = vmatpush3.bf16.xpose.msra.mxu1 %v3744_v17  ;;  %5947 = vmatprep.mubr.msk.bf16.mxu1 %vm1492_vm0, %v8056_v32 }
 0xdc2   : > { %5988 = vmatprep.subr.msk.bf16.mxu1 %vm1492_vm0, %v8046_v26 }
 0xdc9   : > { %5946 = vmatpush3.bf16.xpose.msra.mxu1 %v3747_v25 }
 0xdd0   : > { %5948 = vmatmul.mubr.msk.bf16.vlgmr.msra.gmra.mrb[52].mxu1 %vm1492_vm0, %v8061_v0 }
 0xe22   : > { %v8210_v31 = vpop.f32.mrb[44].mxu1 }
 0xe23   : > { %v8212_v21 = vpop.f32.mrb[45].mxu1 }
 0xe24   : > { %v8214_v29 = vpop.f32.mrb[46].mxu1 }
 0xe25   : > { %v8216_v16 = vpop.f32.mrb[47].mxu1 }
 0xe93   : > { %v8218_v30 = vpop.f32.mrb[48].mxu1 }
 0xe94   : > { %v8220_v33 = vpop.f32.mrb[49].mxu1 }
 0xe95   : > { %v8222_v63 = vpop.f32.mrb[50].mxu1 }
 0xe96   : > { %v6110_v36 = vpack.i.bf16 %v8222_v63, %v8218_v30  ;;  %v8226_v35 = vpop.f32.mrb[51].mxu1 }
 0xe97   : > { %v6100_v5 = vpack.i.bf16 %v8226_v35, %v8220_v33 }
 0xea3   : > { %v5949_v37 = vpop.f32.mrb[52].mxu1 }
 0xea4   : > { %v3783_v45 = vpop.f32.mrb[53].mxu1  ;;  %v3792_v52 = vadd.f32 %v5949_v37, %v8112_v38 }
 0xea5   : > { %v3784_v46 = vadd.f32 %v3783_v45, %v8107_v10  ;;  %v5950_v9 = vpop.f32.mrb[54].mxu1 }
 0xea6   : > { %v3786_v47 = vpop.f32.mrb[55].mxu1  ;;  %v3795_v2 = vadd.f32 %v5950_v9, %v8126_v50  ;;  %v3804_v49 = vsel %vm1554_vm1, %v3792_v52, -inf }
 0xea7   : > { %v3787_v55 = vadd.f32 %v3786_v47, %v8117_v39  ;;  %v3798_v61 = vsel %vm1554_vm1, %v3784_v46, -inf }
 0xea8   : > { %3799 = vmax.xlane.f32.xlu1 %v3798_v61  ;;  %v3807_v4 = vsel %vm1554_vm1, %v3795_v2, -inf }
 0xea9   : > { %v3801_v3 = vsel %vm1554_vm1, %v3787_v55, -inf }
 0xeaa   : > { %3802 = vmax.xlane.f32.xlu0 %v3801_v3 }
 0xeac   : > { %3805 = vmax.xlane.f32.xlu1 %v3804_v49 }
 0xeae   : > { %3808 = vmax.xlane.f32.xlu0 %v3807_v4 }
 0xf35   : > { %v3800_v43 = vpop.xlane.xlu1 %3799 }
 0xf36   : > { %v3810_v27 = vsub.f32 %v3784_v46, %v3800_v43 }
 0xf37   : > { %v3803_v6 = vpop.xlane.xlu0 %3802 }
 0xf38   : > { %v3811_v7 = vsub.f32 %v3787_v55, %v3803_v6  ;;  %v3814_v18 = vmul.f32 1.442695, %v3810_v27 }
 0xf39   : > { %v3806_v56 = vpop.xlane.xlu1 %3805 }
 0xf3a   : > { %v3816_v24 = vmul.f32 1.442695, %v3811_v7  ;;  %v3812_v20 = vsub.f32 %v3792_v52, %v3806_v56 }
 0xf3b   : > { %v3809_v42 = vpop.xlane.xlu0 %3808 }
 0xf3c   : > { %6705 = vpow2.f32 %v3816_v24  ;;  %v3818_v40 = vmul.f32 1.442695, %v3812_v20  ;;  %v3813_v8 = vsub.f32 %v3795_v2, %v3809_v42 }
 0xf3e   : > { %6707 = vpow2.f32 %v3818_v40  ;;  %v3820_v11 = vmul.f32 1.442695, %v3813_v8 }
 0xf3f   : > { %6709 = vpow2.f32 %v3814_v18 }
 0xf40   : > { %6711 = vpow2.f32 %v3820_v11 }
 0xf46   : > { %v6706_v60 = vpop.eup %6705 }
 0xf47   : > { %v3825_v13 = vsel %vm1554_vm1, %v6706_v60, 0.0 }
 0xf48   : > { %v6708_v62 = vpop.eup %6707  ;;  %3826 = vadd.xlane.f32.xlu0 %v3825_v13 }
 0xf49   : > { %v6710_v1 = vpop.eup %6709  ;;  %v3828_v14 = vsel %vm1554_vm1, %v6708_v62, 0.0 }
 0xf4a   : > { %v6712_v15 = vpop.eup %6711  ;;  %3829 = vadd.xlane.f32.xlu1 %v3828_v14  ;;  %v3822_v25 = vsel %vm1554_vm1, %v6710_v1, 0.0 }
 0xf4b   : > { %v3831_v17 = vsel %vm1554_vm1, %v6712_v15, 0.0 }
 0xf4c   : > { %3832 = vadd.xlane.f32.xlu0 %v3831_v17 }
 0xf4e   : > { %3823 = vadd.xlane.f32.xlu1 %v3822_v25 }
 0xf5f   : > { %3907 = vrot.lane.b32.xlu1 %v8041_v57, %s7045_s0 }
 0xf62   : > { %3909 = vrot.lane.b32.xlu0 %v8046_v26, %s7045_s0 }
 0xf63   : > { %3901 = vrot.lane.b32.xlu1 %v8056_v32, %s7045_s0 }
 0xf67   : > { %3903 = vrot.lane.b32.xlu1 %v8061_v0, %s7045_s0 }
 0xfd5   : > { %v3827_v37 = vpop.xlane.xlu0 %3826 }
 0xfd6   : > { %6713 = vrcp.f32 %v3827_v37 }
 0xfd7   : > { %v3830_v45 = vpop.xlane.xlu1 %3829 }
 0xfd9   : > { %v3833_v46 = vpop.xlane.xlu0 %3832 }
 0xfda   : > { %6715 = vrcp.f32 %v3833_v46 }
 0xfdb   : > { %6717 = vrcp.f32 %v3830_v45  ;;  %v3824_v9 = vpop.xlane.xlu1 %3823 }
 0xfdc   : > { %6719 = vrcp.f32 %v3824_v9 }
 0xfdd   : > { %v3910_v27 = vpop.permute.xlu0 %3909 }
 0xfde   : > { %v3921_v6 = vsel %vm1492_vm0, %v3910_v27, 0 }
 0xfdf   : > { %v3908_v47 = vpop.permute.xlu1 %3907 }
 0xfe0   : > { %5989 = vmatprep.subr.msk.bf16.mxu0 %vm1492_vm0, %v3908_v47  ;;  %v6714_v57 = vpop.eup %6713  ;;  %v3918_v4 = vsel %vm1492_vm0, %v3908_v47, 0 }
 0xfe1   : > { %v3839_v2 = vmul.f32 %v6714_v57, %v6706_v60 }
 0xfe3   : > { %v3902_v43 = vpop.permute.xlu1 %3901 }
 0xfe4   : > { %v6716_v52 = vpop.eup %6715 }
 0xfe5   : > { %v6718_v26 = vpop.eup %6717  ;;  %v3841_v61 = vmul.f32 %v6716_v52, %v6712_v15 }
 0xfe6   : > { %v6720_v55 = vpop.eup %6719  ;;  %v3840_v3 = vmul.f32 %v6718_v26, %v6708_v62 }
 0xfe7   : > { %v3838_v32 = vmul.f32 %v6720_v55, %v6710_v1  ;;  %v3904_v7 = vpop.permute.xlu1 %3903 }
 0xfe8   : > { %v3843_v49 = vpack.c.bf16 %v3841_v61, %v3840_v3 }
 0xfe9   : > { %v3842_v0 = vpack.c.bf16 %v3839_v2, %v3838_v32 }
 0xfeb   : > { %5955 = vmatprep.mubr.msk.bf16.mxu0 %vm1554_vm1, %v3842_v0 }
 0xfec   : > { %5956 = vmatmul.mubr.msk.bf16.vlgmr.msra.gmra.mrb[52].mxu0 %vm1554_vm1, %v3843_v49 }
 0xfed   : > { %5960 = vmatpush3.bf16.xpose.msra.mxu0 %v3918_v4  ;;  %5963 = vmatprep.mubr.msk.bf16.mxu0 %vm1492_vm0, %v3902_v43 }
 0xfee   : > { %5990 = vmatprep.subr.msk.bf16.mxu0 %vm1492_vm0, %v3910_v27 }
 0xff5   : > { %5962 = vmatpush3.bf16.xpose.msra.mxu0 %v3921_v6 }
 0xffc   : > { %5964 = vmatmul.mubr.msk.bf16.vlgmr.msra.gmra.mrb[56].mxu0 %vm1492_vm0, %v3904_v7 }
0x10bf   : > { %v8258_v56 = vpop.f32.mrb[52].mxu0 }
0x10c0   : > { %v8260_v24 = vpop.f32.mrb[53].mxu0 }
0x10c1   : > { %v8262_v20 = vpop.f32.mrb[54].mxu0 }
0x10c2   : > { %v8264_v18 = vpop.f32.mrb[55].mxu0 }
0x10cf   : > { %v5965_v42 = vpop.f32.mrb[56].mxu0 }
0x10d0   : > { %v3957_v40 = vpop.f32.mrb[57].mxu0  ;;  %v3966_v13 = vadd.f32 %v5965_v42, %v8112_v38 }
0x10d1   : > { %v3958_v8 = vadd.f32 %v3957_v40, %v8107_v10  ;;  %v5966_v11 = vpop.f32.mrb[58].mxu0 }
0x10d2   : > { %v3960_v60 = vpop.f32.mrb[59].mxu0  ;;  %v3969_v15 = vadd.f32 %v5966_v11, %v8126_v50  ;;  %v3978_v17 = vsel %vm1554_vm1, %v3966_v13, -inf }
0x10d3   : > { %v3961_v62 = vadd.f32 %v3960_v60, %v8117_v39  ;;  %v3972_v1 = vsel %vm1554_vm1, %v3958_v8, -inf }
0x10d4   : > { %3973 = vmax.xlane.f32.xlu0 %v3972_v1  ;;  %v3981_v25 = vsel %vm1554_vm1, %v3969_v15, -inf }
0x10d5   : > { %v3975_v14 = vsel %vm1554_vm1, %v3961_v62, -inf }
0x10d6   : > { %3976 = vmax.xlane.f32.xlu1 %v3975_v14 }
0x10d8   : > { %3979 = vmax.xlane.f32.xlu0 %v3978_v17  ;;  %v6457_v17 = vld [vmem:[%s7420_s12] ss:$8 sps:$4 sm:$0xff]  }
0x10dc   : > { %3982 = vmax.xlane.f32.xlu0 %v3981_v25  ;;  %v6459_v25 = vld [vmem:[%s7420_s12 + $0x4] ss:$8 sps:$4 sm:$0xff]  }
0x1161   : > { %v3974_v10 = vpop.xlane.xlu0 %3973 }
0x1162   : > { %v3984_v37 = vsub.f32 %v3958_v8, %v3974_v10  ;;  %v6462_v10 = vld [vmem:[%s7420_s12 + $0x14] ss:$8 sps:$4 sm:$0xff]  }
0x1163   : > { %v3977_v45 = vpop.xlane.xlu1 %3976 }
0x1164   : > { %v3988_v39 = vmul.f32 1.442695, %v3984_v37  ;;  %v3985_v9 = vsub.f32 %v3961_v62, %v3977_v45  ;;  %v6460_v37 = vld [vmem:[%s7420_s12 + $0x10] ss:$8 sps:$4 sm:$0xff]   ;;  %v6465_v45 = vld [vmem:[%s7420_s12 + $0x24] ss:$8 sps:$4 sm:$0xff]  }
0x1165   : > { %v3980_v38 = vpop.xlane.xlu0 %3979 }
0x1166   : > { %v3986_v46 = vsub.f32 %v3966_v13, %v3980_v38  ;;  %v3990_v26 = vmul.f32 1.442695, %v3985_v9  ;;  %v6463_v38 = vld [vmem:[%s7420_s12 + $0x20] ss:$8 sps:$4 sm:$0xff]   ;;  %v6471_v9 = vld [vmem:[%s7420_s12 + $0x44] ss:$8 sps:$4 sm:$0xff]  }
0x1168   : > { %v3992_v47 = vmul.f32 1.442695, %v3986_v46  ;;  %v6468_v46 = vld [vmem:[%s7420_s12 + $0x34] ss:$8 sps:$4 sm:$0xff]  }
0x1169   : > { %v3983_v57 = vpop.xlane.xlu0 %3982 }
0x116a   : > { %6721 = vpow2.f32 %v3992_v47  ;;  %v3987_v52 = vsub.f32 %v3969_v15, %v3983_v57  ;;  %v6469_v47 = vld [vmem:[%s7420_s12 + $0x40] ss:$8 sps:$4 sm:$0xff]   ;;  %v6474_v57 = vld [vmem:[%s7420_s12 + $0x54] ss:$8 sps:$4 sm:$0xff]  }
0x116b   : > { %6723 = vpow2.f32 %v3988_v39  ;;  %v6466_v39 = vld [vmem:[%s7420_s12 + $0x30] ss:$8 sps:$4 sm:$0xff]  }
0x116c   : > { %v3994_v50 = vmul.f32 1.442695, %v3987_v52  ;;  %v6472_v52 = vld [vmem:[%s7420_s12 + $0x50] ss:$8 sps:$4 sm:$0xff]  }
0x116e   : > { %6725 = vpow2.f32 %v3994_v50  ;;  %v6475_v50 = vld [vmem:[%s7420_s12 + $0x60] ss:$8 sps:$4 sm:$0xff]  }
0x116f   : > { %6727 = vpow2.f32 %v3990_v26  ;;  %v6477_v26 = vld [vmem:[%s7420_s12 + $0x64] ss:$8 sps:$4 sm:$0xff]  }
0x1174   : > { %v6722_v55 = vpop.eup %6721 }
0x1175   : > { %v4002_v61 = vsel %vm1554_vm1, %v6722_v55, 0.0  ;;  %v6724_v32 = vpop.eup %6723 }
0x1176   : > { %4003 = vadd.xlane.f32.xlu1 %v4002_v61  ;;  %v3996_v3 = vsel %vm1554_vm1, %v6724_v32, 0.0  ;;  %v6478_v61 = vld [vmem:[%s7420_s12 + $0x70] ss:$8 sps:$4 sm:$0xff]  }
0x1178   : > { %v6726_v2 = vpop.eup %6725 }
0x1179   : > { %v4005_v0 = vsel %vm1554_vm1, %v6726_v2, 0.0  ;;  %v6728_v49 = vpop.eup %6727 }
0x117a   : > { %3997 = vadd.xlane.f32.xlu1 %v3996_v3  ;;  %4006 = vadd.xlane.f32.xlu0 %v4005_v0  ;;  %v3999_v4 = vsel %vm1554_vm1, %v6728_v49, 0.0  ;;  %v6486_v3 = vld [vmem:[%s7420_s12 + $0x94] ss:$8 sps:$4 sm:$0xff]   ;;  %v6484_v0 = vld [vmem:[%s7420_s12 + $0x90] ss:$8 sps:$4 sm:$0xff]  }
0x117e   : > { %4000 = vadd.xlane.f32.xlu0 %v3999_v4  ;;  %v6487_v4 = vld [vmem:[%s7420_s12 + $0xa0] ss:$8 sps:$4 sm:$0xff]  }
0x118b   : > { %4020 = vrot.lane.b32.xlu1 %v8162_v51, %s7045_s0 }
0x1194   : > { %4022 = vrot.lane.b32.xlu0 %v8176_v48, %s7045_s0 }
0x1203   : > { %v4004_v43 = vpop.xlane.xlu1 %4003 }
0x1207   : > { %v3998_v27 = vpop.xlane.xlu1 %3997  ;;  %v4007_v6 = vpop.xlane.xlu0 %4006 }
0x1208   : > { %6729 = vrcp.f32 %v4007_v6  ;;  %v6495_v6 = vld [vmem:[%s7420_s12 + $0xc4] ss:$8 sps:$4 sm:$0xff]  }
0x1209   : > { %6731 = vrcp.f32 %v3998_v27  ;;  %v6490_v27 = vld [vmem:[%s7420_s12 + $0xb0] ss:$8 sps:$4 sm:$0xff]  }
0x120a   : > { %6733 = vrcp.f32 %v4004_v43  ;;  %v6492_v43 = vld [vmem:[%s7420_s12 + $0xb4] ss:$8 sps:$4 sm:$0xff]  }
0x120b   : > { %v4021_v7 = vpop.permute.xlu1 %4020  ;;  %v4001_v42 = vpop.xlane.xlu0 %4000 }
0x120c   : > { %6735 = vrcp.f32 %v4001_v42  ;;  %5967 = vmatprep.subr.bf16.mxu1 %v4021_v7  ;;  %v6498_v42 = vld [vmem:[%s7420_s12 + $0xd4] ss:$8 sps:$4 sm:$0xff]  }
0x120d   : > { %5968 = vmatpush3.bf16.msra.mxu1 %v4021_v7  ;;  %v6493_v7 = vld [vmem:[%s7420_s12 + $0xc0] ss:$8 sps:$4 sm:$0xff]  }
0x120f   : > { %v4023_v40 = vpop.permute.xlu0 %4022 }
0x1210   : > { %5969 = vmatprep.subr.bf16.mxu1 %v4023_v40 }
0x1211   : > { %5970 = vmatpush3.bf16.msra.mxu1 %v4023_v40  ;;  %v6496_v40 = vld [vmem:[%s7420_s12 + $0xd0] ss:$8 sps:$4 sm:$0xff]  }
0x1212   : > { %v6730_v51 = vpop.eup %6729  ;;  %4293 = vmatprep.subr.bf16.mxu1 %v6459_v25 }
0x1213   : > { %v6732_v8 = vpop.eup %6731  ;;  %v4015_v60 = vmul.f32 %v6730_v51, %v6726_v2  ;;  %v6481_v2 = vld [vmem:[%s7420_s12 + $0x80] ss:$8 sps:$4 sm:$0xff]  }
0x1214   : > { %v6734_v48 = vpop.eup %6733  ;;  %v4012_v13 = vmul.f32 %v6732_v8, %v6724_v32  ;;  %v6483_v32 = vld [vmem:[%s7420_s12 + $0x84] ss:$8 sps:$4 sm:$0xff]   ;;  %v6499_v51 = vld [vmem:[%s7420_s12 + $0xe0] ss:$8 sps:$4 sm:$0xff]  }
0x1215   : > { %v4014_v1 = vmul.f32 %v6734_v48, %v6722_v55  ;;  %v6480_v55 = vld [vmem:[%s7420_s12 + $0x74] ss:$8 sps:$4 sm:$0xff]   ;;  %v6501_v8 = vld [vmem:[%s7420_s12 + $0xe4] ss:$8 sps:$4 sm:$0xff]  }
0x1216   : > { %v6736_v11 = vpop.eup %6735  ;;  %v6504_v48 = vld [vmem:[%s7420_s12 + $0xf4] ss:$8 sps:$4 sm:$0xff]  }
0x1217   : > { %v4013_v62 = vmul.f32 %v6736_v11, %v6728_v49  ;;  %v4017_v15 = vpack.c.bf16 %v4015_v60, %v4014_v1  ;;  %v6489_v49 = vld [vmem:[%s7420_s12 + $0xa4] ss:$8 sps:$4 sm:$0xff]   ;;  %v6502_v11 = vld [vmem:[%s7420_s12 + $0xf0] ss:$8 sps:$4 sm:$0xff]  }
0x1219   : > { %v4016_v14 = vpack.c.bf16 %v4013_v62, %v4012_v13 }
0x121b   : > { %5971 = vmatprep.mubr.msk.bf16.mxu1 %vm1554_vm1, %v4016_v14 }
0x121c   : > { %5972 = vmatmul.mubr.msk.bf16.vlgmr.msra.gmra.mrb[56].mxu1 %vm1554_vm1, %v4017_v15 }
0x121d   : > { %4294 = vmatpush1.bf16.msra.mxu1 %v6457_v17 }
0x121e   : > { %4295 = vmatprep.subr.bf16.mxu1 %v6462_v10 }
0x1221   : > { %4296 = vmatpush1.bf16.msra.mxu1 %v6460_v37 }
0x1222   : > { %4297 = vmatprep.subr.bf16.mxu1 %v6465_v45 }
0x1225   : > { %4298 = vmatpush1.bf16.msra.mxu1 %v6463_v38 }
0x1226   : > { %4299 = vmatprep.subr.bf16.mxu1 %v6468_v46 }
0x1229   : > { %4300 = vmatpush1.bf16.msra.mxu1 %v6466_v39 }
0x122a   : > { %4301 = vmatprep.subr.bf16.mxu1 %v6471_v9 }
0x122d   : > { %4302 = vmatpush1.bf16.msra.mxu1 %v6469_v47 }
0x122e   : > { %4303 = vmatprep.subr.bf16.mxu1 %v6474_v57 }
0x1231   : > { %4304 = vmatpush1.bf16.msra.mxu1 %v6472_v52 }
0x1232   : > { %4305 = vmatprep.subr.bf16.mxu1 %v6477_v26 }
0x1235   : > { %4306 = vmatpush1.bf16.msra.mxu1 %v6475_v50 }
0x1236   : > { %4307 = vmatprep.subr.bf16.mxu1 %v6480_v55  ;;  %v8343_v55 = vsub.s32 3, %v7577_v53 }
0x1239   : > { %4308 = vmatpush1.bf16.msra.mxu1 %v6478_v61  ;;  %v8351_v61 = vld [vmem:[%s7439_s17 + $0x8] sm:$0xff] }
0x123a   : > { %4309 = vmatprep.subr.bf16.mxu1 %v6483_v32  ;;  %v4132_v32 = vrot.slane %v8351_v61, %v8343_v55 }
0x123d   : > { %4310 = vmatpush1.bf16.msra.mxu1 %v6481_v2 }
0x123e   : > { %4311 = vmatprep.subr.bf16.mxu1 %v6486_v3 }
0x1241   : > { %4312 = vmatpush1.bf16.msra.mxu1 %v6484_v0 }
0x1242   : > { %4313 = vmatprep.subr.bf16.mxu1 %v6489_v49 }
0x1245   : > { %4314 = vmatpush1.bf16.msra.mxu1 %v6487_v4 }
0x1246   : > { %4315 = vmatprep.subr.bf16.mxu1 %v6492_v43 }
0x1249   : > { %4316 = vmatpush1.bf16.msra.mxu1 %v6490_v27 }
0x124a   : > { %4317 = vmatprep.subr.bf16.mxu1 %v6495_v6 }
0x124d   : > { %4318 = vmatpush1.bf16.msra.mxu1 %v6493_v7 }
0x124e   : > { %4319 = vmatprep.subr.bf16.mxu1 %v6498_v42 }
0x1251   : > { %4320 = vmatpush1.bf16.msra.mxu1 %v6496_v40 }
0x1252   : > { %4321 = vmatprep.subr.bf16.mxu1 %v6501_v8 }
0x1255   : > { %4322 = vmatpush1.bf16.msra.mxu1 %v6499_v51 }
0x1256   : > { %4323 = vmatprep.subr.bf16.mxu1 %v6504_v48 }
0x1259   : > { %4324 = vmatpush1.bf16.msra.mxu1 %v6502_v11 }
0x12ef   : > { %v5973_v60 = vpop.f32.mrb[56].mxu1 }
0x12f0   : > { %v4066_v13 = vpop.f32.mrb[57].mxu1 }
0x12f1   : > { %v5974_v62 = vpop.f32.mrb[58].mxu1 }
0x12f2   : > { %v6105_v1 = vpack.i.bf16 %v5974_v62, %v5973_v60  ;;  %v4069_v14 = vpop.f32.mrb[59].mxu1 }
0x12f3   : > { %v6095_v15 = vpack.i.bf16 %v4069_v14, %v4066_v13 }
0x12f4   : > { %6106 = vrot.lane.b32.xlu0 %v6105_v1, %s7045_s0 }
0x12f5   : > { %6096 = vrot.lane.b32.xlu1 %v6095_v15, %s7045_s0 }
0x12f9   : > { %6101 = vrot.lane.b32.xlu1 %v6100_v5, %s7045_s0 }
0x12fd   : > { %6111 = vrot.lane.b32.xlu1 %v6110_v36, %s7045_s0 }
0x1366   : > { %v6107_v17 = vpop.permute.xlu0 %6106 }
0x1367   : > { %v6109_v25 = vunpack.i.h.bf16 %v6107_v17  ;;  %v6108_v10 = vunpack.i.l.bf16 %v6107_v17  ;;  %v6097_v37 = vpop.permute.xlu1 %6096  ;;  %v6507_v17 = vld [vmem:[%s7426_s1 + $0x4] ss:$8 sps:$4 sm:$0xff]  }
0x1368   : > { %v6099_v45 = vunpack.i.h.bf16 %v6097_v37  ;;  %v6098_v38 = vunpack.i.l.bf16 %v6097_v37  ;;  %4654 = vmatprep.subr.bf16.mxu0 %v6507_v17  ;;  %v6516_v37 = vld [vmem:[%s7426_s1 + $0x34] ss:$8 sps:$4 sm:$0xff]  }
0x1369   : > { %v4119_v46 = vsel %vm1492_vm0, %v8258_v56, %v6108_v10  ;;  %v4120_v39 = vsel %vm1492_vm0, %v8262_v20, %v6109_v25  ;;  %v6510_v25 = vld [vmem:[%s7426_s1 + $0x14] ss:$8 sps:$4 sm:$0xff]   ;;  %v6511_v10 = vld [vmem:[%s7426_s1 + $0x20] ss:$8 sps:$4 sm:$0xff]  }
0x136a   : > { %v4117_v33 = vsel %vm1492_vm0, %v8260_v24, %v6098_v38  ;;  %v4118_v35 = vsel %vm1492_vm0, %v8264_v18, %v6099_v45  ;;  %v4124_v30 = vpack.c.bf16 %v4120_v39, %v4119_v46  ;;  %v6514_v45 = vld [vmem:[%s7426_s1 + $0x30] ss:$8 sps:$4 sm:$0xff]   ;;  %v6519_v38 = vld [vmem:[%s7426_s1 + $0x44] ss:$8 sps:$4 sm:$0xff]   ;;  %v6517_v46 = vld [vmem:[%s7426_s1 + $0x40] ss:$8 sps:$4 sm:$0xff]  }
0x136b   : > { %v6102_v63 = vpop.permute.xlu1 %6101  ;;  %v4122_v36 = vpack.c.bf16 %v4118_v35, %v4117_v33  ;;  %v6522_v39 = vld [vmem:[%s7426_s1 + $0x54] ss:$8 sps:$4 sm:$0xff]   ;;  %v6520_v33 = vld [vmem:[%s7426_s1 + $0x50] ss:$8 sps:$4 sm:$0xff]   ;;  %v6525_v35 = vld [vmem:[%s7426_s1 + $0x64] ss:$8 sps:$4 sm:$0xff]  }
0x136c   : > { %v6104_v5 = vunpack.i.h.bf16 %v6102_v63  ;;  %v6103_v9 = vunpack.i.l.bf16 %v6102_v63  ;;  %v6528_v63 = vld [vmem:[%s7426_s1 + $0x74] ss:$8 sps:$4 sm:$0xff]  }
0x136d   : > { %4325 = vmatprep.mubr.bf16.mxu1 %v4122_v36  ;;  %v6526_v36 = vld [vmem:[%s7426_s1 + $0x70] ss:$8 sps:$4 sm:$0xff]   ;;  %v6552_v17 = vld [vmem:[%s7426_s1 + $0xf4] ss:$8 sps:$4 sm:$0xff]  }
0x136e   : > { %v4114_v56 = vsel %vm1492_vm0, %v8216_v16, %v6104_v5  ;;  %v4113_v20 = vsel %vm1492_vm0, %v8212_v21, %v6103_v9  ;;  %v8346_v16 = vld [vmem:[%s7439_s17] sm:$0xff] }
0x136f   : > { %v4121_v47 = vpack.c.bf16 %v4114_v56, %v4113_v20  ;;  %v6112_v57 = vpop.permute.xlu1 %6111  ;;  %v4128_v21 = vrot.slane %v8346_v16, %v8343_v55  ;;  %v6531_v5 = vld [vmem:[%s7426_s1 + $0x84] ss:$8 sps:$4 sm:$0xff]   ;;  %v6529_v9 = vld [vmem:[%s7426_s1 + $0x80] ss:$8 sps:$4 sm:$0xff]   ;;  %v6534_v56 = vld [vmem:[%s7426_s1 + $0x94] ss:$8 sps:$4 sm:$0xff]  }
0x1370   : > { %v6114_v24 = vunpack.i.h.bf16 %v6112_v57  ;;  %v6113_v52 = vunpack.i.l.bf16 %v6112_v57  ;;  %v6532_v20 = vld [vmem:[%s7426_s1 + $0x90] ss:$8 sps:$4 sm:$0xff]  }
0x1371   : > { %4326 = vmatmul.mubr.bf16.vlgmr.msra.gmra.mrb[60].mxu1 %v4121_v47 }
0x1372   : > { %4335 = vmatprep.mubr.bf16.mxu1 %v4124_v30  ;;  %v4115_v18 = vsel %vm1492_vm0, %v8210_v31, %v6113_v52  ;;  %v4116_v26 = vsel %vm1492_vm0, %v8214_v29, %v6114_v24  ;;  %v6523_v30 = vld [vmem:[%s7426_s1 + $0x60] ss:$8 sps:$4 sm:$0xff]  }
0x1373   : > { %v4123_v50 = vpack.c.bf16 %v4116_v26, %v4115_v18 }
0x1379   : > { %4336 = vmatmul.mubr.bf16.gmra.mrb[64].mxu1 %v4123_v50 }
0x1444   : > { %v4327_v2 = vpop.f32.mrb[60].mxu1 }
0x1445   : > { %v4328_v31 = vadd.f32 %v4327_v2, %v4128_v21  ;;  %v4329_v3 = vpop.f32.mrb[61].mxu1 }
0x1446   : > { %v4330_v0 = vadd.f32 %v4329_v3, %v4132_v32  ;;  %v4331_v29 = vpop.f32.mrb[62].mxu1 }
0x1447   : > { %v8356_v49 = vadd.f32 %v4328_v31, %v8009_v22  ;;  %v4332_v4 = vadd.f32 %v4331_v29, %v4128_v21  ;;  %v4333_v43 = vpop.f32.mrb[63].mxu1 }
0x1448   : > { %v8359_v27 = vadd.f32 %v4330_v0, %v8005_v58  ;;  %v4334_v6 = vadd.f32 %v4333_v43, %v4132_v32 }
0x1449   : > { %v8362_v7 = vadd.f32 %v4332_v4, %v8011_v59 }
0x144a   : > { %v8365_v42 = vadd.f32 %v4334_v6, %v8007_v12  ;;  %v4354_v40 = vadd.f32 %v8359_v27, %v8356_v49 }
0x144c   : > { %v4337_v51 = vpop.f32.mrb[64].mxu1  ;;  %4355 = vadd.xlane.f32.xlu0 %v4354_v40  ;;  %v4357_v22 = vadd.f32 %v8365_v42, %v8362_v7 }
0x144d   : > { %v4338_v8 = vadd.f32 %v4337_v51, %v4128_v21  ;;  %v4339_v48 = vpop.f32.mrb[65].mxu1 }
0x144e   : > { %v4340_v58 = vadd.f32 %v4339_v48, %v4132_v32  ;;  %v4341_v11 = vpop.f32.mrb[66].mxu1  ;;  %4358 = vadd.xlane.f32.xlu1 %v4357_v22 }
0x144f   : > { %v8372_v59 = vadd.f32 %v4338_v8, %v8025_v23  ;;  %v4342_v12 = vadd.f32 %v4341_v11, %v4128_v21  ;;  %v4343_v60 = vpop.f32.mrb[67].mxu1 }
0x1450   : > { %v8375_v13 = vadd.f32 %v4340_v58, %v8021_v34  ;;  %v4344_v62 = vadd.f32 %v4343_v60, %v4132_v32  ;;  %v6505_v34 = vld [vmem:[%s7426_s1] ss:$8 sps:$4 sm:$0xff]   ;;  %v6540_v60 = vld [vmem:[%s7426_s1 + $0xb4] ss:$8 sps:$4 sm:$0xff]  }
0x1451   : > { %v8378_v1 = vadd.f32 %v4342_v12, %v8027_v44  ;;  %4655 = vmatpush1.bf16.msra.mxu0 %v6505_v34  ;;  %v6513_v44 = vld [vmem:[%s7426_s1 + $0x24] ss:$8 sps:$4 sm:$0xff]   ;;  %v6535_v12 = vld [vmem:[%s7426_s1 + $0xa0] ss:$8 sps:$4 sm:$0xff]  }
0x1452   : > { %v8381_v14 = vadd.f32 %v4344_v62, %v8023_v19  ;;  %v4360_v23 = vadd.f32 %v8375_v13, %v8372_v59  ;;  %v6508_v19 = vld [vmem:[%s7426_s1 + $0x10] ss:$8 sps:$4 sm:$0xff]   ;;  %4656 = vmatprep.subr.bf16.mxu0 %v6510_v25  ;;  %v6543_v62 = vld [vmem:[%s7426_s1 + $0xc4] ss:$8 sps:$4 sm:$0xff]  }
0x1453   : > { %v6549_v34 = vld [vmem:[%s7426_s1 + $0xe4] ss:$8 sps:$4 sm:$0xff]   ;;  %v6550_v25 = vld [vmem:[%s7426_s1 + $0xf0] ss:$8 sps:$4 sm:$0xff]  }
0x1454   : > { %4361 = vadd.xlane.f32.xlu0 %v4360_v23  ;;  %v4363_v15 = vadd.f32 %v8381_v14, %v8378_v1  ;;  %v6544_v23 = vld [vmem:[%s7426_s1 + $0xd0] ss:$8 sps:$4 sm:$0xff]  }
0x1455   : > { %4657 = vmatpush1.bf16.msra.mxu0 %v6508_v19  ;;  %v6553_v19 = vld [vmem:[%s7428_s4] ss:$8 sps:$4 sm:$0xff]  }
0x1456   : > { %4658 = vmatprep.subr.bf16.mxu0 %v6513_v44  ;;  %v6555_v44 = vld [vmem:[%s7428_s4 + $0x4] ss:$8 sps:$4 sm:$0xff]  }
0x1457   : > { %4919 = vmatprep.subr.bf16.mxu1 %v6555_v44 }
0x1458   : > { %4364 = vadd.xlane.f32.xlu0 %v4363_v15  ;;  %v6547_v15 = vld [vmem:[%s7426_s1 + $0xe0] ss:$8 sps:$4 sm:$0xff]   ;;  %4920 = vmatpush1.bf16.msra.mxu1 %v6553_v19 }
0x1459   : > { %4659 = vmatpush1.bf16.msra.mxu0 %v6511_v10  ;;  %v6558_v10 = vld [vmem:[%s7428_s4 + $0x14] ss:$8 sps:$4 sm:$0xff]  }
0x145a   : > { %4660 = vmatprep.subr.bf16.mxu0 %v6516_v37  ;;  %v6556_v37 = vld [vmem:[%s7428_s4 + $0x10] ss:$8 sps:$4 sm:$0xff]   ;;  %4921 = vmatprep.subr.bf16.mxu1 %v6558_v10 }
0x145c   : > { %4922 = vmatpush1.bf16.msra.mxu1 %v6556_v37 }
0x145d   : > { %4661 = vmatpush1.bf16.msra.mxu0 %v6514_v45  ;;  %v6561_v45 = vld [vmem:[%s7428_s4 + $0x24] ss:$8 sps:$4 sm:$0xff]  }
0x145e   : > { %4662 = vmatprep.subr.bf16.mxu0 %v6519_v38  ;;  %v6559_v38 = vld [vmem:[%s7428_s4 + $0x20] ss:$8 sps:$4 sm:$0xff]   ;;  %4923 = vmatprep.subr.bf16.mxu1 %v6561_v45 }
0x1460   : > { %4924 = vmatpush1.bf16.msra.mxu1 %v6559_v38 }
0x1461   : > { %4663 = vmatpush1.bf16.msra.mxu0 %v6517_v46  ;;  %v6564_v46 = vld [vmem:[%s7428_s4 + $0x34] ss:$8 sps:$4 sm:$0xff]  }
0x1462   : > { %4664 = vmatprep.subr.bf16.mxu0 %v6522_v39  ;;  %v6562_v39 = vld [vmem:[%s7428_s4 + $0x30] ss:$8 sps:$4 sm:$0xff]   ;;  %4925 = vmatprep.subr.bf16.mxu1 %v6564_v46 }
0x1464   : > { %4926 = vmatpush1.bf16.msra.mxu1 %v6562_v39 }
0x1465   : > { %4665 = vmatpush1.bf16.msra.mxu0 %v6520_v33  ;;  %v6567_v33 = vld [vmem:[%s7428_s4 + $0x44] ss:$8 sps:$4 sm:$0xff]  }
0x1466   : > { %4666 = vmatprep.subr.bf16.mxu0 %v6525_v35  ;;  %v6565_v35 = vld [vmem:[%s7428_s4 + $0x40] ss:$8 sps:$4 sm:$0xff]   ;;  %4927 = vmatprep.subr.bf16.mxu1 %v6567_v33 }
0x1468   : > { %4928 = vmatpush1.bf16.msra.mxu1 %v6565_v35 }
0x1469   : > { %4667 = vmatpush1.bf16.msra.mxu0 %v6523_v30  ;;  %v6570_v30 = vld [vmem:[%s7428_s4 + $0x54] ss:$8 sps:$4 sm:$0xff]  }
0x146a   : > { %4668 = vmatprep.subr.bf16.mxu0 %v6528_v63  ;;  %v6568_v63 = vld [vmem:[%s7428_s4 + $0x50] ss:$8 sps:$4 sm:$0xff]   ;;  %4929 = vmatprep.subr.bf16.mxu1 %v6570_v30 }
0x146c   : > { %4930 = vmatpush1.bf16.msra.mxu1 %v6568_v63 }
0x146d   : > { %4669 = vmatpush1.bf16.msra.mxu0 %v6526_v36  ;;  %v6573_v36 = vld [vmem:[%s7428_s4 + $0x64] ss:$8 sps:$4 sm:$0xff]  }
0x146e   : > { %4670 = vmatprep.subr.bf16.mxu0 %v6531_v5  ;;  %v6571_v5 = vld [vmem:[%s7428_s4 + $0x60] ss:$8 sps:$4 sm:$0xff]   ;;  %4931 = vmatprep.subr.bf16.mxu1 %v6573_v36 }
0x1470   : > { %4932 = vmatpush1.bf16.msra.mxu1 %v6571_v5 }
0x1471   : > { %4671 = vmatpush1.bf16.msra.mxu0 %v6529_v9  ;;  %v6576_v9 = vld [vmem:[%s7428_s4 + $0x74] ss:$8 sps:$4 sm:$0xff]  }
0x1472   : > { %4672 = vmatprep.subr.bf16.mxu0 %v6534_v56  ;;  %v6574_v56 = vld [vmem:[%s7428_s4 + $0x70] ss:$8 sps:$4 sm:$0xff]   ;;  %4933 = vmatprep.subr.bf16.mxu1 %v6576_v9 }
0x1474   : > { %4934 = vmatpush1.bf16.msra.mxu1 %v6574_v56 }
0x1475   : > { %4673 = vmatpush1.bf16.msra.mxu0 %v6532_v20  ;;  %v6579_v20 = vld [vmem:[%s7428_s4 + $0x84] ss:$8 sps:$4 sm:$0xff]  }
0x1476   : > { %4935 = vmatprep.subr.bf16.mxu1 %v6579_v20 }
0x14d9   : > { %v4356_v47 = vpop.xlane.xlu0 %4355 }
0x14da   : > { %v4366_v57 = vmul.f32 0.00390625, %v4356_v47  ;;  %v6577_v47 = vld [vmem:[%s7428_s4 + $0x80] ss:$8 sps:$4 sm:$0xff]  }
0x14db   : > { %v4359_v24 = vpop.xlane.xlu1 %4358  ;;  %4936 = vmatpush1.bf16.msra.mxu1 %v6577_v47 }
0x14dc   : > { %v8408_v52 = vsub.f32 %v8356_v49, %v4366_v57  ;;  %v8411_v18 = vsub.f32 %v8359_v27, %v4366_v57  ;;  %v4367_v26 = vmul.f32 0.00390625, %v4359_v24  ;;  %v6582_v57 = vld [vmem:[%s7428_s4 + $0x94] ss:$8 sps:$4 sm:$0xff]   ;;  %v6580_v24 = vld [vmem:[%s7428_s4 + $0x90] ss:$8 sps:$4 sm:$0xff]  }
0x14dd   : > { %4937 = vmatprep.subr.bf16.mxu1 %v6582_v57 }
0x14de   : > { %v4378_v50 = vmul.f32 %v8408_v52, %v8408_v52  ;;  %v4379_v21 = vmul.f32 %v8411_v18, %v8411_v18  ;;  %v8418_v32 = vsub.f32 %v8362_v7, %v4367_v26  ;;  %v8421_v2 = vsub.f32 %v8365_v42, %v4367_v26  ;;  %v6585_v26 = vld [vmem:[%s7428_s4 + $0xa4] ss:$8 sps:$4 sm:$0xff]  }
0x14df   : > { %4938 = vmatpush1.bf16.msra.mxu1 %v6580_v24 }
0x14e0   : > { %v4380_v31 = vmul.f32 %v8418_v32, %v8418_v32  ;;  %v4381_v3 = vmul.f32 %v8421_v2, %v8421_v2  ;;  %v4386_v0 = vadd.f32 %v4379_v21, %v4378_v50  ;;  %v6583_v50 = vld [vmem:[%s7428_s4 + $0xa0] ss:$8 sps:$4 sm:$0xff]   ;;  %4939 = vmatprep.subr.bf16.mxu1 %v6585_v26  ;;  %v6588_v21 = vld [vmem:[%s7428_s4 + $0xb4] ss:$8 sps:$4 sm:$0xff]  }
0x14e1   : > { %v4362_v29 = vpop.xlane.xlu0 %4361 }
0x14e2   : > { %v4368_v49 = vmul.f32 0.00390625, %v4362_v29  ;;  %4387 = vadd.xlane.f32.xlu1 %v4386_v0  ;;  %v4389_v4 = vadd.f32 %v4381_v3, %v4380_v31  ;;  %v6586_v31 = vld [vmem:[%s7428_s4 + $0xb0] ss:$8 sps:$4 sm:$0xff]   ;;  %v6591_v3 = vld [vmem:[%s7428_s4 + $0xc4] ss:$8 sps:$4 sm:$0xff]  }
0x14e3   : > { %4940 = vmatpush1.bf16.msra.mxu1 %v6583_v50  ;;  %v6589_v0 = vld [vmem:[%s7428_s4 + $0xc0] ss:$8 sps:$4 sm:$0xff]   ;;  %v6594_v29 = vld [vmem:[%s7428_s4 + $0xd4] ss:$8 sps:$4 sm:$0xff]  }
0x14e4   : > { %v8428_v43 = vsub.f32 %v8372_v59, %v4368_v49  ;;  %v8431_v27 = vsub.f32 %v8375_v13, %v4368_v49  ;;  %4390 = vadd.xlane.f32.xlu0 %v4389_v4  ;;  %v6537_v59 = vld [vmem:[%s7426_s1 + $0xa4] ss:$8 sps:$4 sm:$0xff]   ;;  %v6538_v13 = vld [vmem:[%s7426_s1 + $0xb0] ss:$8 sps:$4 sm:$0xff]   ;;  %4941 = vmatprep.subr.bf16.mxu1 %v6588_v21  ;;  %v6595_v21 = vld [vmem:[%s7428_s4 + $0xe0] ss:$8 sps:$4 sm:$0xff]  }
0x14e5   : > { %v4365_v6 = vpop.xlane.xlu0 %4364  ;;  %4674 = vmatprep.subr.bf16.mxu0 %v6537_v59  ;;  %v6592_v49 = vld [vmem:[%s7428_s4 + $0xd0] ss:$8 sps:$4 sm:$0xff]  }
0x14e6   : > { %v4382_v7 = vmul.f32 %v8428_v43, %v8428_v43  ;;  %v4383_v42 = vmul.f32 %v8431_v27, %v8431_v27  ;;  %v4369_v40 = vmul.f32 0.00390625, %v4365_v6  ;;  %4675 = vmatpush1.bf16.msra.mxu0 %v6535_v12  ;;  %v8488_v59 = vld [vmem:[%s7439_s17 + $0x38] sm:$0xf]  ;;  %v8491_v12 = vld [vmem:[%s7439_s17 + $0x30] sm:$0xf] }
0x14e7   : > { %4676 = vmatprep.subr.bf16.mxu0 %v6540_v60  ;;  %4942 = vmatpush1.bf16.msra.mxu1 %v6586_v31  ;;  %v4437_v19 = vrot.slane %v8491_v12, %v8035_v41  ;;  %v6600_v31 = vld [vmem:[%s7428_s4 + $0xf4] ss:$8 sps:$4 sm:$0xff]  }
0x14e8   : > { %v8438_v51 = vsub.f32 %v8378_v1, %v4369_v40  ;;  %v8441_v22 = vsub.f32 %v8381_v14, %v4369_v40  ;;  %v4392_v8 = vadd.f32 %v4383_v42, %v4382_v7  ;;  %v6541_v1 = vld [vmem:[%s7426_s1 + $0xc0] ss:$8 sps:$4 sm:$0xff]   ;;  %v6546_v14 = vld [vmem:[%s7426_s1 + $0xd4] ss:$8 sps:$4 sm:$0xff]   ;;  %4943 = vmatprep.subr.bf16.mxu1 %v6591_v3  ;;  %v6598_v3 = vld [vmem:[%s7428_s4 + $0xf0] ss:$8 sps:$4 sm:$0xff]  }
0x14ea   : > { %v4384_v48 = vmul.f32 %v8438_v51, %v8438_v51  ;;  %v4385_v58 = vmul.f32 %v8441_v22, %v8441_v22  ;;  %4393 = vadd.xlane.f32.xlu1 %v4392_v8  ;;  %4677 = vmatpush1.bf16.msra.mxu0 %v6538_v13 }
0x14eb   : > { %4678 = vmatprep.subr.bf16.mxu0 %v6543_v62  ;;  %4944 = vmatpush1.bf16.msra.mxu1 %v6589_v0  ;;  %v4425_v62 = vrot.slane %v8488_v59, %v7580_v54  ;;  %v4488_v0 = vsub.s32 4, %v7577_v53 }
0x14ec   : > { %v4395_v11 = vadd.f32 %v4385_v58, %v4384_v48  ;;  %4945 = vmatprep.subr.bf16.mxu1 %v6594_v29 }
0x14ed   : > { %v4489_v29 = vrot.slane %v8346_v16, %v4488_v0 }
0x14ee   : > { %4396 = vadd.xlane.f32.xlu0 %v4395_v11  ;;  %4679 = vmatpush1.bf16.msra.mxu0 %v6541_v1  ;;  %v4421_v1 = vrot.slane %v8491_v12, %v7580_v54 }
0x14ef   : > { %4680 = vmatprep.subr.bf16.mxu0 %v6546_v14  ;;  %4946 = vmatpush1.bf16.msra.mxu1 %v6592_v49  ;;  %v4493_v49 = vrot.slane %v8351_v61, %v4488_v0 }
0x14f2   : > { %4681 = vmatpush1.bf16.msra.mxu0 %v6544_v23 }
0x14f3   : > { %4682 = vmatprep.subr.bf16.mxu0 %v6549_v34 }
0x14f6   : > { %4683 = vmatpush1.bf16.msra.mxu0 %v6547_v15 }
0x14f7   : > { %4684 = vmatprep.subr.bf16.mxu0 %v6552_v17 }
0x14fa   : > { %4685 = vmatpush1.bf16.msra.mxu0 %v6550_v25  ;;  %v4441_v25 = vrot.slane %v8488_v59, %v8035_v41 }
0x156f   : > { %v4388_v4 = vpop.xlane.xlu1 %4387 }
0x1570   : > { %v4398_v6 = vmul.f32 0.00390625, %v4388_v4 }
0x1571   : > { %v4391_v7 = vpop.xlane.xlu0 %4390 }
0x1572   : > { %v4402_v42 = vadd.f32 1e-05, %v4398_v6  ;;  %v4399_v40 = vmul.f32 0.00390625, %v4391_v7 }
0x1574   : > { %6737 = vrsqrt.f32 %v4402_v42  ;;  %v4403_v8 = vadd.f32 1e-05, %v4399_v40 }
0x1576   : > { %6739 = vrsqrt.f32 %v4403_v8 }
0x1577   : > { %v4394_v48 = vpop.xlane.xlu1 %4393 }
0x1578   : > { %v4400_v58 = vmul.f32 0.00390625, %v4394_v48 }
0x157a   : > { %v4404_v11 = vadd.f32 1e-05, %v4400_v58 }
0x157b   : > { %v4397_v60 = vpop.xlane.xlu0 %4396 }
0x157c   : > { %6741 = vrsqrt.f32 %v4404_v11  ;;  %v4401_v13 = vmul.f32 0.00390625, %v4397_v60 }
0x157e   : > { %v6738_v14 = vpop.eup %6737  ;;  %v4405_v23 = vadd.f32 1e-05, %v4401_v13 }
0x157f   : > { %v4410_v15 = vmul.f32 %v6738_v14, %v8408_v52  ;;  %v4411_v34 = vmul.f32 %v6738_v14, %v8411_v18 }
0x1580   : > { %v6740_v17 = vpop.eup %6739  ;;  %6743 = vrsqrt.f32 %v4405_v23 }
0x1581   : > { %v4412_v44 = vmul.f32 %v6740_v17, %v8418_v32  ;;  %v4413_v10 = vmul.f32 %v6740_v17, %v8421_v2  ;;  %v4427_v37 = vmul.f32 %v4425_v62, %v4411_v34  ;;  %v4426_v45 = vmul.f32 %v4421_v1, %v4410_v15 }
0x1583   : > { %v4429_v38 = vmul.f32 %v4425_v62, %v4413_v10  ;;  %v4428_v46 = vmul.f32 %v4421_v1, %v4412_v44  ;;  %v8505_v39 = vadd.f32 %v4441_v25, %v4427_v37  ;;  %v8509_v18 = vadd.f32 %v4437_v19, %v4426_v45 }
0x1585   : > { %v8507_v52 = vadd.f32 %v4441_v25, %v4429_v38  ;;  %v8511_v33 = vadd.f32 %v4437_v19, %v4428_v46 }
0x1586   : > { %v6742_v35 = vpop.eup %6741 }
0x1587   : > { %v4451_v30 = vpack.c.bf16 %v8507_v52, %v8505_v39  ;;  %v4450_v32 = vpack.c.bf16 %v8511_v33, %v8509_v18  ;;  %v4415_v2 = vmul.f32 %v6742_v35, %v8431_v27  ;;  %v4414_v63 = vmul.f32 %v6742_v35, %v8428_v43 }
0x1589   : > { %4686 = vmatprep.mubr.bf16.mxu0 %v4451_v30  ;;  %v4431_v9 = vmul.f32 %v4425_v62, %v4415_v2  ;;  %v4430_v20 = vmul.f32 %v4421_v1, %v4414_v63 }
0x158a   : > { %v6744_v36 = vpop.eup %6743  ;;  %4687 = vmatmul.mubr.bf16.vlgmr.msra.gmra.mrb[60].mxu0 %v4450_v32  ;;  %v4753_v32 = vsub.s32 5, %v7577_v53 }
0x158b   : > { %v4417_v5 = vmul.f32 %v6744_v36, %v8441_v22  ;;  %v4416_v56 = vmul.f32 %v6744_v36, %v8438_v51  ;;  %v8521_v24 = vadd.f32 %v4441_v25, %v4431_v9  ;;  %v8525_v43 = vadd.f32 %v4437_v19, %v4430_v20  ;;  %v6597_v51 = vld [vmem:[%s7428_s4 + $0xe4] ss:$8 sps:$4 sm:$0xff]   ;;  %s8664_s4 = sld [smem:[#allocation29_spill]] (!%p5774_p12) }
0x158c   : > { %4947 = vmatprep.subr.bf16.mxu1 %v6597_v51  ;;  %v4754_v2 = vrot.slane %v8346_v16, %v4753_v32  ;;  %v4758_v63 = vrot.slane %v8351_v61, %v4753_v32 }
0x158d   : > { %v4433_v47 = vmul.f32 %v4425_v62, %v4417_v5  ;;  %v4432_v57 = vmul.f32 %v4421_v1, %v4416_v56  ;;  %4948 = vmatpush1.bf16.msra.mxu1 %v6595_v21 }
0x158e   : > { %4949 = vmatprep.subr.bf16.mxu1 %v6600_v31 }
0x158f   : > { %v8523_v27 = vadd.f32 %v4441_v25, %v4433_v47  ;;  %v8527_v26 = vadd.f32 %v4437_v19, %v4432_v57 }
0x1591   : > { %v4453_v50 = vpack.c.bf16 %v8523_v27, %v8521_v24  ;;  %v4452_v22 = vpack.c.bf16 %v8527_v26, %v8525_v43  ;;  %4950 = vmatpush1.bf16.msra.mxu1 %v6598_v3 }
0x1593   : > { %4696 = vmatprep.mubr.bf16.mxu0 %v4453_v50 }
0x1594   : > { %4697 = vmatmul.mubr.bf16.gmra.mrb[64].mxu0 %v4452_v22 }
0x165d   : > { %v4688_v4 = vpop.f32.mrb[60].mxu0 }
0x165e   : > { %v4689_v6 = vadd.f32 %v4688_v4, %v4489_v29  ;;  %v4690_v7 = vpop.f32.mrb[61].mxu0 }
0x165f   : > { %v4691_v42 = vadd.f32 %v4690_v7, %v4493_v49  ;;  %v4692_v40 = vpop.f32.mrb[62].mxu0 }
0x1660   : > { %v4693_v8 = vadd.f32 %v4692_v40, %v4489_v29  ;;  %v4694_v48 = vpop.f32.mrb[63].mxu0  ;;  %v4707_v11 = vmax.f32 %v4689_v6, 0.0 }
0x1661   : > { %v4695_v58 = vadd.f32 %v4694_v48, %v4493_v49  ;;  %v4708_v13 = vmax.f32 %v4691_v42, 0.0 }
0x1662   : > { %v4709_v60 = vmax.f32 %v4693_v8, 0.0 }
0x1663   : > { %v4710_v62 = vmax.f32 %v4695_v58, 0.0 }
0x1664   : > { %v4715_v1 = vpack.c.bf16 %v4709_v60, %v4707_v11 }
0x1665   : > { %v4716_v14 = vpack.c.bf16 %v4710_v62, %v4708_v13 }
0x1667   : > { %v4698_v23 = vpop.f32.mrb[64].mxu0  ;;  %4951 = vmatprep.mubr.bf16.mxu1 %v4716_v14 }
0x1668   : > { %v4699_v15 = vadd.f32 %v4698_v23, %v4489_v29  ;;  %v4700_v34 = vpop.f32.mrb[65].mxu0  ;;  %4952 = vmatmul.mubr.bf16.vlgmr.msra.gmra.mrb[68].mxu1 %v4715_v1 }
0x1669   : > { %v4701_v17 = vadd.f32 %v4700_v34, %v4493_v49  ;;  %v4702_v25 = vpop.f32.mrb[66].mxu0 }
0x166a   : > { %v4703_v19 = vadd.f32 %v4702_v25, %v4489_v29  ;;  %v4704_v44 = vpop.f32.mrb[67].mxu0  ;;  %v4711_v37 = vmax.f32 %v4699_v15, 0.0 }
0x166b   : > { %v4705_v10 = vadd.f32 %v4704_v44, %v4493_v49  ;;  %v4712_v38 = vmax.f32 %v4701_v17, 0.0 }
0x166c   : > { %v4713_v45 = vmax.f32 %v4703_v19, 0.0 }
0x166d   : > { %v4714_v46 = vmax.f32 %v4705_v10, 0.0 }
0x166e   : > { %v4717_v35 = vpack.c.bf16 %v4713_v45, %v4711_v37 }
0x166f   : > { %v4718_v30 = vpack.c.bf16 %v4714_v46, %v4712_v38 }
0x1671   : > { %4961 = vmatprep.mubr.bf16.mxu1 %v4718_v30 }
0x1672   : > { %4962 = vmatmul.mubr.bf16.gmra.mrb[72].mxu1 %v4717_v35 }
0x173b   : > { %v4953_v36 = vpop.f32.mrb[68].mxu1 }
0x173c   : > { %v4954_v5 = vadd.f32 %v4953_v36, %v4754_v2  ;;  %v4955_v9 = vpop.f32.mrb[69].mxu1 }
0x173d   : > { %v4956_v56 = vadd.f32 %v4955_v9, %v4758_v63  ;;  %v4957_v20 = vpop.f32.mrb[70].mxu1 }
0x173e   : > { %v4972_v47 = vadd.f32 %v4954_v5, %v8509_v18  ;;  %v4958_v57 = vadd.f32 %v4957_v20, %v4754_v2  ;;  %v4959_v50 = vpop.f32.mrb[71].mxu1 }
0x173f   : > { %v4973_v22 = vadd.f32 %v4956_v56, %v8505_v39  ;;  %v4960_v51 = vadd.f32 %v4959_v50, %v4758_v63 }
0x1740   : > { %v4974_v21 = vadd.f32 %v4958_v57, %v8511_v33 }
0x1741   : > { %v4975_v53 = vadd.f32 %v4960_v51, %v8507_v52  ;;  %v4980_v31 = vadd.f32 %v4973_v22, %v4972_v47  ;;  %v5051_v51 = vrot.slane %v8488_v59, %v7831_v28 }
0x1743   : > { %4981 = vadd.xlane.f32.xlu1 %v4980_v31  ;;  %v4983_v16 = vadd.f32 %v4975_v53, %v4974_v21 }
0x1745   : > { %4984 = vadd.xlane.f32.xlu0 %v4983_v16  ;;  %v4963_v61 = vpop.f32.mrb[72].mxu1  ;;  %v5067_v16 = vrot.slane %v8488_v59, %v8343_v55 }
0x1746   : > { %v4964_v3 = vadd.f32 %v4963_v61, %v4754_v2  ;;  %v4965_v0 = vpop.f32.mrb[73].mxu1  ;;  %v5063_v61 = vrot.slane %v8491_v12, %v8343_v55 }
0x1747   : > { %v4966_v29 = vadd.f32 %v4965_v0, %v4758_v63  ;;  %v4967_v49 = vpop.f32.mrb[74].mxu1 }
0x1748   : > { %v4976_v18 = vadd.f32 %v4964_v3, %v8525_v43  ;;  %v4968_v4 = vadd.f32 %v4967_v49, %v4754_v2  ;;  %v4969_v6 = vpop.f32.mrb[75].mxu1 }
0x1749   : > { %v4977_v39 = vadd.f32 %v4966_v29, %v8521_v24  ;;  %v4970_v7 = vadd.f32 %v4969_v6, %v4758_v63 }
0x174a   : > { %v4978_v33 = vadd.f32 %v4968_v4, %v8527_v26 }
0x174b   : > { %v4979_v52 = vadd.f32 %v4970_v7, %v8523_v27  ;;  %v4986_v42 = vadd.f32 %v4977_v39, %v4976_v18 }
0x174d   : > { %4987 = vadd.xlane.f32.xlu1 %v4986_v42  ;;  %v4989_v40 = vadd.f32 %v4979_v52, %v4978_v33 }
0x174f   : > { %4990 = vadd.xlane.f32.xlu0 %v4989_v40 }
0x17d0   : > { %v4982_v8 = vpop.xlane.xlu1 %4981 }
0x17d1   : > { %v4992_v48 = vmul.f32 0.00390625, %v4982_v8 }
0x17d2   : > { %v4985_v58 = vpop.xlane.xlu0 %4984 }
0x17d3   : > { %v4996_v11 = vsub.f32 %v4972_v47, %v4992_v48  ;;  %v4997_v60 = vsub.f32 %v4973_v22, %v4992_v48  ;;  %v4993_v13 = vmul.f32 0.00390625, %v4985_v58 }
0x17d5   : > { %v5004_v43 = vmul.f32 %v4996_v11, %v4996_v11  ;;  %v5005_v62 = vmul.f32 %v4997_v60, %v4997_v60  ;;  %v4998_v1 = vsub.f32 %v4974_v21, %v4993_v13  ;;  %v4999_v14 = vsub.f32 %v4975_v53, %v4993_v13 }
0x17d6   : > { %v5047_v21 = vrot.slane %v8491_v12, %v7831_v28 }
0x17d7   : > { %v5006_v24 = vmul.f32 %v4998_v1, %v4998_v1  ;;  %v5007_v23 = vmul.f32 %v4999_v14, %v4999_v14  ;;  %v5012_v15 = vadd.f32 %v5005_v62, %v5004_v43 }
0x17d9   : > { %5013 = vadd.xlane.f32.xlu1 %v5012_v15  ;;  %v5015_v26 = vadd.f32 %v5007_v23, %v5006_v24 }
0x17da   : > { %v4988_v27 = vpop.xlane.xlu1 %4987 }
0x17db   : > { %v4994_v34 = vmul.f32 0.00390625, %v4988_v27  ;;  %5016 = vadd.xlane.f32.xlu0 %v5015_v26 }
0x17dc   : > { %v4991_v17 = vpop.xlane.xlu0 %4990 }
0x17dd   : > { %v5000_v25 = vsub.f32 %v4976_v18, %v4994_v34  ;;  %v5001_v19 = vsub.f32 %v4977_v39, %v4994_v34  ;;  %v4995_v44 = vmul.f32 0.00390625, %v4991_v17 }
0x17df   : > { %v5008_v10 = vmul.f32 %v5000_v25, %v5000_v25  ;;  %v5009_v37 = vmul.f32 %v5001_v19, %v5001_v19  ;;  %v5002_v45 = vsub.f32 %v4978_v33, %v4995_v44  ;;  %v5003_v38 = vsub.f32 %v4979_v52, %v4995_v44 }
0x17e1   : > { %v5010_v46 = vmul.f32 %v5002_v45, %v5002_v45  ;;  %v5011_v35 = vmul.f32 %v5003_v38, %v5003_v38  ;;  %v5018_v30 = vadd.f32 %v5009_v37, %v5008_v10 }
0x17e3   : > { %5019 = vadd.xlane.f32.xlu1 %v5018_v30  ;;  %v5021_v32 = vadd.f32 %v5011_v35, %v5010_v46 }
0x17e5   : > { %5022 = vadd.xlane.f32.xlu0 %v5021_v32 }
0x1866   : > { %v5014_v2 = vpop.xlane.xlu1 %5013 }
0x1867   : > { %v5024_v63 = vmul.f32 0.00390625, %v5014_v2 }
0x1868   : > { %v5017_v36 = vpop.xlane.xlu0 %5016 }
0x1869   : > { %v5028_v5 = vadd.f32 1e-05, %v5024_v63  ;;  %v5025_v9 = vmul.f32 0.00390625, %v5017_v36 }
0x186b   : > { %6745 = vrsqrt.f32 %v5028_v5  ;;  %v5029_v56 = vadd.f32 1e-05, %v5025_v9 }
0x186d   : > { %6747 = vrsqrt.f32 %v5029_v56 }
0x1870   : > { %v5020_v20 = vpop.xlane.xlu1 %5019 }
0x1871   : > { %v5026_v47 = vmul.f32 0.00390625, %v5020_v20 }
0x1872   : > { %v5023_v57 = vpop.xlane.xlu0 %5022 }
0x1873   : > { %v5030_v50 = vadd.f32 1e-05, %v5026_v47  ;;  %v5027_v22 = vmul.f32 0.00390625, %v5023_v57 }
0x1875   : > { %v6746_v53 = vpop.eup %6745  ;;  %6749 = vrsqrt.f32 %v5030_v50  ;;  %v5031_v31 = vadd.f32 1e-05, %v5027_v22 }
0x1876   : > { %v5036_v3 = vmul.f32 %v6746_v53, %v4996_v11  ;;  %v5037_v0 = vmul.f32 %v6746_v53, %v4997_v60 }
0x1877   : > { %v6748_v29 = vpop.eup %6747  ;;  %6751 = vrsqrt.f32 %v5031_v31 }
0x1878   : > { %v5052_v49 = vmul.f32 %v5047_v21, %v5036_v3  ;;  %v5053_v18 = vmul.f32 %v5051_v51, %v5037_v0  ;;  %v5038_v4 = vmul.f32 %v6748_v29, %v4998_v1  ;;  %v5039_v6 = vmul.f32 %v6748_v29, %v4999_v14 }
0x187a   : > { %v5068_v39 = vadd.f32 %v5063_v61, %v5052_v49  ;;  %v5069_v7 = vadd.f32 %v5067_v16, %v5053_v18  ;;  %v5054_v33 = vmul.f32 %v5047_v21, %v5038_v4  ;;  %v5055_v52 = vmul.f32 %v5051_v51, %v5039_v6 }
0x187c   : > { %5076 = vst [vmem:[#allocation13] sm:$0xff] %v5068_v39  ;;  %5077 = vst [vmem:[#allocation13 + $0x8] sm:$0xff] %v5069_v7  ;;  %v5070_v42 = vadd.f32 %v5063_v61, %v5054_v33  ;;  %v5071_v40 = vadd.f32 %v5067_v16, %v5055_v52  ;;  %v5089_v15 = vadd.f32 (!%p5774_p12), %v5069_v7, %v5068_v39 }
0x187e   : > { %5078 = vst [vmem:[#allocation13 + $0x10] sm:$0xff] %v5070_v42  ;;  %5079 = vst [vmem:[#allocation13 + $0x18] sm:$0xff] %v5071_v40  ;;  %5090 = vadd.xlane.f32.xlu0 (!%p5774_p12), %v5089_v15  ;;  %v5092_v27 = vadd.f32 (!%p5774_p12), %v5071_v40, %v5070_v42 }
0x187f   : > { %v6750_v59 = vpop.eup %6749 }
0x1880   : > { %v5040_v12 = vmul.f32 %v6750_v59, %v5000_v25  ;;  %v5041_v8 = vmul.f32 %v6750_v59, %v5001_v19 }
0x1881   : > { %v6752_v48 = vpop.eup %6751 }
0x1882   : > { %v5056_v58 = vmul.f32 %v5047_v21, %v5040_v12  ;;  %v5057_v11 = vmul.f32 %v5051_v51, %v5041_v8  ;;  %v5042_v60 = vmul.f32 %v6752_v48, %v5002_v45  ;;  %v5043_v13 = vmul.f32 %v6752_v48, %v5003_v38  ;;  %5087 = sbr.rel (%p5774_p12) target bundleno = 6598 (0x19c6), region = 100  ;;  %5093 = vadd.xlane.f32.xlu0 (!%p5774_p12), %v5092_v27 }
0x1884   : > { %v5072_v43 = vadd.f32 %v5063_v61, %v5056_v58  ;;  %v5073_v62 = vadd.f32 %v5067_v16, %v5057_v11  ;;  %v5058_v1 = vmul.f32 %v5047_v21, %v5042_v60  ;;  %v5059_v14 = vmul.f32 %v5051_v51, %v5043_v13 }
0x1886   : > { %5080 = vst [vmem:[#allocation13 + $0x20] sm:$0xff] %v5072_v43  ;;  %5081 = vst [vmem:[#allocation13 + $0x28] sm:$0xff] %v5073_v62  ;;  %v5074_v24 = vadd.f32 %v5063_v61, %v5058_v1  ;;  %v5075_v23 = vadd.f32 %v5067_v16, %v5059_v14  ;;  %v5095_v26 = vadd.f32 (!%p5774_p12), %v5073_v62, %v5072_v43 }
0x1888   : > { %5082 = vst [vmem:[#allocation13 + $0x30] sm:$0xff] %v5074_v24  ;;  %5083 = vst [vmem:[#allocation13 + $0x38] sm:$0xff] %v5075_v23  ;;  %5096 = vadd.xlane.f32.xlu1 (!%p5774_p12), %v5095_v26  ;;  %v5098_v34 = vadd.f32 (!%p5774_p12), %v5075_v23, %v5074_v24 }
0x188c   : > { %5099 = vadd.xlane.f32.xlu1 %v5098_v34 }
0x190b   : > { %v5091_v17 = vpop.xlane.xlu0 %5090 }
0x190c   : > { %v5101_v19 = vmul.f32 0.00390625, %v5091_v17 }
0x190e   : > { %v5105_v10 = vsub.f32 %v5068_v39, %v5101_v19  ;;  %v5106_v37 = vsub.f32 %v5069_v7, %v5101_v19  ;;  %v5088_v39 = vld [vmem:[%s8664_s4] sm:$0xf] }
0x190f   : > { %v5094_v46 = vpop.xlane.xlu0 %5093  ;;  %v5183_v12 = vrot.slane %v5088_v39, %v8035_v41  ;;  %v5187_v8 = vrot.slane %v5088_v39, %v8343_v55 }
0x1910   : > { %v5102_v30 = vmul.f32 0.00390625, %v5094_v46  ;;  %v5113_v2 = vmul.f32 %v5105_v10, %v5105_v10  ;;  %v5114_v63 = vmul.f32 %v5106_v37, %v5106_v37 }
0x1912   : > { %v5107_v9 = vsub.f32 %v5070_v42, %v5102_v30  ;;  %v5108_v56 = vsub.f32 %v5071_v40, %v5102_v30  ;;  %v5121_v57 = vadd.f32 %v5114_v63, %v5113_v2  ;;  %v5157_v42 = vrot.slane %v5088_v39, %v7580_v54 }
0x1913   : > { %v5161_v40 = vrot.slane %v5088_v39, %v7831_v28 }
0x1914   : > { %v5115_v50 = vmul.f32 %v5107_v9, %v5107_v9  ;;  %v5116_v22 = vmul.f32 %v5108_v56, %v5108_v56  ;;  %5122 = vadd.xlane.f32.xlu0 %v5121_v57  ;;  %v5167_v48 = vrot.slane %v5157_v42, %v7580_v54 }
0x1915   : > { %v5097_v25 = vpop.xlane.xlu1 %5096  ;;  %v5171_v58 = vrot.slane %v5161_v40, %v7580_v54 }
0x1916   : > { %v5103_v44 = vmul.f32 0.00390625, %v5097_v25  ;;  %v5124_v31 = vadd.f32 %v5116_v22, %v5115_v50 }
0x1918   : > { %v5109_v45 = vsub.f32 %v5072_v43, %v5103_v44  ;;  %v5110_v38 = vsub.f32 %v5073_v62, %v5103_v44  ;;  %5125 = vadd.xlane.f32.xlu1 %v5124_v31  ;;  %v5193_v43 = vrot.slane %v5183_v12, %v8035_v41  ;;  %v5197_v62 = vrot.slane %v5187_v8, %v8035_v41 }
0x1919   : > { %v5100_v35 = vpop.xlane.xlu1 %5099 }
0x191a   : > { %v5104_v32 = vmul.f32 0.00390625, %v5100_v35  ;;  %v5117_v36 = vmul.f32 %v5109_v45, %v5109_v45  ;;  %v5118_v5 = vmul.f32 %v5110_v38, %v5110_v38 }
0x191c   : > { %v5111_v20 = vsub.f32 %v5074_v24, %v5104_v32  ;;  %v5112_v47 = vsub.f32 %v5075_v23, %v5104_v32  ;;  %v5127_v53 = vadd.f32 %v5118_v5, %v5117_v36 }
0x191e   : > { %v5119_v51 = vmul.f32 %v5111_v20, %v5111_v20  ;;  %v5120_v21 = vmul.f32 %v5112_v47, %v5112_v47  ;;  %5128 = vadd.xlane.f32.xlu0 %v5127_v53 }
0x1920   : > { %v5130_v16 = vadd.f32 %v5120_v21, %v5119_v51 }
0x1922   : > { %5131 = vadd.xlane.f32.xlu1 %v5130_v16 }
0x19a1   : > { %v5123_v61 = vpop.xlane.xlu0 %5122 }
0x19a2   : > { %v5133_v3 = vmul.f32 0.00390625, %v5123_v61 }
0x19a4   : > { %v5137_v0 = vadd.f32 1e-05, %v5133_v3 }
0x19a5   : > { %v5126_v29 = vpop.xlane.xlu1 %5125 }
0x19a6   : > { %v5134_v49 = vmul.f32 0.00390625, %v5126_v29  ;;  %6769 = vrsqrt.f32 %v5137_v0 }
0x19a8   : > { %v5138_v6 = vadd.f32 1e-05, %v5134_v49 }
0x19aa   : > { %6771 = vrsqrt.f32 %v5138_v6 }
0x19ab   : > { %v5129_v18 = vpop.xlane.xlu0 %5128 }
0x19ac   : > { %v5135_v4 = vmul.f32 0.00390625, %v5129_v18 }
0x19ae   : > { %v5139_v7 = vadd.f32 1e-05, %v5135_v4 }
0x19af   : > { %v5132_v33 = vpop.xlane.xlu1 %5131 }
0x19b0   : > { %v5136_v52 = vmul.f32 0.00390625, %v5132_v33  ;;  %6773 = vrsqrt.f32 %v5139_v7  ;;  %v6770_v11 = vpop.eup %6769 }
0x19b1   : > { %v5145_v60 = vmul.f32 %v6770_v11, %v5105_v10  ;;  %v5146_v13 = vmul.f32 %v6770_v11, %v5106_v37 }
0x19b2   : > { %v5140_v59 = vadd.f32 1e-05, %v5136_v52 }
0x19b3   : > { %v5172_v14 = vmul.f32 %v5167_v48, %v5145_v60  ;;  %v5173_v28 = vmul.f32 %v5171_v58, %v5146_v13 }
0x19b4   : > { %6775 = vrsqrt.f32 %v5140_v59  ;;  %v6772_v1 = vpop.eup %6771 }
0x19b5   : > { %v5147_v23 = vmul.f32 %v6772_v1, %v5107_v9  ;;  %v5148_v15 = vmul.f32 %v6772_v1, %v5108_v56  ;;  %v5198_v26 = vadd.f32 %v5193_v43, %v5172_v14  ;;  %v5199_v55 = vadd.f32 %v5197_v62, %v5173_v28 }
0x19b7   : > { %v5174_v17 = vmul.f32 %v5167_v48, %v5147_v23  ;;  %v5175_v25 = vmul.f32 %v5171_v58, %v5148_v15  ;;  %5206 = vst [vmem:[#allocation13] sm:$0xff] %v5198_v26  ;;  %5207 = vst [vmem:[#allocation13 + $0x8] sm:$0xff] %v5199_v55 }
0x19b9   : > { %v5200_v10 = vadd.f32 %v5193_v43, %v5174_v17  ;;  %v5201_v37 = vadd.f32 %v5197_v62, %v5175_v25 }
0x19ba   : > { %v6774_v24 = vpop.eup %6773 }
0x19bb   : > { %v5149_v27 = vmul.f32 %v6774_v24, %v5109_v45  ;;  %v5150_v34 = vmul.f32 %v6774_v24, %v5110_v38  ;;  %5208 = vst [vmem:[#allocation13 + $0x10] sm:$0xff] %v5200_v10  ;;  %5209 = vst [vmem:[#allocation13 + $0x18] sm:$0xff] %v5201_v37 }
0x19bd   : > { %v5176_v19 = vmul.f32 %v5167_v48, %v5149_v27  ;;  %v5177_v44 = vmul.f32 %v5171_v58, %v5150_v34 }
0x19be   : > { %v6776_v54 = vpop.eup %6775 }
0x19bf   : > { %v5151_v41 = vmul.f32 %v6776_v54, %v5111_v20  ;;  %v5152_v46 = vmul.f32 %v6776_v54, %v5112_v47  ;;  %v5202_v35 = vadd.f32 %v5193_v43, %v5176_v19  ;;  %v5203_v30 = vadd.f32 %v5197_v62, %v5177_v44 }
0x19c1   : > { %v5178_v32 = vmul.f32 %v5167_v48, %v5151_v41  ;;  %v5179_v2 = vmul.f32 %v5171_v58, %v5152_v46  ;;  %5210 = vst [vmem:[#allocation13 + $0x20] sm:$0xff] %v5202_v35  ;;  %5211 = vst [vmem:[#allocation13 + $0x28] sm:$0xff] %v5203_v30 }
0x19c3   : > { %v5204_v45 = vadd.f32 %v5193_v43, %v5178_v32  ;;  %v5205_v38 = vadd.f32 %v5197_v62, %v5179_v2 }
0x19c5   : > { %5212 = vst [vmem:[#allocation13 + $0x30] sm:$0xff] %v5204_v45  ;;  %5213 = vst [vmem:[#allocation13 + $0x38] sm:$0xff] %v5205_v38 }
0x19c6 PF: > { %p6033_p2 = scmp.eq.s32.totalorder %s7133_s25, 1  ;;  %s7046_s17 = smov [#allocation13]  }
0x19c7   : > { %s5220_s0 = sshll.u32 %s7046_s17, 4  ;;  %s5221_s0 = int_to_ptr.vmem [resolvable:$true] %s5220_s0 }
0x19c8   : > { %s6957_s11 = scalar_lea.vmem %s5221_s0, 1024  ;;  %p6964_p1 = scmp.lt.s32.totalorder %s5221_s0, %s5221_s0 }
0x19c9   : > { %p6958_p7 = scmp.ne.s32.totalorder %s5221_s0, %s6957_s11  ;;  %p6965_p5 = scmp.lt.s32.totalorder %s6957_s11, %s6957_s11 }
0x19cb   : > { %p6959_p3 = pnand %p6958_p7, %p6033_p2  ;;  %p6966_p4 = por %p6965_p5, %p6964_p1 }
0x19cd   : > { %p6960_p6 = pneg %p6959_p3 }
0x19cf   : > { %p6967_p13 = pnand %p6966_p4, %p6960_p6 }
0x19d1   : > { %6970 = shalt.err (!%p6967_p13)
}
0x19d2   : > { %s8665_s7 = sld [smem:[#allocation30_spill]] }
0x19d8   : > { %s6971_s27 = scalar_lea.hbm %s8665_s7, 1024 }
0x19d9   : > { %p6972_p9 = scmp.ne.s32.totalorder %s8665_s7, %s6971_s27  ;;  %p6977_p8 = scmp.lt.u32.totalorder %s6971_s27, %s8665_s7 }
0x19db   : > { %p6973_p10 = pnand %p6972_p9, %p6033_p2 }
0x19dd   : > { %p6974_p11 = pneg %p6973_p10 }
0x19df   : > { %p6979_p0 = pnand %p6977_p8, %p6974_p11 }
0x19e1   : > { %6982 = shalt.err (!%p6979_p0)
}
0x19e2   : > { %s7047_s2 = smov 256   ;;  %s7048_s30 = smov 16  }
0x19e3   : > { %6010 = dma.vmem_to_hbm [thread:$0]  (%p6033_p2), %s5221_s0, 1024, %s8665_s7, [#allocation4], %s7047_s2, %s7047_s2, %s7048_s30  }
0x19e4   : > { %7016 = dma.done.wait (%p6033_p2), [#allocation4], 1024  }
0x19e5   : > { %7018 = vsyncadd (%p6033_p2), [#allocation4], 4294966272 }
0x19e6 PF: > { %s8666_s24 = sld [smem:[#allocation20_spill]]  ;;  %s8667_s23 = sld [smem:[#allocation19_spill]] }
0x19e7   : > { %s8668_s20 = sld [smem:[#allocation21_spill]]  ;;  %s8669_s21 = smov %s7025_s22 }
0x19ec   : > { %p32_p12 = scmp.ge.s32.totalorder %s8666_s24, 4   ;;  %s8670_s22 = smov %s8667_s23 }
0x19ed   : > { %s8671_s23 = smov %s8668_s20 }
0x19ee   :  { %34 = sbr.rel (!%p32_p12) target bundleno = 20 (0x14), region = 177 }
0x19f5   :  { %5236 = vsyncpa [#allocation3], 1 }
0x19f6   :  { %5238 = vsyncpa [#allocation3 + $0x1], 1 }
0x19f7   :  { %5239 = vsyncpa [#allocation6], 1 }
0x19f8   :  { %5241 = vsyncpa [#allocation6 + $0x1], 1 }
0x19f9   :  { %5242 = vsyncpa [#allocation9], 1 }
0x19fa   :  { %5244 = vsyncpa [#allocation9 + $0x1], 1 }
0x19fb   :  { %5245 = vsyncpa [#allocation12], 1 }
0x19fc   :  { %5247 = vsyncpa [#allocation12 + $0x1], 1 }
0x19fd   :  { %5248 = vsyncpa [#allocation4], 1 }
0x19fe   :  { %5250 = vsyncpa [#allocation4 + $0x1], 1 }

</bundles_post_ra>
